<compile_context>
chip_gen: v5e
topology: v5e:2x2
jax: 0.10.0
libtpu: 0.0.40
codegen_flags: <defaults>
</compile_context>

<pallas_src>
import jax
import jax.numpy as jnp
from jax.experimental import pallas as pl
from jax.experimental.pallas import tpu as pltpu


def _round_up(v, m):
    return ((v + m - 1) // m) * m


def _make_matmul_bias_act_kernel(activation):
    """Kernel: o = act(x @ w + b).  x:(tm,Kp) w:(Kp,Np) b:(1,Np) o:(tm,Np)."""

    def kernel(x_ref, w_ref, b_ref, o_ref):
        acc = jnp.dot(x_ref[...], w_ref[...],
                      preferred_element_type=jnp.float32)          # MXU
        acc = acc + b_ref[...]                                      # broadcast bias
        if activation == "relu":
            acc = jnp.maximum(acc, 0.0)                             # VPU
        elif activation == "sigmoid":
            acc = 1.0 / (1.0 + jnp.exp(-acc))                       # EUP
        o_ref[...] = acc.astype(o_ref.dtype)

    return kernel


def _matmul_bias_act(x, w, b, activation, max_tile_m=512):
    """act(x @ w + b) with lane-dense padding; x:(M,K), w:(K,Nc), b:(Nc,)."""
    M, K = x.shape
    K2, Nc = w.shape
    assert K == K2
    Kp = _round_up(K, 128)            # lane-dense contraction dim
    Np = _round_up(Nc, 128)           # lane-dense output dim (unmasked vst)

    Mp8 = _round_up(M, 8)             # sublane alignment
    if Mp8 <= max_tile_m:
        tile_m, Mp = Mp8, Mp8
    else:
        tile_m = max_tile_m
        Mp = _round_up(M, tile_m)

    xp = jnp.pad(x, ((0, Mp - M), (0, Kp - K)))
    wp = jnp.pad(w, ((0, Kp - K), (0, Np - Nc)))
    bp = jnp.pad(b.reshape(1, Nc), ((0, 0), (0, Np - Nc)))

    out = pl.pallas_call(
        _make_matmul_bias_act_kernel(activation),
        out_shape=jax.ShapeDtypeStruct((Mp, Np), jnp.float32),
        grid_spec=pltpu.PrefetchScalarGridSpec(
            num_scalar_prefetch=0,
            grid=(Mp // tile_m,),
            in_specs=[
                pl.BlockSpec((tile_m, Kp), lambda i: (i, 0)),   # row tile of patches
                pl.BlockSpec((Kp, Np), lambda i: (0, 0)),       # resident weight
                pl.BlockSpec((1, Np), lambda i: (0, 0)),        # resident bias
            ],
            out_specs=pl.BlockSpec((tile_m, Np), lambda i: (i, 0)),
        ),
        compiler_params=pltpu.CompilerParams(
            dimension_semantics=("parallel",),
            vmem_limit_bytes=32 * 1024 * 1024,
        ),
    )(xp, wp, bp)
    return out[:M, :Nc]


def _conv3x3_same_relu(x_nhwc, w_oihw, b):
    """3x3 conv, stride 1, padding 1, + bias + ReLU.  NHWC in/out."""
    N, H, W, Cin = x_nhwc.shape
    Cout = w_oihw.shape[0]
    xp = jnp.pad(x_nhwc, ((0, 0), (1, 1), (1, 1), (0, 0)))
    # im2col with feature order (kh, kw, cin) -- matches the weight transpose below.
    cols = [xp[:, kh:kh + H, kw:kw + W, :] for kh in range(3) for kw in range(3)]
    patches = jnp.concatenate(cols, axis=-1).reshape(N * H * W, 9 * Cin)
    w2 = jnp.transpose(w_oihw, (2, 3, 1, 0)).reshape(9 * Cin, Cout)  # (K, Cout)
    y = _matmul_bias_act(patches, w2, b, "relu")
    return y.reshape(N, H, W, Cout)


def _maxpool2x2(x_nhwc):
    N, H, W, C = x_nhwc.shape
    return x_nhwc.reshape(N, H // 2, 2, W // 2, 2, C).max(axis=(2, 4))


def hypernetwork_forward(x, w1, b1, w2, b2, wf, bf):
    """x: (N, Cin, H, W) NCHW.  Returns the sigmoid mask (N, fc_out)."""
    N = x.shape[0]
    h = jnp.transpose(x, (0, 2, 3, 1))                  # NCHW -> NHWC
    h = _maxpool2x2(_conv3x3_same_relu(h, w1, b1))      # (N, H/2, W/2, 32)
    h = _maxpool2x2(_conv3x3_same_relu(h, w2, b2))      # (N, H/4, W/4, 64)
    # PyTorch flattens NCHW: transpose back before the view.
    feat = jnp.transpose(h, (0, 3, 1, 2)).reshape(N, -1)
    mask = _matmul_bias_act(feat, wf.T, bf, "sigmoid")  # Linear + sigmoid
    return mask


if __name__ == "__main__":
    # Shapes consistent with the module: fc expects 64*7*7 -> spatial = 28.
    N, Cin, H, W = 2, 4, 28, 28
    out_channels, kernel_size = 8, 3
    fc_in = 64 * 7 * 7
    fc_out = out_channels * Cin * kernel_size * kernel_size

    key = jax.random.PRNGKey(0)
    ks = jax.random.split(key, 7)

    def uinit(k, shape, fan_in):
        bound = 1.0 / float(fan_in) ** 0.5
        return jax.random.uniform(k, shape, jnp.float32, -bound, bound)

    w1 = uinit(ks[0], (32, Cin, 3, 3), Cin * 9)
    b1 = uinit(ks[1], (32,), Cin * 9)
    w2 = uinit(ks[2], (64, 32, 3, 3), 32 * 9)
    b2 = uinit(ks[3], (64,), 32 * 9)
    wf = uinit(ks[4], (fc_out, fc_in), fc_in)
    bf = uinit(ks[5], (fc_out,), fc_in)
    x = jax.random.normal(ks[6], (N, Cin, H, W), jnp.float32)

    fwd = jax.jit(hypernetwork_forward)
    y = fwd(x, w1, b1, w2, b2, wf, bf)
    y = jax.block_until_ready(y)

    # Pure-JAX reference (same math as the PyTorch module).
    def ref_forward(x):
        def conv(h, w, b):
            return jax.lax.conv_general_dilated(
                h, w, window_strides=(1, 1), padding=((1, 1), (1, 1)),
                dimension_numbers=("NCHW", "OIHW", "NCHW"),
                precision=jax.lax.Precision.HIGHEST) + b[None, :, None, None]

        def pool(h):
            n, c, hh, ww = h.shape
            return h.reshape(n, c, hh // 2, 2, ww // 2, 2).max(axis=(3, 5))

        h = pool(jax.nn.relu(conv(x, w1, b1)))
        h = pool(jax.nn.relu(conv(h, w2, b2)))
        feat = h.reshape(x.shape[0], -1)
        logits = jnp.dot(feat, wf.T, precision=jax.lax.Precision.HIGHEST) + bf
        return jax.nn.sigmoid(logits)

    ref = ref_forward(x)
    assert y.shape == (N, fc_out)
    assert jnp.allclose(y, ref, atol=1e-4, rtol=1e-4)

    print("KERNEL_OK")
</pallas_src>

<mosaic_0001>
module attributes {stable_mosaic.version = 11 : i64} {
  func.func @kernel(%arg0: i32, %arg1: memref<512x128xf32, #tpu.memory_space<vmem>>, %arg2: memref<128x128xf32, #tpu.memory_space<vmem>>, %arg3: memref<1x128xf32, #tpu.memory_space<vmem>>, %arg4: memref<512x128xf32, #tpu.memory_space<vmem>>) attributes {dimension_semantics = [#tpu.dimension_semantics<parallel>], iteration_bounds = array<i64: 4>, scalar_prefetch = 0 : i64, scratch_operands = 0 : i64, tpu.core_type = #tpu.core_type<tc>, window_params = [{transform_indices = @transform_0, window_bounds = array<i64: 512, 128>}, {pipeline_mode = #tpu.pipeline_mode<synchronous>, transform_indices = @transform_1, window_bounds = array<i64: 128, 128>}, {pipeline_mode = #tpu.pipeline_mode<synchronous>, transform_indices = @transform_2, window_bounds = array<i64: 1, 128>}, {transform_indices = @transform_3, window_bounds = array<i64: 512, 128>}]} {
    %c0 = arith.constant 0 : index
    %c0_0 = arith.constant 0 : index
    %0 = vector.load %arg1[%c0, %c0_0] : memref<512x128xf32, #tpu.memory_space<vmem>>, vector<512x128xf32>
    %c0_1 = arith.constant 0 : index
    %c0_2 = arith.constant 0 : index
    %1 = vector.load %arg2[%c0_1, %c0_2] : memref<128x128xf32, #tpu.memory_space<vmem>>, vector<128x128xf32>
    %cst = arith.constant dense<0.000000e+00> : vector<512x128xf32>
    %2 = tpu.matmul %0, %1, %cst {dimension_numbers = #tpu.dot_dimension_numbers<[1], [0], [0], [1], [0, 0, 1, 1], [], []>} : vector<512x128xf32>, vector<128x128xf32>, vector<512x128xf32> -> vector<512x128xf32>
    %c0_3 = arith.constant 0 : index
    %c0_4 = arith.constant 0 : index
    %3 = vector.load %arg3[%c0_3, %c0_4] : memref<1x128xf32, #tpu.memory_space<vmem>>, vector<1x128xf32>
    %4 = vector.broadcast %3 : vector<1x128xf32> to vector<512x128xf32>
    %5 = arith.addf %2, %4 : vector<512x128xf32>
    %cst_5 = arith.constant 0.000000e+00 : f32
    %6 = vector.broadcast %cst_5 : f32 to vector<512x128xf32>
    %7 = arith.maximumf %5, %6 : vector<512x128xf32>
    %c0_6 = arith.constant 0 : index
    %c0_7 = arith.constant 0 : index
    %8 = vector.load %arg4[%c0_6, %c0_7] : memref<512x128xf32, #tpu.memory_space<vmem>>, vector<512x128xf32>
    tpu.vector_store %arg4[%c0_6, %c0_7], %7 {strides = array<i32>} : memref<512x128xf32, #tpu.memory_space<vmem>>, vector<512x128xf32>,
    return
  }
  func.func @transform_0(%arg0: i32) -> (i32, i32) {
    %c0_i32 = arith.constant 0 : i32
    %c0_i32_0 = arith.constant 0 : i32
    return %arg0, %c0_i32 : i32, i32
  }
  func.func @transform_1(%arg0: i32) -> (i32, i32) {
    %c0_i32 = arith.constant 0 : i32
    %c0_i32_0 = arith.constant 0 : i32
    %c0_i32_1 = arith.constant 0 : i32
    return %c0_i32, %c0_i32_0 : i32, i32
  }
  func.func @transform_2(%arg0: i32) -> (i32, i32) {
    %c0_i32 = arith.constant 0 : i32
    %c0_i32_0 = arith.constant 0 : i32
    %c0_i32_1 = arith.constant 0 : i32
    return %c0_i32, %c0_i32_0 : i32, i32
  }
  func.func @transform_3(%arg0: i32) -> (i32, i32) {
    %c0_i32 = arith.constant 0 : i32
    %c0_i32_0 = arith.constant 0 : i32
    return %arg0, %c0_i32 : i32, i32
  }
}

module attributes {stable_mosaic.version = 11 : i64} {
  func.func @kernel(%arg0: i32, %arg1: memref<392x384xf32, #tpu.memory_space<vmem>>, %arg2: memref<384x128xf32, #tpu.memory_space<vmem>>, %arg3: memref<1x128xf32, #tpu.memory_space<vmem>>, %arg4: memref<392x128xf32, #tpu.memory_space<vmem>>) attributes {dimension_semantics = [#tpu.dimension_semantics<parallel>], iteration_bounds = array<i64: 1>, scalar_prefetch = 0 : i64, scratch_operands = 0 : i64, tpu.core_type = #tpu.core_type<tc>, window_params = [{transform_indices = @transform_0, window_bounds = array<i64: 392, 384>}, {pipeline_mode = #tpu.pipeline_mode<synchronous>, transform_indices = @transform_1, window_bounds = array<i64: 384, 128>}, {pipeline_mode = #tpu.pipeline_mode<synchronous>, transform_indices = @transform_2, window_bounds = array<i64: 1, 128>}, {transform_indices = @transform_3, window_bounds = array<i64: 392, 128>}]} {
    %c0 = arith.constant 0 : index
    %c0_0 = arith.constant 0 : index
    %0 = vector.load %arg1[%c0, %c0_0] : memref<392x384xf32, #tpu.memory_space<vmem>>, vector<392x384xf32>
    %c0_1 = arith.constant 0 : index
    %c0_2 = arith.constant 0 : index
    %1 = vector.load %arg2[%c0_1, %c0_2] : memref<384x128xf32, #tpu.memory_space<vmem>>, vector<384x128xf32>
    %cst = arith.constant dense<0.000000e+00> : vector<392x128xf32>
    %2 = tpu.matmul %0, %1, %cst {dimension_numbers = #tpu.dot_dimension_numbers<[1], [0], [0], [1], [0, 0, 1, 1], [], []>} : vector<392x384xf32>, vector<384x128xf32>, vector<392x128xf32> -> vector<392x128xf32>
    %c0_3 = arith.constant 0 : index
    %c0_4 = arith.constant 0 : index
    %3 = vector.load %arg3[%c0_3, %c0_4] : memref<1x128xf32, #tpu.memory_space<vmem>>, vector<1x128xf32>
    %4 = vector.broadcast %3 : vector<1x128xf32> to vector<392x128xf32>
    %5 = arith.addf %2, %4 : vector<392x128xf32>
    %cst_5 = arith.constant 0.000000e+00 : f32
    %6 = vector.broadcast %cst_5 : f32 to vector<392x128xf32>
    %7 = arith.maximumf %5, %6 : vector<392x128xf32>
    %c0_6 = arith.constant 0 : index
    %c0_7 = arith.constant 0 : index
    %8 = vector.load %arg4[%c0_6, %c0_7] : memref<392x128xf32, #tpu.memory_space<vmem>>, vector<392x128xf32>
    tpu.vector_store %arg4[%c0_6, %c0_7], %7 {strides = array<i32>} : memref<392x128xf32, #tpu.memory_space<vmem>>, vector<392x128xf32>,
    return
  }
  func.func @transform_0(%arg0: i32) -> (i32, i32) {
    %c0_i32 = arith.constant 0 : i32
    %c0_i32_0 = arith.constant 0 : i32
    return %arg0, %c0_i32 : i32, i32
  }
  func.func @transform_1(%arg0: i32) -> (i32, i32) {
    %c0_i32 = arith.constant 0 : i32
    %c0_i32_0 = arith.constant 0 : i32
    %c0_i32_1 = arith.constant 0 : i32
    return %c0_i32, %c0_i32_0 : i32, i32
  }
  func.func @transform_2(%arg0: i32) -> (i32, i32) {
    %c0_i32 = arith.constant 0 : i32
    %c0_i32_0 = arith.constant 0 : i32
    %c0_i32_1 = arith.constant 0 : i32
    return %c0_i32, %c0_i32_0 : i32, i32
  }
  func.func @transform_3(%arg0: i32) -> (i32, i32) {
    %c0_i32 = arith.constant 0 : i32
    %c0_i32_0 = arith.constant 0 : i32
    return %arg0, %c0_i32 : i32, i32
  }
}

module attributes {stable_mosaic.version = 11 : i64} {
  func.func @kernel(%arg0: i32, %arg1: memref<8x3200xf32, #tpu.memory_space<vmem>>, %arg2: memref<3200x384xf32, #tpu.memory_space<vmem>>, %arg3: memref<1x384xf32, #tpu.memory_space<vmem>>, %arg4: memref<8x384xf32, #tpu.memory_space<vmem>>) attributes {dimension_semantics = [#tpu.dimension_semantics<parallel>], iteration_bounds = array<i64: 1>, scalar_prefetch = 0 : i64, scratch_operands = 0 : i64, tpu.core_type = #tpu.core_type<tc>, window_params = [{transform_indices = @transform_0, window_bounds = array<i64: 8, 3200>}, {pipeline_mode = #tpu.pipeline_mode<synchronous>, transform_indices = @transform_1, window_bounds = array<i64: 3200, 384>}, {pipeline_mode = #tpu.pipeline_mode<synchronous>, transform_indices = @transform_2, window_bounds = array<i64: 1, 384>}, {transform_indices = @transform_3, window_bounds = array<i64: 8, 384>}]} {
    %c0 = arith.constant 0 : index
    %c0_0 = arith.constant 0 : index
    %0 = vector.load %arg1[%c0, %c0_0] : memref<8x3200xf32, #tpu.memory_space<vmem>>, vector<8x3200xf32>
    %c0_1 = arith.constant 0 : index
    %c0_2 = arith.constant 0 : index
    %1 = vector.load %arg2[%c0_1, %c0_2] : memref<3200x384xf32, #tpu.memory_space<vmem>>, vector<3200x384xf32>
    %cst = arith.constant dense<0.000000e+00> : vector<8x384xf32>
    %2 = tpu.matmul %0, %1, %cst {dimension_numbers = #tpu.dot_dimension_numbers<[1], [0], [0], [1], [0, 0, 1, 1], [], []>} : vector<8x3200xf32>, vector<3200x384xf32>, vector<8x384xf32> -> vector<8x384xf32>
    %c0_3 = arith.constant 0 : index
    %c0_4 = arith.constant 0 : index
    %3 = vector.load %arg3[%c0_3, %c0_4] : memref<1x384xf32, #tpu.memory_space<vmem>>, vector<1x384xf32>
    %4 = vector.broadcast %3 : vector<1x384xf32> to vector<8x384xf32>
    %5 = arith.addf %2, %4 : vector<8x384xf32>
    %cst_5 = arith.constant 0.000000e+00 : f32
    %6 = vector.broadcast %cst_5 : f32 to vector<8x384xf32>
    %7 = arith.subf %6, %5 : vector<8x384xf32>
    %8 = math.exp %7 : vector<8x384xf32>
    %cst_6 = arith.constant 1.000000e+00 : f32
    %9 = vector.broadcast %cst_6 : f32 to vector<8x384xf32>
    %10 = arith.addf %9, %8 : vector<8x384xf32>
    %cst_7 = arith.constant 1.000000e+00 : f32
    %11 = vector.broadcast %cst_7 : f32 to vector<8x384xf32>
    %12 = arith.divf %11, %10 : vector<8x384xf32>
    %c0_8 = arith.constant 0 : index
    %c0_9 = arith.constant 0 : index
    %13 = vector.load %arg4[%c0_8, %c0_9] : memref<8x384xf32, #tpu.memory_space<vmem>>, vector<8x384xf32>
    tpu.vector_store %arg4[%c0_8, %c0_9], %12 {strides = array<i32>} : memref<8x384xf32, #tpu.memory_space<vmem>>, vector<8x384xf32>,
    return
  }
  func.func @transform_0(%arg0: i32) -> (i32, i32) {
    %c0_i32 = arith.constant 0 : i32
    %c0_i32_0 = arith.constant 0 : i32
    return %arg0, %c0_i32 : i32, i32
  }
  func.func @transform_1(%arg0: i32) -> (i32, i32) {
    %c0_i32 = arith.constant 0 : i32
    %c0_i32_0 = arith.constant 0 : i32
    %c0_i32_1 = arith.constant 0 : i32
    return %c0_i32, %c0_i32_0 : i32, i32
  }
  func.func @transform_2(%arg0: i32) -> (i32, i32) {
    %c0_i32 = arith.constant 0 : i32
    %c0_i32_0 = arith.constant 0 : i32
    %c0_i32_1 = arith.constant 0 : i32
    return %c0_i32, %c0_i32_0 : i32, i32
  }
  func.func @transform_3(%arg0: i32) -> (i32, i32) {
    %c0_i32 = arith.constant 0 : i32
    %c0_i32_0 = arith.constant 0 : i32
    return %arg0, %c0_i32 : i32, i32
  }
}

</mosaic_0001>

<bundles_post_ra>
// kernel: hypernetwork_forward.3
= control target key start
LH: loop header
LB: loop body
LE: loop exit
PB: predicated region body
PF: predicated region fallthrough
CT: control target
= control target key end

     0   :  { %s747_s12 = smov 0   ;;  %s1022_s0 = inlined_call_operand.vmem [shape: f32[2048,128], index: 0, kind: input, shape index: {}]   ;;  %s1023_s1 = inlined_call_operand.vmem [shape: f32[128,128], index: 1, kind: input, shape index: {}]   ;;  %s1024_s2 = inlined_call_operand.vmem [shape: f32[1,128], index: 2, kind: input, shape index: {}]   ;;  %s1025_s3 = inlined_call_operand.vmem [shape: f32[2048,128], index: 3, kind: output, shape index: {}]  }
   0x1 LB: > { %s651_s13 = sadd.s32 4294967295, %s725_s12   ;;  %p655_p0 = scmp.ge.s32.totalorder %s725_s12, 1  ;;  %s725_s12 = sphi %s747_s12, %s13_s12  }
   0x2   : > { %p138_p1 = scmp.lt.s32.totalorder %s725_s12, 5 }
   0x4   : > { %p139_p2 = pnand %p655_p0, %p138_p1 }
   0x5   : > { %s656_s30 = sshll.u32 (!%p139_p2), %s651_s13, 6 }
   0x6   : > { %142 = sbr.rel (%p139_p2) target bundleno = 301 (0x12d), region = 32  ;;  %p163_p3 = scmp.lt.s32.totalorder (!%p139_p2), %s656_s30, 255 }
   0xb   : > { %v253_v0 = vld [vmem:[%s1023_s1 + $0x78] sm:$0xff]  ;;  %v252_v1 = vld [vmem:[%s1023_s1 + $0x70] sm:$0xff]  ;;  %v251_v2 = vld [vmem:[%s1023_s1 + $0x68] sm:$0xff]  ;;  %s1027_s30 = smov (!%p163_p3, %s656_s30), 255 }
   0xc   : > { %663 = vmatpush.msra.mxu2 %v253_v0  ;;  %664 = vmatpush.msra.mxu3 %v253_v0  ;;  %v250_v3 = vld [vmem:[%s1023_s1 + $0x60] sm:$0xff]  ;;  %v249_v4 = vld [vmem:[%s1023_s1 + $0x58] sm:$0xff]  ;;  %v248_v5 = vld [vmem:[%s1023_s1 + $0x50] sm:$0xff]  ;;  %s657_s15 = sshll.u32 %s1027_s30, 3 }
   0xd   : > { %258 = vmatpush.msra.mxu0 %v253_v0  ;;  %662 = vmatpush.msra.mxu1 %v253_v0  ;;  %v247_v6 = vld [vmem:[%s1023_s1 + $0x48] sm:$0xff]  ;;  %v246_v7 = vld [vmem:[%s1023_s1 + $0x40] sm:$0xff]  ;;  %v245_v8 = vld [vmem:[%s1023_s1 + $0x38] sm:$0xff]  ;;  %s810_s22 = scalar_lea.vmem %s1022_s0, %s657_s15  ;;  %s891_s29 = scalar_lea.vmem %s1025_s3, %s657_s15 }
   0xe   : > { %666 = vmatpush.msra.mxu2 %v252_v1  ;;  %667 = vmatpush.msra.mxu3 %v252_v1  ;;  %v244_v9 = vld [vmem:[%s1023_s1 + $0x30] sm:$0xff]  ;;  %v243_v10 = vld [vmem:[%s1023_s1 + $0x28] sm:$0xff]  ;;  %v242_v11 = vld [vmem:[%s1023_s1 + $0x20] sm:$0xff] }
   0xf   : > { %259 = vmatpush.msra.mxu0 %v252_v1  ;;  %665 = vmatpush.msra.mxu1 %v252_v1  ;;  %v241_v12 = vld [vmem:[%s1023_s1 + $0x18] sm:$0xff]  ;;  %v240_v13 = vld [vmem:[%s1023_s1 + $0x10] sm:$0xff]  ;;  %v239_v14 = vld [vmem:[%s1023_s1 + $0x8] sm:$0xff] }
  0x10   : > { %669 = vmatpush.msra.mxu2 %v251_v2  ;;  %670 = vmatpush.msra.mxu3 %v251_v2  ;;  %v238_v15 = vld [vmem:[%s1023_s1] sm:$0xff]  ;;  %v207_v20 = vld [vmem:[%s810_s22 + $0x108] sm:$0xff]  ;;  %v208_v24 = vld [vmem:[%s810_s22 + $0x110] sm:$0xff] }
  0x11   : > { %260 = vmatpush.msra.mxu0 %v251_v2  ;;  %668 = vmatpush.msra.mxu1 %v251_v2  ;;  %v206_v16 = vld [vmem:[%s810_s22 + $0x100] sm:$0xff]  ;;  %v223_v21 = vld [vmem:[%s810_s22 + $0x188] sm:$0xff]  ;;  %v224_v25 = vld [vmem:[%s810_s22 + $0x190] sm:$0xff] }
  0x12   : > { %672 = vmatpush.msra.mxu2 %v250_v3  ;;  %673 = vmatpush.msra.mxu3 %v250_v3  ;;  %v222_v17 = vld [vmem:[%s810_s22 + $0x180] sm:$0xff]  ;;  %v175_v22 = vld [vmem:[%s810_s22 + $0x8] sm:$0xff]  ;;  %v176_v26 = vld [vmem:[%s810_s22 + $0x10] sm:$0xff] }
  0x13   : > { %261 = vmatpush.msra.mxu0 %v250_v3  ;;  %671 = vmatpush.msra.mxu1 %v250_v3  ;;  %v174_v18 = vld [vmem:[%s810_s22] sm:$0xff]  ;;  %v191_v23 = vld [vmem:[%s810_s22 + $0x88] sm:$0xff]  ;;  %v192_v27 = vld [vmem:[%s810_s22 + $0x90] sm:$0xff] }
  0x14   : > { %675 = vmatpush.msra.mxu2 %v249_v4  ;;  %676 = vmatpush.msra.mxu3 %v249_v4  ;;  %v190_v19 = vld [vmem:[%s810_s22 + $0x80] sm:$0xff]  ;;  %v209_v28 = vld [vmem:[%s810_s22 + $0x118] sm:$0xff]  ;;  %v211_v36 = vld [vmem:[%s810_s22 + $0x128] sm:$0xff] }
  0x15   : > { %262 = vmatpush.msra.mxu0 %v249_v4  ;;  %674 = vmatpush.msra.mxu1 %v249_v4  ;;  %v225_v29 = vld [vmem:[%s810_s22 + $0x198] sm:$0xff]  ;;  %v210_v32 = vld [vmem:[%s810_s22 + $0x120] sm:$0xff]  ;;  %v227_v37 = vld [vmem:[%s810_s22 + $0x1a8] sm:$0xff] }
  0x16   : > { %678 = vmatpush.msra.mxu2 %v248_v5  ;;  %679 = vmatpush.msra.mxu3 %v248_v5  ;;  %v177_v30 = vld [vmem:[%s810_s22 + $0x18] sm:$0xff]  ;;  %v226_v33 = vld [vmem:[%s810_s22 + $0x1a0] sm:$0xff]  ;;  %v179_v38 = vld [vmem:[%s810_s22 + $0x28] sm:$0xff] }
  0x17   : > { %263 = vmatpush.msra.mxu0 %v248_v5  ;;  %677 = vmatpush.msra.mxu1 %v248_v5  ;;  %v193_v31 = vld [vmem:[%s810_s22 + $0x98] sm:$0xff]  ;;  %v178_v34 = vld [vmem:[%s810_s22 + $0x20] sm:$0xff]  ;;  %v195_v39 = vld [vmem:[%s810_s22 + $0xa8] sm:$0xff] }
  0x18   : > { %681 = vmatpush.msra.mxu2 %v247_v6  ;;  %682 = vmatpush.msra.mxu3 %v247_v6  ;;  %v194_v35 = vld [vmem:[%s810_s22 + $0xa0] sm:$0xff]  ;;  %v212_v40 = vld [vmem:[%s810_s22 + $0x130] sm:$0xff]  ;;  %v213_v44 = vld [vmem:[%s810_s22 + $0x138] sm:$0xff] }
  0x19   : > { %264 = vmatpush.msra.mxu0 %v247_v6  ;;  %680 = vmatpush.msra.mxu1 %v247_v6  ;;  %v228_v41 = vld [vmem:[%s810_s22 + $0x1b0] sm:$0xff]  ;;  %v229_v45 = vld [vmem:[%s810_s22 + $0x1b8] sm:$0xff]  ;;  %v214_v48 = vld [vmem:[%s810_s22 + $0x140] sm:$0xff] }
  0x1a   : > { %684 = vmatpush.msra.mxu2 %v246_v7  ;;  %685 = vmatpush.msra.mxu3 %v246_v7  ;;  %v180_v42 = vld [vmem:[%s810_s22 + $0x30] sm:$0xff]  ;;  %v181_v46 = vld [vmem:[%s810_s22 + $0x38] sm:$0xff]  ;;  %v230_v49 = vld [vmem:[%s810_s22 + $0x1c0] sm:$0xff] }
  0x1b   : > { %265 = vmatpush.msra.mxu0 %v246_v7  ;;  %683 = vmatpush.msra.mxu1 %v246_v7  ;;  %v196_v43 = vld [vmem:[%s810_s22 + $0xb0] sm:$0xff]  ;;  %v197_v47 = vld [vmem:[%s810_s22 + $0xb8] sm:$0xff]  ;;  %v182_v50 = vld [vmem:[%s810_s22 + $0x40] sm:$0xff] }
  0x1c   : > { %687 = vmatpush.msra.mxu2 %v245_v8  ;;  %688 = vmatpush.msra.mxu3 %v245_v8  ;;  %v198_v51 = vld [vmem:[%s810_s22 + $0xc0] sm:$0xff]  ;;  %v215_v52 = vld [vmem:[%s810_s22 + $0x148] sm:$0xff]  ;;  %v216_v56 = vld [vmem:[%s810_s22 + $0x150] sm:$0xff] }
  0x1d   : > { %266 = vmatpush.msra.mxu0 %v245_v8  ;;  %686 = vmatpush.msra.mxu1 %v245_v8  ;;  %v231_v53 = vld [vmem:[%s810_s22 + $0x1c8] sm:$0xff]  ;;  %v232_v57 = vld [vmem:[%s810_s22 + $0x1d0] sm:$0xff]  ;;  %v217_v60 = vld [vmem:[%s810_s22 + $0x158] sm:$0xff] }
  0x1e   : > { %690 = vmatpush.msra.mxu2 %v244_v9  ;;  %691 = vmatpush.msra.mxu3 %v244_v9  ;;  %v183_v54 = vld [vmem:[%s810_s22 + $0x48] sm:$0xff]  ;;  %v184_v58 = vld [vmem:[%s810_s22 + $0x50] sm:$0xff]  ;;  %v233_v61 = vld [vmem:[%s810_s22 + $0x1d8] sm:$0xff] }
  0x1f   : > { %267 = vmatpush.msra.mxu0 %v244_v9  ;;  %689 = vmatpush.msra.mxu1 %v244_v9  ;;  %v199_v55 = vld [vmem:[%s810_s22 + $0xc8] sm:$0xff]  ;;  %v200_v59 = vld [vmem:[%s810_s22 + $0xd0] sm:$0xff]  ;;  %v185_v62 = vld [vmem:[%s810_s22 + $0x58] sm:$0xff] }
  0x20   : > { %693 = vmatpush.msra.mxu2 %v243_v10  ;;  %694 = vmatpush.msra.mxu3 %v243_v10  ;;  %v201_v63 = vld [vmem:[%s810_s22 + $0xd8] sm:$0xff]  ;;  %v218_v0 = vld [vmem:[%s810_s22 + $0x160] sm:$0xff]  ;;  %v219_v4 = vld [vmem:[%s810_s22 + $0x168] sm:$0xff] }
  0x21   : > { %268 = vmatpush.msra.mxu0 %v243_v10  ;;  %692 = vmatpush.msra.mxu1 %v243_v10  ;;  %v234_v1 = vld [vmem:[%s810_s22 + $0x1e0] sm:$0xff]  ;;  %v235_v5 = vld [vmem:[%s810_s22 + $0x1e8] sm:$0xff]  ;;  %v220_v8 = vld [vmem:[%s810_s22 + $0x170] sm:$0xff] }
  0x22   : > { %696 = vmatpush.msra.mxu2 %v242_v11  ;;  %697 = vmatpush.msra.mxu3 %v242_v11  ;;  %v186_v2 = vld [vmem:[%s810_s22 + $0x60] sm:$0xff]  ;;  %v187_v6 = vld [vmem:[%s810_s22 + $0x68] sm:$0xff]  ;;  %v236_v9 = vld [vmem:[%s810_s22 + $0x1f0] sm:$0xff] }
  0x23   : > { %269 = vmatpush.msra.mxu0 %v242_v11  ;;  %695 = vmatpush.msra.mxu1 %v242_v11  ;;  %v202_v3 = vld [vmem:[%s810_s22 + $0xe0] sm:$0xff]  ;;  %v203_v7 = vld [vmem:[%s810_s22 + $0xe8] sm:$0xff]  ;;  %v188_v10 = vld [vmem:[%s810_s22 + $0x70] sm:$0xff] }
  0x24   : > { %699 = vmatpush.msra.mxu2 %v241_v12  ;;  %700 = vmatpush.msra.mxu3 %v241_v12  ;;  %v204_v11 = vld [vmem:[%s810_s22 + $0xf0] sm:$0xff] }
  0x25   : > { %270 = vmatpush.msra.mxu0 %v241_v12  ;;  %698 = vmatpush.msra.mxu1 %v241_v12  ;;  %v221_v12 = vld [vmem:[%s810_s22 + $0x178] sm:$0xff] }
  0x26   : > { %702 = vmatpush.msra.mxu2 %v240_v13  ;;  %703 = vmatpush.msra.mxu3 %v240_v13 }
  0x27   : > { %271 = vmatpush.msra.mxu0 %v240_v13  ;;  %701 = vmatpush.msra.mxu1 %v240_v13  ;;  %v237_v13 = vld [vmem:[%s810_s22 + $0x1f8] sm:$0xff] }
  0x28   : > { %705 = vmatpush.msra.mxu2 %v239_v14  ;;  %706 = vmatpush.msra.mxu3 %v239_v14 }
  0x29   : > { %272 = vmatpush.msra.mxu0 %v239_v14  ;;  %704 = vmatpush.msra.mxu1 %v239_v14  ;;  %v189_v14 = vld [vmem:[%s810_s22 + $0x78] sm:$0xff] }
  0x2a   : > { %708 = vmatpush.msra.mxu2 %v238_v15  ;;  %709 = vmatpush.msra.mxu3 %v238_v15 }
  0x2b   : > { %370 = vmatmul.f32.vlgmr.msra.gmra.mxu2 %v206_v16  ;;  %418 = vmatmul.f32.vlgmr.msra.gmra.mxu3 %v222_v17  ;;  %v882_v16 = vld [vmem:[%s1024_s2] ss:$0 sm:$0xff] }
  0x2c   : > { %273 = vmatpush.msra.mxu0 %v238_v15  ;;  %707 = vmatpush.msra.mxu1 %v238_v15  ;;  %v205_v15 = vld [vmem:[%s810_s22 + $0xf8] sm:$0xff] }
  0x2d   : > { %274 = vmatmul.f32.vlgmr.msra.gmra.mxu0 %v174_v18  ;;  %322 = vmatmul.f32.vlgmr.msra.gmra.mxu1 %v190_v19 }
  0x33   : > { %373 = vmatmul.f32.gmra.mxu2 %v207_v20  ;;  %421 = vmatmul.f32.gmra.mxu3 %v223_v21 }
  0x35   : > { %277 = vmatmul.f32.gmra.mxu0 %v175_v22  ;;  %325 = vmatmul.f32.gmra.mxu1 %v191_v23 }
  0x3b   : > { %376 = vmatmul.f32.gmra.mxu2 %v208_v24  ;;  %424 = vmatmul.f32.gmra.mxu3 %v224_v25 }
  0x3d   : > { %280 = vmatmul.f32.gmra.mxu0 %v176_v26  ;;  %328 = vmatmul.f32.gmra.mxu1 %v192_v27 }
  0x43   : > { %379 = vmatmul.f32.gmra.mxu2 %v209_v28  ;;  %427 = vmatmul.f32.gmra.mxu3 %v225_v29 }
  0x45   : > { %283 = vmatmul.f32.gmra.mxu0 %v177_v30  ;;  %331 = vmatmul.f32.gmra.mxu1 %v193_v31 }
  0x4b   : > { %382 = vmatmul.f32.gmra.mxu2 %v210_v32  ;;  %430 = vmatmul.f32.gmra.mxu3 %v226_v33 }
  0x4d   : > { %286 = vmatmul.f32.gmra.mxu0 %v178_v34  ;;  %334 = vmatmul.f32.gmra.mxu1 %v194_v35 }
  0x53   : > { %385 = vmatmul.f32.gmra.mxu2 %v211_v36  ;;  %433 = vmatmul.f32.gmra.mxu3 %v227_v37 }
  0x55   : > { %289 = vmatmul.f32.gmra.mxu0 %v179_v38  ;;  %337 = vmatmul.f32.gmra.mxu1 %v195_v39 }
  0x5b   : > { %388 = vmatmul.f32.gmra.mxu2 %v212_v40  ;;  %436 = vmatmul.f32.gmra.mxu3 %v228_v41 }
  0x5d   : > { %292 = vmatmul.f32.gmra.mxu0 %v180_v42  ;;  %340 = vmatmul.f32.gmra.mxu1 %v196_v43 }
  0x63   : > { %391 = vmatmul.f32.gmra.mxu2 %v213_v44  ;;  %439 = vmatmul.f32.gmra.mxu3 %v229_v45 }
  0x65   : > { %295 = vmatmul.f32.gmra.mxu0 %v181_v46  ;;  %343 = vmatmul.f32.gmra.mxu1 %v197_v47 }
  0x6b   : > { %394 = vmatmul.f32.gmra.mxu2 %v214_v48  ;;  %442 = vmatmul.f32.gmra.mxu3 %v230_v49 }
  0x6d   : > { %298 = vmatmul.f32.gmra.mxu0 %v182_v50  ;;  %346 = vmatmul.f32.gmra.mxu1 %v198_v51 }
  0x73   : > { %397 = vmatmul.f32.gmra.mxu2 %v215_v52  ;;  %445 = vmatmul.f32.gmra.mxu3 %v231_v53 }
  0x75   : > { %301 = vmatmul.f32.gmra.mxu0 %v183_v54  ;;  %349 = vmatmul.f32.gmra.mxu1 %v199_v55 }
  0x7b   : > { %400 = vmatmul.f32.gmra.mxu2 %v216_v56  ;;  %448 = vmatmul.f32.gmra.mxu3 %v232_v57 }
  0x7d   : > { %304 = vmatmul.f32.gmra.mxu0 %v184_v58  ;;  %352 = vmatmul.f32.gmra.mxu1 %v200_v59 }
  0x83   : > { %403 = vmatmul.f32.gmra.mxu2 %v217_v60  ;;  %451 = vmatmul.f32.gmra.mxu3 %v233_v61 }
  0x85   : > { %307 = vmatmul.f32.gmra.mxu0 %v185_v62  ;;  %355 = vmatmul.f32.gmra.mxu1 %v201_v63 }
  0x8b   : > { %406 = vmatmul.f32.gmra.mxu2 %v218_v0  ;;  %454 = vmatmul.f32.gmra.mxu3 %v234_v1 }
  0x8d   : > { %310 = vmatmul.f32.gmra.mxu0 %v186_v2  ;;  %358 = vmatmul.f32.gmra.mxu1 %v202_v3 }
  0x93   : > { %409 = vmatmul.f32.gmra.mxu2 %v219_v4  ;;  %457 = vmatmul.f32.gmra.mxu3 %v235_v5 }
  0x95   : > { %313 = vmatmul.f32.gmra.mxu0 %v187_v6  ;;  %361 = vmatmul.f32.gmra.mxu1 %v203_v7 }
  0x9b   : > { %412 = vmatmul.f32.gmra.mxu2 %v220_v8  ;;  %460 = vmatmul.f32.gmra.mxu3 %v236_v9 }
  0x9d   : > { %316 = vmatmul.f32.gmra.mxu0 %v188_v10  ;;  %364 = vmatmul.f32.gmra.mxu1 %v204_v11 }
  0xa3   : > { %415 = vmatmul.f32.gmra.mxu2 %v221_v12  ;;  %463 = vmatmul.f32.gmra.mxu3 %v237_v13 }
  0xa5   : > { %319 = vmatmul.f32.gmra.mxu0 %v189_v14  ;;  %367 = vmatmul.f32.gmra.mxu1 %v205_v15 }
  0xaa   : > { %v275_v17 = vpop.f32.mrf.mxu0  ;;  %v323_v18 = vpop.f32.mrf.mxu1 }
  0xab   : > { %v276_v19 = vadd.f32 %v882_v16, %v275_v17  ;;  %v324_v20 = vadd.f32 %v882_v16, %v323_v18 }
  0xad   : > { %v467_v21 = vmax.f32 %v276_v19, 0.0  ;;  %v483_v22 = vmax.f32 %v324_v20, 0.0 }
  0xae   : > { %v371_v23 = vpop.f32.mrf.mxu2  ;;  %v419_v24 = vpop.f32.mrf.mxu3 }
  0xaf   : > { %531 = vst [vmem:[%s891_s29] sm:$0xff] %v467_v21  ;;  %v372_v25 = vadd.f32 %v882_v16, %v371_v23  ;;  %v420_v26 = vadd.f32 %v882_v16, %v419_v24 }
  0xb0   : > { %547 = vst [vmem:[%s891_s29 + $0x80] sm:$0xff] %v483_v22 }
  0xb1   : > { %v499_v27 = vmax.f32 %v372_v25, 0.0  ;;  %v515_v28 = vmax.f32 %v420_v26, 0.0 }
  0xb2   : > { %v278_v29 = vpop.f32.mrf.mxu0  ;;  %v326_v30 = vpop.f32.mrf.mxu1 }
  0xb3   : > { %563 = vst [vmem:[%s891_s29 + $0x100] sm:$0xff] %v499_v27  ;;  %v279_v31 = vadd.f32 %v882_v16, %v278_v29  ;;  %v327_v32 = vadd.f32 %v882_v16, %v326_v30 }
  0xb4   : > { %579 = vst [vmem:[%s891_s29 + $0x180] sm:$0xff] %v515_v28 }
  0xb5   : > { %v468_v33 = vmax.f32 %v279_v31, 0.0  ;;  %v484_v34 = vmax.f32 %v327_v32, 0.0 }
  0xb6   : > { %v374_v35 = vpop.f32.mrf.mxu2  ;;  %v422_v36 = vpop.f32.mrf.mxu3 }
  0xb7   : > { %532 = vst [vmem:[%s891_s29 + $0x8] sm:$0xff] %v468_v33  ;;  %v375_v37 = vadd.f32 %v882_v16, %v374_v35  ;;  %v423_v38 = vadd.f32 %v882_v16, %v422_v36 }
  0xb8   : > { %548 = vst [vmem:[%s891_s29 + $0x88] sm:$0xff] %v484_v34 }
  0xb9   : > { %v500_v39 = vmax.f32 %v375_v37, 0.0  ;;  %v516_v40 = vmax.f32 %v423_v38, 0.0 }
  0xba   : > { %v281_v41 = vpop.f32.mrf.mxu0  ;;  %v329_v42 = vpop.f32.mrf.mxu1 }
  0xbb   : > { %564 = vst [vmem:[%s891_s29 + $0x108] sm:$0xff] %v500_v39  ;;  %v282_v43 = vadd.f32 %v882_v16, %v281_v41  ;;  %v330_v44 = vadd.f32 %v882_v16, %v329_v42 }
  0xbc   : > { %580 = vst [vmem:[%s891_s29 + $0x188] sm:$0xff] %v516_v40 }
  0xbd   : > { %v469_v45 = vmax.f32 %v282_v43, 0.0  ;;  %v485_v46 = vmax.f32 %v330_v44, 0.0 }
  0xbe   : > { %v377_v47 = vpop.f32.mrf.mxu2  ;;  %v425_v48 = vpop.f32.mrf.mxu3 }
  0xbf   : > { %533 = vst [vmem:[%s891_s29 + $0x10] sm:$0xff] %v469_v45  ;;  %v378_v49 = vadd.f32 %v882_v16, %v377_v47  ;;  %v426_v50 = vadd.f32 %v882_v16, %v425_v48 }
  0xc0   : > { %549 = vst [vmem:[%s891_s29 + $0x90] sm:$0xff] %v485_v46 }
  0xc1   : > { %v501_v51 = vmax.f32 %v378_v49, 0.0  ;;  %v517_v52 = vmax.f32 %v426_v50, 0.0 }
  0xc2   : > { %v284_v53 = vpop.f32.mrf.mxu0  ;;  %v332_v54 = vpop.f32.mrf.mxu1 }
  0xc3   : > { %565 = vst [vmem:[%s891_s29 + $0x110] sm:$0xff] %v501_v51  ;;  %v285_v55 = vadd.f32 %v882_v16, %v284_v53  ;;  %v333_v56 = vadd.f32 %v882_v16, %v332_v54 }
  0xc4   : > { %581 = vst [vmem:[%s891_s29 + $0x190] sm:$0xff] %v517_v52 }
  0xc5   : > { %v470_v57 = vmax.f32 %v285_v55, 0.0  ;;  %v486_v58 = vmax.f32 %v333_v56, 0.0 }
  0xc6   : > { %v380_v59 = vpop.f32.mrf.mxu2  ;;  %v428_v60 = vpop.f32.mrf.mxu3 }
  0xc7   : > { %534 = vst [vmem:[%s891_s29 + $0x18] sm:$0xff] %v470_v57  ;;  %v381_v61 = vadd.f32 %v882_v16, %v380_v59  ;;  %v429_v62 = vadd.f32 %v882_v16, %v428_v60 }
  0xc8   : > { %550 = vst [vmem:[%s891_s29 + $0x98] sm:$0xff] %v486_v58 }
  0xc9   : > { %v502_v63 = vmax.f32 %v381_v61, 0.0  ;;  %v518_v0 = vmax.f32 %v429_v62, 0.0 }
  0xca   : > { %v287_v1 = vpop.f32.mrf.mxu0  ;;  %v335_v2 = vpop.f32.mrf.mxu1 }
  0xcb   : > { %566 = vst [vmem:[%s891_s29 + $0x118] sm:$0xff] %v502_v63  ;;  %v288_v3 = vadd.f32 %v882_v16, %v287_v1  ;;  %v336_v4 = vadd.f32 %v882_v16, %v335_v2 }
  0xcc   : > { %582 = vst [vmem:[%s891_s29 + $0x198] sm:$0xff] %v518_v0 }
  0xcd   : > { %v471_v5 = vmax.f32 %v288_v3, 0.0  ;;  %v487_v6 = vmax.f32 %v336_v4, 0.0 }
  0xce   : > { %v383_v7 = vpop.f32.mrf.mxu2  ;;  %v431_v8 = vpop.f32.mrf.mxu3 }
  0xcf   : > { %535 = vst [vmem:[%s891_s29 + $0x20] sm:$0xff] %v471_v5  ;;  %v384_v9 = vadd.f32 %v882_v16, %v383_v7  ;;  %v432_v10 = vadd.f32 %v882_v16, %v431_v8 }
  0xd0   : > { %551 = vst [vmem:[%s891_s29 + $0xa0] sm:$0xff] %v487_v6 }
  0xd1   : > { %v503_v11 = vmax.f32 %v384_v9, 0.0  ;;  %v519_v12 = vmax.f32 %v432_v10, 0.0 }
  0xd2   : > { %v290_v13 = vpop.f32.mrf.mxu0  ;;  %v338_v14 = vpop.f32.mrf.mxu1 }
  0xd3   : > { %567 = vst [vmem:[%s891_s29 + $0x120] sm:$0xff] %v503_v11  ;;  %v291_v15 = vadd.f32 %v882_v16, %v290_v13  ;;  %v339_v17 = vadd.f32 %v882_v16, %v338_v14 }
  0xd4   : > { %583 = vst [vmem:[%s891_s29 + $0x1a0] sm:$0xff] %v519_v12 }
  0xd5   : > { %v472_v18 = vmax.f32 %v291_v15, 0.0  ;;  %v488_v19 = vmax.f32 %v339_v17, 0.0 }
  0xd6   : > { %v386_v20 = vpop.f32.mrf.mxu2  ;;  %v434_v21 = vpop.f32.mrf.mxu3 }
  0xd7   : > { %536 = vst [vmem:[%s891_s29 + $0x28] sm:$0xff] %v472_v18  ;;  %v387_v22 = vadd.f32 %v882_v16, %v386_v20  ;;  %v435_v23 = vadd.f32 %v882_v16, %v434_v21 }
  0xd8   : > { %552 = vst [vmem:[%s891_s29 + $0xa8] sm:$0xff] %v488_v19 }
  0xd9   : > { %v504_v24 = vmax.f32 %v387_v22, 0.0  ;;  %v520_v25 = vmax.f32 %v435_v23, 0.0 }
  0xda   : > { %v293_v26 = vpop.f32.mrf.mxu0  ;;  %v341_v27 = vpop.f32.mrf.mxu1 }
  0xdb   : > { %568 = vst [vmem:[%s891_s29 + $0x128] sm:$0xff] %v504_v24  ;;  %v294_v28 = vadd.f32 %v882_v16, %v293_v26  ;;  %v342_v29 = vadd.f32 %v882_v16, %v341_v27 }
  0xdc   : > { %584 = vst [vmem:[%s891_s29 + $0x1a8] sm:$0xff] %v520_v25 }
  0xdd   : > { %v473_v30 = vmax.f32 %v294_v28, 0.0  ;;  %v489_v31 = vmax.f32 %v342_v29, 0.0 }
  0xde   : > { %v389_v32 = vpop.f32.mrf.mxu2  ;;  %v437_v33 = vpop.f32.mrf.mxu3 }
  0xdf   : > { %537 = vst [vmem:[%s891_s29 + $0x30] sm:$0xff] %v473_v30  ;;  %v390_v34 = vadd.f32 %v882_v16, %v389_v32  ;;  %v438_v35 = vadd.f32 %v882_v16, %v437_v33 }
  0xe0   : > { %553 = vst [vmem:[%s891_s29 + $0xb0] sm:$0xff] %v489_v31 }
  0xe1   : > { %v505_v36 = vmax.f32 %v390_v34, 0.0  ;;  %v521_v37 = vmax.f32 %v438_v35, 0.0 }
  0xe2   : > { %v296_v38 = vpop.f32.mrf.mxu0  ;;  %v344_v39 = vpop.f32.mrf.mxu1 }
  0xe3   : > { %569 = vst [vmem:[%s891_s29 + $0x130] sm:$0xff] %v505_v36  ;;  %v297_v40 = vadd.f32 %v882_v16, %v296_v38  ;;  %v345_v41 = vadd.f32 %v882_v16, %v344_v39 }
  0xe4   : > { %585 = vst [vmem:[%s891_s29 + $0x1b0] sm:$0xff] %v521_v37 }
  0xe5   : > { %v474_v42 = vmax.f32 %v297_v40, 0.0  ;;  %v490_v43 = vmax.f32 %v345_v41, 0.0 }
  0xe6   : > { %v392_v44 = vpop.f32.mrf.mxu2  ;;  %v440_v45 = vpop.f32.mrf.mxu3 }
  0xe7   : > { %538 = vst [vmem:[%s891_s29 + $0x38] sm:$0xff] %v474_v42  ;;  %v393_v46 = vadd.f32 %v882_v16, %v392_v44  ;;  %v441_v47 = vadd.f32 %v882_v16, %v440_v45 }
  0xe8   : > { %554 = vst [vmem:[%s891_s29 + $0xb8] sm:$0xff] %v490_v43 }
  0xe9   : > { %v506_v48 = vmax.f32 %v393_v46, 0.0  ;;  %v522_v49 = vmax.f32 %v441_v47, 0.0 }
  0xea   : > { %v299_v50 = vpop.f32.mrf.mxu0  ;;  %v347_v51 = vpop.f32.mrf.mxu1 }
  0xeb   : > { %570 = vst [vmem:[%s891_s29 + $0x138] sm:$0xff] %v506_v48  ;;  %v300_v52 = vadd.f32 %v882_v16, %v299_v50  ;;  %v348_v53 = vadd.f32 %v882_v16, %v347_v51 }
  0xec   : > { %586 = vst [vmem:[%s891_s29 + $0x1b8] sm:$0xff] %v522_v49 }
  0xed   : > { %v475_v54 = vmax.f32 %v300_v52, 0.0  ;;  %v491_v55 = vmax.f32 %v348_v53, 0.0 }
  0xee   : > { %v395_v56 = vpop.f32.mrf.mxu2  ;;  %v443_v57 = vpop.f32.mrf.mxu3 }
  0xef   : > { %539 = vst [vmem:[%s891_s29 + $0x40] sm:$0xff] %v475_v54  ;;  %v396_v58 = vadd.f32 %v882_v16, %v395_v56  ;;  %v444_v59 = vadd.f32 %v882_v16, %v443_v57 }
  0xf0   : > { %555 = vst [vmem:[%s891_s29 + $0xc0] sm:$0xff] %v491_v55 }
  0xf1   : > { %v507_v60 = vmax.f32 %v396_v58, 0.0  ;;  %v523_v61 = vmax.f32 %v444_v59, 0.0 }
  0xf2   : > { %v302_v62 = vpop.f32.mrf.mxu0  ;;  %v350_v63 = vpop.f32.mrf.mxu1 }
  0xf3   : > { %571 = vst [vmem:[%s891_s29 + $0x140] sm:$0xff] %v507_v60  ;;  %v303_v0 = vadd.f32 %v882_v16, %v302_v62  ;;  %v351_v1 = vadd.f32 %v882_v16, %v350_v63 }
  0xf4   : > { %587 = vst [vmem:[%s891_s29 + $0x1c0] sm:$0xff] %v523_v61 }
  0xf5   : > { %v476_v2 = vmax.f32 %v303_v0, 0.0  ;;  %v492_v3 = vmax.f32 %v351_v1, 0.0 }
  0xf6   : > { %v398_v4 = vpop.f32.mrf.mxu2  ;;  %v446_v5 = vpop.f32.mrf.mxu3 }
  0xf7   : > { %540 = vst [vmem:[%s891_s29 + $0x48] sm:$0xff] %v476_v2  ;;  %v399_v6 = vadd.f32 %v882_v16, %v398_v4  ;;  %v447_v7 = vadd.f32 %v882_v16, %v446_v5 }
  0xf8   : > { %556 = vst [vmem:[%s891_s29 + $0xc8] sm:$0xff] %v492_v3 }
  0xf9   : > { %v508_v8 = vmax.f32 %v399_v6, 0.0  ;;  %v524_v9 = vmax.f32 %v447_v7, 0.0 }
  0xfa   : > { %v305_v10 = vpop.f32.mrf.mxu0  ;;  %v353_v11 = vpop.f32.mrf.mxu1 }
  0xfb   : > { %572 = vst [vmem:[%s891_s29 + $0x148] sm:$0xff] %v508_v8  ;;  %v306_v12 = vadd.f32 %v882_v16, %v305_v10  ;;  %v354_v13 = vadd.f32 %v882_v16, %v353_v11 }
  0xfc   : > { %588 = vst [vmem:[%s891_s29 + $0x1c8] sm:$0xff] %v524_v9 }
  0xfd   : > { %v477_v14 = vmax.f32 %v306_v12, 0.0  ;;  %v493_v15 = vmax.f32 %v354_v13, 0.0 }
  0xfe   : > { %v401_v17 = vpop.f32.mrf.mxu2  ;;  %v449_v18 = vpop.f32.mrf.mxu3 }
  0xff   : > { %541 = vst [vmem:[%s891_s29 + $0x50] sm:$0xff] %v477_v14  ;;  %v402_v19 = vadd.f32 %v882_v16, %v401_v17  ;;  %v450_v20 = vadd.f32 %v882_v16, %v449_v18 }
 0x100   : > { %557 = vst [vmem:[%s891_s29 + $0xd0] sm:$0xff] %v493_v15 }
 0x101   : > { %v509_v21 = vmax.f32 %v402_v19, 0.0  ;;  %v525_v22 = vmax.f32 %v450_v20, 0.0 }
 0x102   : > { %v308_v23 = vpop.f32.mrf.mxu0  ;;  %v356_v24 = vpop.f32.mrf.mxu1 }
 0x103   : > { %573 = vst [vmem:[%s891_s29 + $0x150] sm:$0xff] %v509_v21  ;;  %v309_v25 = vadd.f32 %v882_v16, %v308_v23  ;;  %v357_v26 = vadd.f32 %v882_v16, %v356_v24 }
 0x104   : > { %589 = vst [vmem:[%s891_s29 + $0x1d0] sm:$0xff] %v525_v22 }
 0x105   : > { %v478_v27 = vmax.f32 %v309_v25, 0.0  ;;  %v494_v28 = vmax.f32 %v357_v26, 0.0 }
 0x106   : > { %v404_v29 = vpop.f32.mrf.mxu2  ;;  %v452_v30 = vpop.f32.mrf.mxu3 }
 0x107   : > { %542 = vst [vmem:[%s891_s29 + $0x58] sm:$0xff] %v478_v27  ;;  %v405_v31 = vadd.f32 %v882_v16, %v404_v29  ;;  %v453_v32 = vadd.f32 %v882_v16, %v452_v30 }
 0x108   : > { %558 = vst [vmem:[%s891_s29 + $0xd8] sm:$0xff] %v494_v28 }
 0x109   : > { %v510_v33 = vmax.f32 %v405_v31, 0.0  ;;  %v526_v34 = vmax.f32 %v453_v32, 0.0 }
 0x10a   : > { %v311_v35 = vpop.f32.mrf.mxu0  ;;  %v359_v36 = vpop.f32.mrf.mxu1 }
 0x10b   : > { %574 = vst [vmem:[%s891_s29 + $0x158] sm:$0xff] %v510_v33  ;;  %v312_v37 = vadd.f32 %v882_v16, %v311_v35  ;;  %v360_v38 = vadd.f32 %v882_v16, %v359_v36 }
 0x10c   : > { %590 = vst [vmem:[%s891_s29 + $0x1d8] sm:$0xff] %v526_v34 }
 0x10d   : > { %v479_v39 = vmax.f32 %v312_v37, 0.0  ;;  %v495_v40 = vmax.f32 %v360_v38, 0.0 }
 0x10e   : > { %v407_v41 = vpop.f32.mrf.mxu2  ;;  %v455_v42 = vpop.f32.mrf.mxu3 }
 0x10f   : > { %543 = vst [vmem:[%s891_s29 + $0x60] sm:$0xff] %v479_v39  ;;  %v408_v43 = vadd.f32 %v882_v16, %v407_v41  ;;  %v456_v44 = vadd.f32 %v882_v16, %v455_v42 }
 0x110   : > { %559 = vst [vmem:[%s891_s29 + $0xe0] sm:$0xff] %v495_v40 }
 0x111   : > { %v511_v45 = vmax.f32 %v408_v43, 0.0  ;;  %v527_v46 = vmax.f32 %v456_v44, 0.0 }
 0x112   : > { %v314_v47 = vpop.f32.mrf.mxu0  ;;  %v362_v48 = vpop.f32.mrf.mxu1 }
 0x113   : > { %575 = vst [vmem:[%s891_s29 + $0x160] sm:$0xff] %v511_v45  ;;  %v315_v49 = vadd.f32 %v882_v16, %v314_v47  ;;  %v363_v50 = vadd.f32 %v882_v16, %v362_v48 }
 0x114   : > { %591 = vst [vmem:[%s891_s29 + $0x1e0] sm:$0xff] %v527_v46 }
 0x115   : > { %v480_v51 = vmax.f32 %v315_v49, 0.0  ;;  %v496_v52 = vmax.f32 %v363_v50, 0.0 }
 0x116   : > { %v410_v53 = vpop.f32.mrf.mxu2  ;;  %v458_v54 = vpop.f32.mrf.mxu3 }
 0x117   : > { %544 = vst [vmem:[%s891_s29 + $0x68] sm:$0xff] %v480_v51  ;;  %v411_v55 = vadd.f32 %v882_v16, %v410_v53  ;;  %v459_v56 = vadd.f32 %v882_v16, %v458_v54 }
 0x118   : > { %560 = vst [vmem:[%s891_s29 + $0xe8] sm:$0xff] %v496_v52 }
 0x119   : > { %v512_v57 = vmax.f32 %v411_v55, 0.0  ;;  %v528_v58 = vmax.f32 %v459_v56, 0.0 }
 0x11a   : > { %v317_v59 = vpop.f32.mrf.mxu0  ;;  %v365_v60 = vpop.f32.mrf.mxu1 }
 0x11b   : > { %576 = vst [vmem:[%s891_s29 + $0x168] sm:$0xff] %v512_v57  ;;  %v318_v61 = vadd.f32 %v882_v16, %v317_v59  ;;  %v366_v62 = vadd.f32 %v882_v16, %v365_v60 }
 0x11c   : > { %592 = vst [vmem:[%s891_s29 + $0x1e8] sm:$0xff] %v528_v58 }
 0x11d   : > { %v481_v63 = vmax.f32 %v318_v61, 0.0  ;;  %v497_v0 = vmax.f32 %v366_v62, 0.0 }
 0x11e   : > { %v413_v1 = vpop.f32.mrf.mxu2  ;;  %v461_v2 = vpop.f32.mrf.mxu3 }
 0x11f   : > { %545 = vst [vmem:[%s891_s29 + $0x70] sm:$0xff] %v481_v63  ;;  %v414_v3 = vadd.f32 %v882_v16, %v413_v1  ;;  %v462_v4 = vadd.f32 %v882_v16, %v461_v2 }
 0x120   : > { %561 = vst [vmem:[%s891_s29 + $0xf0] sm:$0xff] %v497_v0 }
 0x121   : > { %v513_v5 = vmax.f32 %v414_v3, 0.0  ;;  %v529_v6 = vmax.f32 %v462_v4, 0.0 }
 0x122   : > { %v320_v7 = vpop.f32.mrf.mxu0  ;;  %v368_v8 = vpop.f32.mrf.mxu1 }
 0x123   : > { %577 = vst [vmem:[%s891_s29 + $0x170] sm:$0xff] %v513_v5  ;;  %v321_v9 = vadd.f32 %v882_v16, %v320_v7  ;;  %v369_v10 = vadd.f32 %v882_v16, %v368_v8 }
 0x124   : > { %593 = vst [vmem:[%s891_s29 + $0x1f0] sm:$0xff] %v529_v6 }
 0x125   : > { %v482_v11 = vmax.f32 %v321_v9, 0.0  ;;  %v498_v12 = vmax.f32 %v369_v10, 0.0 }
 0x126   : > { %v416_v13 = vpop.f32.mrf.mxu2  ;;  %v464_v14 = vpop.f32.mrf.mxu3 }
 0x127   : > { %546 = vst [vmem:[%s891_s29 + $0x78] sm:$0xff] %v482_v11  ;;  %v417_v15 = vadd.f32 %v882_v16, %v416_v13  ;;  %v465_v17 = vadd.f32 %v882_v16, %v464_v14 }
 0x128   : > { %562 = vst [vmem:[%s891_s29 + $0xf8] sm:$0xff] %v498_v12 }
 0x129   : > { %v514_v18 = vmax.f32 %v417_v15, 0.0  ;;  %v530_v19 = vmax.f32 %v465_v17, 0.0 }
 0x12b   : > { %578 = vst [vmem:[%s891_s29 + $0x178] sm:$0xff] %v514_v18 }
 0x12c   : > { %594 = vst [vmem:[%s891_s29 + $0x1f8] sm:$0xff] %v530_v19 }
 0x12d PF: > { %s13_s12 = sadd.s32 1, %s725_s12  }
 0x12e   : > { %p10_p4 = scmp.ge.s32.totalorder %s13_s12, 6  }
 0x130   :  { %12 = sbr.rel (!%p10_p4) target bundleno = 1 (0x1), region = 62 }

// kernel: hypernetwork_forward.4
= control target key start
LH: loop header
LB: loop body
LE: loop exit
PB: predicated region body
PF: predicated region fallthrough
CT: control target
= control target key end

     0   :  { %s1858_s1 = inlined_call_operand.vmem [shape: f32[384,128], index: 1, kind: input, shape index: {}]   ;;  %s1859_s0 = inlined_call_operand.vmem [shape: f32[392,384], index: 0, kind: input, shape index: {}]   ;;  %s1860_s2 = inlined_call_operand.vmem [shape: f32[1,128], index: 2, kind: input, shape index: {}]   ;;  %s1861_s3 = inlined_call_operand.vmem [shape: f32[392,128], index: 3, kind: output, shape index: {}]  }
   0x1   :  { %v176_v0 = vld [vmem:[%s1858_s1 + $0x78] sm:$0xff]  ;;  %v175_v2 = vld [vmem:[%s1858_s1 + $0x70] sm:$0xff]  ;;  %v174_v5 = vld [vmem:[%s1858_s1 + $0x68] sm:$0xff] }
   0x2   :  { %v883_v1 = vld [vmem:[%s1858_s1 + $0x178] sm:$0xff]  ;;  %807 = vmatpush.msra.mxu3 %v176_v0  ;;  %v892_v3 = vld [vmem:[%s1858_s1 + $0x170] sm:$0xff]  ;;  %213 = vmatpush.msra.mxu0 %v176_v0  ;;  %v906_v6 = vld [vmem:[%s1858_s1 + $0x168] sm:$0xff] }
   0x3   :  { %541 = vmatpush.msra.mxu2 %v883_v1  ;;  %v897_v4 = vld [vmem:[%s1858_s1 + $0xf8] sm:$0xff]  ;;  %v911_v7 = vld [vmem:[%s1858_s1 + $0xf0] sm:$0xff]  ;;  %v917_v8 = vld [vmem:[%s1858_s1 + $0xe8] sm:$0xff] }
   0x4   :  { %377 = vmatpush.msra.mxu1 %v897_v4  ;;  %808 = vmatpush.msra.mxu3 %v175_v2  ;;  %v173_v9 = vld [vmem:[%s1858_s1 + $0x60] sm:$0xff]  ;;  %v172_v12 = vld [vmem:[%s1858_s1 + $0x58] sm:$0xff]  ;;  %v171_v15 = vld [vmem:[%s1858_s1 + $0x50] sm:$0xff] }
   0x5   :  { %542 = vmatpush.msra.mxu2 %v892_v3  ;;  %214 = vmatpush.msra.mxu0 %v175_v2  ;;  %v926_v10 = vld [vmem:[%s1858_s1 + $0x160] sm:$0xff]  ;;  %v941_v13 = vld [vmem:[%s1858_s1 + $0x158] sm:$0xff]  ;;  %v956_v16 = vld [vmem:[%s1858_s1 + $0x150] sm:$0xff] }
   0x6   :  { %378 = vmatpush.msra.mxu1 %v911_v7  ;;  %809 = vmatpush.msra.mxu3 %v174_v5  ;;  %v932_v11 = vld [vmem:[%s1858_s1 + $0xe0] sm:$0xff]  ;;  %v947_v14 = vld [vmem:[%s1858_s1 + $0xd8] sm:$0xff]  ;;  %v962_v17 = vld [vmem:[%s1858_s1 + $0xd0] sm:$0xff] }
   0x7   :  { %543 = vmatpush.msra.mxu2 %v906_v6  ;;  %215 = vmatpush.msra.mxu0 %v174_v5  ;;  %v170_v18 = vld [vmem:[%s1858_s1 + $0x48] sm:$0xff]  ;;  %v169_v21 = vld [vmem:[%s1858_s1 + $0x40] sm:$0xff]  ;;  %v168_v24 = vld [vmem:[%s1858_s1 + $0x38] sm:$0xff] }
   0x8   :  { %379 = vmatpush.msra.mxu1 %v917_v8  ;;  %810 = vmatpush.msra.mxu3 %v173_v9  ;;  %v971_v19 = vld [vmem:[%s1858_s1 + $0x148] sm:$0xff]  ;;  %v986_v22 = vld [vmem:[%s1858_s1 + $0x140] sm:$0xff]  ;;  %v1001_v25 = vld [vmem:[%s1858_s1 + $0x138] sm:$0xff] }
   0x9   :  { %544 = vmatpush.msra.mxu2 %v926_v10  ;;  %216 = vmatpush.msra.mxu0 %v173_v9  ;;  %v977_v20 = vld [vmem:[%s1858_s1 + $0xc8] sm:$0xff]  ;;  %v992_v23 = vld [vmem:[%s1858_s1 + $0xc0] sm:$0xff]  ;;  %v1007_v26 = vld [vmem:[%s1858_s1 + $0xb8] sm:$0xff] }
   0xa   :  { %380 = vmatpush.msra.mxu1 %v932_v11  ;;  %811 = vmatpush.msra.mxu3 %v172_v12  ;;  %v167_v27 = vld [vmem:[%s1858_s1 + $0x30] sm:$0xff]  ;;  %v166_v30 = vld [vmem:[%s1858_s1 + $0x28] sm:$0xff]  ;;  %v165_v33 = vld [vmem:[%s1858_s1 + $0x20] sm:$0xff] }
   0xb   :  { %545 = vmatpush.msra.mxu2 %v941_v13  ;;  %217 = vmatpush.msra.mxu0 %v172_v12  ;;  %v1016_v28 = vld [vmem:[%s1858_s1 + $0x130] sm:$0xff]  ;;  %v1031_v31 = vld [vmem:[%s1858_s1 + $0x128] sm:$0xff]  ;;  %v1046_v34 = vld [vmem:[%s1858_s1 + $0x120] sm:$0xff] }
   0xc   :  { %381 = vmatpush.msra.mxu1 %v947_v14  ;;  %812 = vmatpush.msra.mxu3 %v171_v15  ;;  %v1022_v29 = vld [vmem:[%s1858_s1 + $0xb0] sm:$0xff]  ;;  %v1037_v32 = vld [vmem:[%s1858_s1 + $0xa8] sm:$0xff]  ;;  %v1052_v35 = vld [vmem:[%s1858_s1 + $0xa0] sm:$0xff] }
   0xd   :  { %546 = vmatpush.msra.mxu2 %v956_v16  ;;  %218 = vmatpush.msra.mxu0 %v171_v15  ;;  %v164_v36 = vld [vmem:[%s1858_s1 + $0x18] sm:$0xff]  ;;  %v163_v39 = vld [vmem:[%s1858_s1 + $0x10] sm:$0xff]  ;;  %v162_v42 = vld [vmem:[%s1858_s1 + $0x8] sm:$0xff] }
   0xe   :  { %382 = vmatpush.msra.mxu1 %v962_v17  ;;  %813 = vmatpush.msra.mxu3 %v170_v18  ;;  %v1061_v37 = vld [vmem:[%s1858_s1 + $0x118] sm:$0xff]  ;;  %v1076_v40 = vld [vmem:[%s1858_s1 + $0x110] sm:$0xff]  ;;  %v1091_v43 = vld [vmem:[%s1858_s1 + $0x108] sm:$0xff] }
   0xf   :  { %547 = vmatpush.msra.mxu2 %v971_v19  ;;  %219 = vmatpush.msra.mxu0 %v170_v18  ;;  %v1067_v38 = vld [vmem:[%s1858_s1 + $0x98] sm:$0xff]  ;;  %v1082_v41 = vld [vmem:[%s1858_s1 + $0x90] sm:$0xff]  ;;  %v1097_v44 = vld [vmem:[%s1858_s1 + $0x88] sm:$0xff] }
  0x10   :  { %383 = vmatpush.msra.mxu1 %v977_v20  ;;  %814 = vmatpush.msra.mxu3 %v169_v21  ;;  %v161_v45 = vld [vmem:[%s1858_s1] sm:$0xff]  ;;  %v125_v47 = vld [vmem:[%s1859_s0 + $0x378] sm:$0xff]  ;;  %v16_v48 = vld [vmem:[%s1859_s0 + $0x10] sm:$0xff] }
  0x11   :  { %548 = vmatpush.msra.mxu2 %v986_v22  ;;  %220 = vmatpush.msra.mxu0 %v169_v21  ;;  %v1106_v46 = vld [vmem:[%s1858_s1 + $0x100] sm:$0xff]  ;;  %v15_v51 = vld [vmem:[%s1859_s0 + $0x8] sm:$0xff]  ;;  %v128_v52 = vld [vmem:[%s1859_s0 + $0x390] sm:$0xff] }
  0x12   :  { %384 = vmatpush.msra.mxu1 %v992_v23  ;;  %815 = vmatpush.msra.mxu3 %v168_v24  ;;  %v177_v49 = vld [vmem:[%s1858_s1 + $0x80] sm:$0xff]  ;;  %v19_v53 = vld [vmem:[%s1859_s0 + $0x28] sm:$0xff]  ;;  %v17_v54 = vld [vmem:[%s1859_s0 + $0x18] sm:$0xff] }
  0x13   :  { %549 = vmatpush.msra.mxu2 %v1001_v25  ;;  %221 = vmatpush.msra.mxu0 %v168_v24  ;;  %v14_v50 = vld [vmem:[%s1859_s0] sm:$0xff]  ;;  %v131_v56 = vld [vmem:[%s1859_s0 + $0x3a8] sm:$0xff]  ;;  %v20_v58 = vld [vmem:[%s1859_s0 + $0x30] sm:$0xff] }
  0x14   :  { %385 = vmatpush.msra.mxu1 %v1007_v26  ;;  %816 = vmatpush.msra.mxu3 %v167_v27  ;;  %v18_v55 = vld [vmem:[%s1859_s0 + $0x20] sm:$0xff]  ;;  %v21_v59 = vld [vmem:[%s1859_s0 + $0x38] sm:$0xff]  ;;  %v23_v62 = vld [vmem:[%s1859_s0 + $0x48] sm:$0xff] }
  0x15   :  { %550 = vmatpush.msra.mxu2 %v1016_v28  ;;  %222 = vmatpush.msra.mxu0 %v167_v27  ;;  %v22_v57 = vld [vmem:[%s1859_s0 + $0x40] sm:$0xff]  ;;  %v25_v61 = vld [vmem:[%s1859_s0 + $0x58] sm:$0xff]  ;;  %v24_v63 = vld [vmem:[%s1859_s0 + $0x50] sm:$0xff] }
  0x16   :  { %386 = vmatpush.msra.mxu1 %v1022_v29  ;;  %817 = vmatpush.msra.mxu3 %v166_v30  ;;  %v134_v60 = vld [vmem:[%s1859_s0 + $0x3c0] sm:$0xff]  ;;  %v137_v0 = vld [vmem:[%s1859_s0 + $0x3d8] sm:$0xff]  ;;  %v28_v2 = vld [vmem:[%s1859_s0 + $0x70] sm:$0xff] }
  0x17   :  { %551 = vmatpush.msra.mxu2 %v1031_v31  ;;  %223 = vmatpush.msra.mxu0 %v166_v30  ;;  %v27_v5 = vld [vmem:[%s1859_s0 + $0x68] sm:$0xff]  ;;  %v29_v9 = vld [vmem:[%s1859_s0 + $0x78] sm:$0xff]  ;;  %v146_v12 = vld [vmem:[%s1859_s0 + $0x420] sm:$0xff] }
  0x18   :  { %387 = vmatpush.msra.mxu1 %v1037_v32  ;;  %818 = vmatpush.msra.mxu3 %v165_v33  ;;  %v36_v15 = vld [vmem:[%s1859_s0 + $0xb0] sm:$0xff]  ;;  %v38_v18 = vld [vmem:[%s1859_s0 + $0xc0] sm:$0xff]  ;;  %v43_v21 = vld [vmem:[%s1859_s0 + $0xe8] sm:$0xff] }
  0x19   :  { %552 = vmatpush.msra.mxu2 %v1046_v34  ;;  %224 = vmatpush.msra.mxu0 %v165_v33  ;;  %v155_v24 = vld [vmem:[%s1859_s0 + $0x468] sm:$0xff]  ;;  %v45_v27 = vld [vmem:[%s1859_s0 + $0xf8] sm:$0xff]  ;;  %v52_v33 = vld [vmem:[%s1859_s0 + $0x130] sm:$0xff] }
  0x1a   :  { %388 = vmatpush.msra.mxu1 %v1052_v35  ;;  %819 = vmatpush.msra.mxu3 %v164_v36  ;;  %v47_v30 = vld [vmem:[%s1859_s0 + $0x108] sm:$0xff] }
  0x1b   :  { %553 = vmatpush.msra.mxu2 %v1061_v37  ;;  %225 = vmatpush.msra.mxu0 %v164_v36  ;;  %v129_v36 = vld [vmem:[%s1859_s0 + $0x398] sm:$0xff] }
  0x1c   :  { %389 = vmatpush.msra.mxu1 %v1067_v38  ;;  %820 = vmatpush.msra.mxu3 %v163_v39 }
  0x1d   :  { %554 = vmatpush.msra.mxu2 %v1076_v40  ;;  %226 = vmatpush.msra.mxu0 %v163_v39  ;;  %v54_v39 = vld [vmem:[%s1859_s0 + $0x140] sm:$0xff] }
  0x1e   :  { %390 = vmatpush.msra.mxu1 %v1082_v41  ;;  %821 = vmatpush.msra.mxu3 %v162_v42 }
  0x1f   :  { %555 = vmatpush.msra.mxu2 %v1091_v43  ;;  %227 = vmatpush.msra.mxu0 %v162_v42  ;;  %v56_v42 = vld [vmem:[%s1859_s0 + $0x150] sm:$0xff] }
  0x20   :  { %391 = vmatpush.msra.mxu1 %v1097_v44  ;;  %822 = vmatpush.msra.mxu3 %v161_v45 }
  0x21   :  { %556 = vmatpush.msra.mxu2 %v1106_v46  ;;  %340 = vmatmul.f32.vlgmr.msra.gmra.mxu3 %v125_v47  ;;  %v60_v47 = vld [vmem:[%s1859_s0 + $0x170] sm:$0xff] }
  0x22   :  { %557 = vmatmul.f32.vlgmr.msra.gmra.mxu2 %v16_v48  ;;  %228 = vmatpush.msra.mxu0 %v161_v45  ;;  %v61_v45 = vld [vmem:[%s1859_s0 + $0x178] sm:$0xff]  ;;  %v1340_v48 = vld [vmem:[%s1860_s2] ss:$0 sm:$0xff] }
  0x23   :  { %392 = vmatpush.msra.mxu1 %v177_v49  ;;  %229 = vmatmul.f32.vlgmr.msra.gmra.mxu0 %v14_v50  ;;  %v64_v50 = vld [vmem:[%s1859_s0 + $0x190] sm:$0xff] }
  0x24   :  { %393 = vmatmul.f32.vlgmr.msra.gmra.mxu1 %v15_v51  ;;  %823 = vmatpush.msrb.mxu3 %v897_v4  ;;  %v26_v4 = vld [vmem:[%s1859_s0 + $0x60] sm:$0xff] }
  0x26   :  { %824 = vmatpush.msrb.mxu3 %v911_v7  ;;  %v140_v7 = vld [vmem:[%s1859_s0 + $0x3f0] sm:$0xff] }
  0x28   :  { %825 = vmatpush.msrb.mxu3 %v917_v8  ;;  %v31_v8 = vld [vmem:[%s1859_s0 + $0x88] sm:$0xff] }
  0x29   :  { %343 = vmatmul.f32.gmra.mxu3 %v128_v52 }
  0x2a   :  { %560 = vmatmul.f32.gmra.mxu2 %v19_v53  ;;  %826 = vmatpush.msrb.mxu3 %v932_v11  ;;  %v30_v11 = vld [vmem:[%s1859_s0 + $0x80] sm:$0xff] }
  0x2b   :  { %232 = vmatmul.f32.gmra.mxu0 %v17_v54  ;;  %v62_v53 = vld [vmem:[%s1859_s0 + $0x180] sm:$0xff]  ;;  %v63_v54 = vld [vmem:[%s1859_s0 + $0x188] sm:$0xff] }
  0x2c   :  { %396 = vmatmul.f32.gmra.mxu1 %v18_v55  ;;  %827 = vmatpush.msrb.mxu3 %v947_v14  ;;  %v35_v14 = vld [vmem:[%s1859_s0 + $0xa8] sm:$0xff] }
  0x2e   :  { %828 = vmatpush.msrb.mxu3 %v962_v17  ;;  %v40_v17 = vld [vmem:[%s1859_s0 + $0xd0] sm:$0xff] }
  0x30   :  { %829 = vmatpush.msrb.mxu3 %v977_v20  ;;  %v152_v20 = vld [vmem:[%s1859_s0 + $0x450] sm:$0xff] }
  0x31   :  { %346 = vmatmul.f32.gmra.mxu3 %v131_v56 }
  0x32   :  { %563 = vmatmul.f32.gmra.mxu2 %v22_v57  ;;  %830 = vmatpush.msrb.mxu3 %v992_v23  ;;  %v42_v23 = vld [vmem:[%s1859_s0 + $0xe0] sm:$0xff] }
  0x33   :  { %235 = vmatmul.f32.gmra.mxu0 %v20_v58 }
  0x34   :  { %399 = vmatmul.f32.gmra.mxu1 %v21_v59  ;;  %831 = vmatpush.msrb.mxu3 %v1007_v26  ;;  %v44_v26 = vld [vmem:[%s1859_s0 + $0xf0] sm:$0xff] }
  0x36   :  { %832 = vmatpush.msrb.mxu3 %v1022_v29  ;;  %v49_v29 = vld [vmem:[%s1859_s0 + $0x118] sm:$0xff] }
  0x38   :  { %833 = vmatpush.msrb.mxu3 %v1037_v32  ;;  %v126_v32 = vld [vmem:[%s1859_s0 + $0x380] sm:$0xff] }
  0x39   :  { %349 = vmatmul.f32.gmra.mxu3 %v134_v60  ;;  %v141_v60 = vld [vmem:[%s1859_s0 + $0x3f8] sm:$0xff] }
  0x3a   :  { %566 = vmatmul.f32.gmra.mxu2 %v25_v61  ;;  %834 = vmatpush.msrb.mxu3 %v1052_v35  ;;  %v51_v35 = vld [vmem:[%s1859_s0 + $0x128] sm:$0xff] }
  0x3b   :  { %238 = vmatmul.f32.gmra.mxu0 %v23_v62  ;;  %v67_v61 = vld [vmem:[%s1859_s0 + $0x1a8] sm:$0xff] }
  0x3c   :  { %402 = vmatmul.f32.gmra.mxu1 %v24_v63  ;;  %835 = vmatpush.msrb.mxu3 %v1067_v38  ;;  %v53_v38 = vld [vmem:[%s1859_s0 + $0x138] sm:$0xff] }
  0x3e   :  { %836 = vmatpush.msrb.mxu3 %v1082_v41  ;;  %v58_v41 = vld [vmem:[%s1859_s0 + $0x160] sm:$0xff] }
  0x40   :  { %837 = vmatpush.msrb.mxu3 %v1097_v44  ;;  %v135_v44 = vld [vmem:[%s1859_s0 + $0x3c8] sm:$0xff] }
  0x41   :  { %352 = vmatmul.f32.gmra.mxu3 %v137_v0 }
  0x42   :  { %569 = vmatmul.f32.gmra.mxu2 %v28_v2  ;;  %838 = vmatpush.msrb.mxu3 %v177_v49  ;;  %v138_v49 = vld [vmem:[%s1859_s0 + $0x3e0] sm:$0xff]  ;;  %v65_v2 = vld [vmem:[%s1859_s0 + $0x198] sm:$0xff] }
  0x43   :  { %241 = vmatmul.f32.gmra.mxu0 %v26_v4  ;;  %v66_v4 = vld [vmem:[%s1859_s0 + $0x1a0] sm:$0xff] }
  0x44   :  { %405 = vmatmul.f32.gmra.mxu1 %v27_v5  ;;  %839 = vmatpush.msra.mxu3 %v883_v1  ;;  %v143_v1 = vld [vmem:[%s1859_s0 + $0x408] sm:$0xff] }
  0x46   :  { %840 = vmatpush.msra.mxu3 %v892_v3  ;;  %v34_v3 = vld [vmem:[%s1859_s0 + $0xa0] sm:$0xff] }
  0x48   :  { %841 = vmatpush.msra.mxu3 %v906_v6  ;;  %v32_v6 = vld [vmem:[%s1859_s0 + $0x90] sm:$0xff] }
  0x49   :  { %355 = vmatmul.f32.gmra.mxu3 %v140_v7 }
  0x4a   :  { %572 = vmatmul.f32.gmra.mxu2 %v31_v8  ;;  %842 = vmatpush.msra.mxu3 %v926_v10  ;;  %v33_v10 = vld [vmem:[%s1859_s0 + $0x98] sm:$0xff] }
  0x4b   :  { %244 = vmatmul.f32.gmra.mxu0 %v29_v9 }
  0x4c   :  { %408 = vmatmul.f32.gmra.mxu1 %v30_v11  ;;  %843 = vmatpush.msra.mxu3 %v941_v13  ;;  %v37_v13 = vld [vmem:[%s1859_s0 + $0xb8] sm:$0xff] }
  0x4e   :  { %844 = vmatpush.msra.mxu3 %v956_v16  ;;  %v149_v16 = vld [vmem:[%s1859_s0 + $0x438] sm:$0xff] }
  0x50   :  { %845 = vmatpush.msra.mxu3 %v971_v19  ;;  %v39_v19 = vld [vmem:[%s1859_s0 + $0xc8] sm:$0xff] }
  0x51   :  { %358 = vmatmul.f32.gmra.mxu3 %v143_v1  ;;  %v144_v1 = vld [vmem:[%s1859_s0 + $0x410] sm:$0xff] }
  0x52   :  { %575 = vmatmul.f32.gmra.mxu2 %v34_v3  ;;  %846 = vmatpush.msra.mxu3 %v986_v22  ;;  %v41_v22 = vld [vmem:[%s1859_s0 + $0xd8] sm:$0xff]  ;;  %v70_v3 = vld [vmem:[%s1859_s0 + $0x1c0] sm:$0xff] }
  0x53   :  { %247 = vmatmul.f32.gmra.mxu0 %v32_v6 }
  0x54   :  { %411 = vmatmul.f32.gmra.mxu1 %v33_v10  ;;  %847 = vmatpush.msra.mxu3 %v1001_v25  ;;  %v46_v25 = vld [vmem:[%s1859_s0 + $0x100] sm:$0xff] }
  0x56   :  { %848 = vmatpush.msra.mxu3 %v1016_v28  ;;  %v158_v28 = vld [vmem:[%s1859_s0 + $0x480] sm:$0xff] }
  0x58   :  { %849 = vmatpush.msra.mxu3 %v1031_v31  ;;  %v48_v31 = vld [vmem:[%s1859_s0 + $0x110] sm:$0xff] }
  0x59   :  { %361 = vmatmul.f32.gmra.mxu3 %v146_v12 }
  0x5a   :  { %578 = vmatmul.f32.gmra.mxu2 %v37_v13  ;;  %850 = vmatpush.msra.mxu3 %v1046_v34  ;;  %v50_v34 = vld [vmem:[%s1859_s0 + $0x120] sm:$0xff]  ;;  %v68_v13 = vld [vmem:[%s1859_s0 + $0x1b0] sm:$0xff] }
  0x5b   :  { %250 = vmatmul.f32.gmra.mxu0 %v35_v14  ;;  %v69_v14 = vld [vmem:[%s1859_s0 + $0x1b8] sm:$0xff] }
  0x5c   :  { %414 = vmatmul.f32.gmra.mxu1 %v36_v15  ;;  %851 = vmatpush.msra.mxu3 %v1061_v37  ;;  %v55_v37 = vld [vmem:[%s1859_s0 + $0x148] sm:$0xff] }
  0x5e   :  { %852 = vmatpush.msra.mxu3 %v1076_v40  ;;  %v132_v40 = vld [vmem:[%s1859_s0 + $0x3b0] sm:$0xff] }
  0x60   :  { %853 = vmatpush.msra.mxu3 %v1091_v43  ;;  %v57_v43 = vld [vmem:[%s1859_s0 + $0x158] sm:$0xff] }
  0x61   :  { %364 = vmatmul.f32.gmra.mxu3 %v149_v16 }
  0x62   :  { %581 = vmatmul.f32.gmra.mxu2 %v40_v17  ;;  %854 = vmatpush.msra.mxu3 %v1106_v46  ;;  %v59_v46 = vld [vmem:[%s1859_s0 + $0x168] sm:$0xff] }
  0x63   :  { %253 = vmatmul.f32.gmra.mxu0 %v38_v18 }
  0x64   :  { %417 = vmatmul.f32.gmra.mxu1 %v39_v19 }
  0x69   :  { %367 = vmatmul.f32.gmra.mxu3 %v152_v20  ;;  %v147_v20 = vld [vmem:[%s1859_s0 + $0x428] sm:$0xff] }
  0x6a   :  { %584 = vmatmul.f32.gmra.mxu2 %v43_v21  ;;  %v73_v21 = vld [vmem:[%s1859_s0 + $0x1d8] sm:$0xff] }
  0x6b   :  { %256 = vmatmul.f32.gmra.mxu0 %v41_v22 }
  0x6c   :  { %420 = vmatmul.f32.gmra.mxu1 %v42_v23 }
  0x71   :  { %370 = vmatmul.f32.gmra.mxu3 %v155_v24 }
  0x72   :  { %587 = vmatmul.f32.gmra.mxu2 %v46_v25  ;;  %v71_v25 = vld [vmem:[%s1859_s0 + $0x1c8] sm:$0xff] }
  0x73   :  { %259 = vmatmul.f32.gmra.mxu0 %v44_v26  ;;  %v72_v26 = vld [vmem:[%s1859_s0 + $0x1d0] sm:$0xff] }
  0x74   :  { %423 = vmatmul.f32.gmra.mxu1 %v45_v27 }
  0x79   :  { %373 = vmatmul.f32.gmra.mxu3 %v158_v28 }
  0x7a   :  { %590 = vmatmul.f32.gmra.mxu2 %v49_v29 }
  0x7b   :  { %262 = vmatmul.f32.gmra.mxu0 %v47_v30 }
  0x7c   :  { %426 = vmatmul.f32.gmra.mxu1 %v48_v31 }
  0x81   :  { %504 = vmatmul.f32.vlgmr.msrb.gmra.mxu3 %v126_v32  ;;  %v150_v32 = vld [vmem:[%s1859_s0 + $0x440] sm:$0xff] }
  0x82   :  { %593 = vmatmul.f32.gmra.mxu2 %v52_v33  ;;  %v76_v33 = vld [vmem:[%s1859_s0 + $0x1f0] sm:$0xff] }
  0x83   :  { %265 = vmatmul.f32.gmra.mxu0 %v50_v34 }
  0x84   :  { %429 = vmatmul.f32.gmra.mxu1 %v51_v35 }
  0x89   :  { %507 = vmatmul.f32.gmra.mxu3 %v129_v36 }
  0x8a   :  { %596 = vmatmul.f32.gmra.mxu2 %v55_v37  ;;  %v74_v37 = vld [vmem:[%s1859_s0 + $0x1e0] sm:$0xff] }
  0x8b   :  { %268 = vmatmul.f32.gmra.mxu0 %v53_v38  ;;  %v75_v38 = vld [vmem:[%s1859_s0 + $0x1e8] sm:$0xff] }
  0x8c   :  { %432 = vmatmul.f32.gmra.mxu1 %v54_v39 }
  0x91   :  { %510 = vmatmul.f32.gmra.mxu3 %v132_v40 }
  0x92   :  { %599 = vmatmul.f32.gmra.mxu2 %v58_v41 }
  0x93   :  { %271 = vmatmul.f32.gmra.mxu0 %v56_v42 }
  0x94   :  { %435 = vmatmul.f32.gmra.mxu1 %v57_v43 }
  0x99   :  { %513 = vmatmul.f32.gmra.mxu3 %v135_v44  ;;  %v153_v44 = vld [vmem:[%s1859_s0 + $0x458] sm:$0xff] }
  0x9a   :  { %602 = vmatmul.f32.gmra.mxu2 %v61_v45  ;;  %v79_v45 = vld [vmem:[%s1859_s0 + $0x208] sm:$0xff] }
  0x9b   :  { %274 = vmatmul.f32.gmra.mxu0 %v59_v46 }
  0x9c   :  { %438 = vmatmul.f32.gmra.mxu1 %v60_v47 }
  0xa0   :  { %v230_v51 = vpop.f32.mrf.mxu0 }
  0xa1   :  { %v394_v52 = vpop.f32.mrf.mxu1  ;;  %v231_v55 = vadd.f32 %v1340_v48, %v230_v51  ;;  %516 = vmatmul.f32.gmra.mxu3 %v138_v49  ;;  %v78_v51 = vld [vmem:[%s1859_s0 + $0x200] sm:$0xff] }
  0xa2   :  { %605 = vmatmul.f32.gmra.mxu2 %v64_v50  ;;  %v77_v50 = vld [vmem:[%s1859_s0 + $0x1f8] sm:$0xff] }
  0xa3   :  { %v395_v56 = vadd.f32 %v394_v52, %v231_v55  ;;  %277 = vmatmul.f32.gmra.mxu0 %v62_v53 }
  0xa4   :  { %441 = vmatmul.f32.gmra.mxu1 %v63_v54  ;;  %v1355_v57 = vpop.f32.mrf.mxu3 }
  0xa5   :  { %v558_v58 = vpop.f32.mrf.mxu2 }
  0xa6   :  { %v559_v59 = vadd.f32 %v558_v58, %v395_v56  ;;  %v156_v58 = vld [vmem:[%s1859_s0 + $0x470] sm:$0xff] }
  0xa8   :  { %v705_v62 = vmax.f32 %v559_v59, 0.0  ;;  %v233_v63 = vpop.f32.mrf.mxu0  ;;  %v82_v59 = vld [vmem:[%s1859_s0 + $0x220] sm:$0xff] }
  0xa9   :  { %v397_v0 = vpop.f32.mrf.mxu1  ;;  %v234_v5 = vadd.f32 %v1340_v48, %v233_v63  ;;  %519 = vmatmul.f32.gmra.mxu3 %v141_v60  ;;  %v80_v63 = vld [vmem:[%s1859_s0 + $0x210] sm:$0xff] }
  0xaa   :  { %754 = vst [vmem:[%s1861_s3] sm:$0xff] %v705_v62  ;;  %608 = vmatmul.f32.gmra.mxu2 %v67_v61 }
  0xab   :  { %v398_v7 = vadd.f32 %v397_v0, %v234_v5  ;;  %280 = vmatmul.f32.gmra.mxu0 %v65_v2  ;;  %v81_v0 = vld [vmem:[%s1859_s0 + $0x218] sm:$0xff] }
  0xac   :  { %444 = vmatmul.f32.gmra.mxu1 %v66_v4  ;;  %v1373_v8 = vpop.f32.mrf.mxu3 }
  0xad   :  { %v561_v9 = vpop.f32.mrf.mxu2 }
  0xae   :  { %v562_v11 = vadd.f32 %v561_v9, %v398_v7 }
  0xb0   :  { %v706_v6 = vmax.f32 %v562_v11, 0.0  ;;  %v236_v10 = vpop.f32.mrf.mxu0  ;;  %v159_v11 = vld [vmem:[%s1859_s0 + $0x488] sm:$0xff] }
  0xb1   :  { %v400_v12 = vpop.f32.mrf.mxu1  ;;  %v237_v15 = vadd.f32 %v1340_v48, %v236_v10  ;;  %522 = vmatmul.f32.gmra.mxu3 %v144_v1  ;;  %v85_v1 = vld [vmem:[%s1859_s0 + $0x238] sm:$0xff] }
  0xb2   :  { %755 = vst [vmem:[%s1861_s3 + $0x8] sm:$0xff] %v706_v6  ;;  %611 = vmatmul.f32.gmra.mxu2 %v70_v3 }
  0xb3   :  { %v401_v16 = vadd.f32 %v400_v12, %v237_v15  ;;  %283 = vmatmul.f32.gmra.mxu0 %v68_v13  ;;  %v83_v12 = vld [vmem:[%s1859_s0 + $0x228] sm:$0xff]  ;;  %v84_v13 = vld [vmem:[%s1859_s0 + $0x230] sm:$0xff] }
  0xb4   :  { %447 = vmatmul.f32.gmra.mxu1 %v69_v14  ;;  %v1391_v17 = vpop.f32.mrf.mxu3 }
  0xb5   :  { %v564_v18 = vpop.f32.mrf.mxu2 }
  0xb6   :  { %v565_v19 = vadd.f32 %v564_v18, %v401_v16 }
  0xb8   :  { %v707_v22 = vmax.f32 %v565_v19, 0.0  ;;  %v239_v23 = vpop.f32.mrf.mxu0 }
  0xb9   :  { %v403_v24 = vpop.f32.mrf.mxu1  ;;  %v240_v27 = vadd.f32 %v1340_v48, %v239_v23  ;;  %525 = vmatmul.f32.gmra.mxu3 %v147_v20  ;;  %v88_v20 = vld [vmem:[%s1859_s0 + $0x250] sm:$0xff] }
  0xba   :  { %756 = vst [vmem:[%s1861_s3 + $0x10] sm:$0xff] %v707_v22  ;;  %614 = vmatmul.f32.gmra.mxu2 %v73_v21  ;;  %v127_v21 = vld [vmem:[%s1859_s0 + $0x388] sm:$0xff] }
  0xbb   :  { %v404_v28 = vadd.f32 %v403_v24, %v240_v27  ;;  %286 = vmatmul.f32.gmra.mxu0 %v71_v25  ;;  %v86_v25 = vld [vmem:[%s1859_s0 + $0x240] sm:$0xff] }
  0xbc   :  { %450 = vmatmul.f32.gmra.mxu1 %v72_v26  ;;  %v1409_v29 = vpop.f32.mrf.mxu3  ;;  %v87_v26 = vld [vmem:[%s1859_s0 + $0x248] sm:$0xff] }
  0xbd   :  { %v567_v30 = vpop.f32.mrf.mxu2 }
  0xbe   :  { %v568_v31 = vadd.f32 %v567_v30, %v404_v28 }
  0xc0   :  { %v708_v34 = vmax.f32 %v568_v31, 0.0  ;;  %v242_v35 = vpop.f32.mrf.mxu0 }
  0xc1   :  { %v406_v36 = vpop.f32.mrf.mxu1  ;;  %v243_v39 = vadd.f32 %v1340_v48, %v242_v35  ;;  %528 = vmatmul.f32.gmra.mxu3 %v150_v32 }
  0xc2   :  { %757 = vst [vmem:[%s1861_s3 + $0x18] sm:$0xff] %v708_v34  ;;  %617 = vmatmul.f32.gmra.mxu2 %v76_v33  ;;  %v91_v33 = vld [vmem:[%s1859_s0 + $0x268] sm:$0xff]  ;;  %v130_v34 = vld [vmem:[%s1859_s0 + $0x3a0] sm:$0xff] }
  0xc3   :  { %v407_v40 = vadd.f32 %v406_v36, %v243_v39  ;;  %289 = vmatmul.f32.gmra.mxu0 %v74_v37  ;;  %v90_v39 = vld [vmem:[%s1859_s0 + $0x260] sm:$0xff] }
  0xc4   :  { %453 = vmatmul.f32.gmra.mxu1 %v75_v38  ;;  %v1427_v41 = vpop.f32.mrf.mxu3  ;;  %v89_v38 = vld [vmem:[%s1859_s0 + $0x258] sm:$0xff] }
  0xc5   :  { %v570_v42 = vpop.f32.mrf.mxu2 }
  0xc6   :  { %v571_v43 = vadd.f32 %v570_v42, %v407_v40 }
  0xc8   :  { %v709_v46 = vmax.f32 %v571_v43, 0.0  ;;  %v245_v47 = vpop.f32.mrf.mxu0 }
  0xc9   :  { %v409_v49 = vpop.f32.mrf.mxu1  ;;  %v246_v52 = vadd.f32 %v1340_v48, %v245_v47  ;;  %531 = vmatmul.f32.gmra.mxu3 %v153_v44  ;;  %v133_v47 = vld [vmem:[%s1859_s0 + $0x3b8] sm:$0xff] }
  0xca   :  { %758 = vst [vmem:[%s1861_s3 + $0x20] sm:$0xff] %v709_v46  ;;  %620 = vmatmul.f32.gmra.mxu2 %v79_v45  ;;  %v94_v46 = vld [vmem:[%s1859_s0 + $0x280] sm:$0xff] }
  0xcb   :  { %v410_v53 = vadd.f32 %v409_v49, %v246_v52  ;;  %292 = vmatmul.f32.gmra.mxu0 %v77_v50  ;;  %v92_v52 = vld [vmem:[%s1859_s0 + $0x270] sm:$0xff] }
  0xcc   :  { %456 = vmatmul.f32.gmra.mxu1 %v78_v51  ;;  %v1445_v54 = vpop.f32.mrf.mxu3 }
  0xcd   :  { %v573_v55 = vpop.f32.mrf.mxu2 }
  0xce   :  { %v574_v56 = vadd.f32 %v573_v55, %v410_v53  ;;  %v93_v53 = vld [vmem:[%s1859_s0 + $0x278] sm:$0xff] }
  0xd0   :  { %v710_v60 = vmax.f32 %v574_v56, 0.0  ;;  %v248_v61 = vpop.f32.mrf.mxu0 }
  0xd1   :  { %v412_v62 = vpop.f32.mrf.mxu1  ;;  %v249_v2 = vadd.f32 %v1340_v48, %v248_v61  ;;  %534 = vmatmul.f32.gmra.mxu3 %v156_v58  ;;  %v97_v61 = vld [vmem:[%s1859_s0 + $0x298] sm:$0xff] }
  0xd2   :  { %759 = vst [vmem:[%s1861_s3 + $0x28] sm:$0xff] %v710_v60  ;;  %623 = vmatmul.f32.gmra.mxu2 %v82_v59 }
  0xd3   :  { %v413_v4 = vadd.f32 %v412_v62, %v249_v2  ;;  %295 = vmatmul.f32.gmra.mxu0 %v80_v63  ;;  %v136_v62 = vld [vmem:[%s1859_s0 + $0x3d0] sm:$0xff] }
  0xd4   :  { %459 = vmatmul.f32.gmra.mxu1 %v81_v0  ;;  %v1463_v5 = vpop.f32.mrf.mxu3 }
  0xd5   :  { %v576_v7 = vpop.f32.mrf.mxu2 }
  0xd6   :  { %v577_v9 = vadd.f32 %v576_v7, %v413_v4  ;;  %v95_v4 = vld [vmem:[%s1859_s0 + $0x288] sm:$0xff]  ;;  %v96_v7 = vld [vmem:[%s1859_s0 + $0x290] sm:$0xff] }
  0xd8   :  { %v711_v3 = vmax.f32 %v577_v9, 0.0  ;;  %v251_v6 = vpop.f32.mrf.mxu0 }
  0xd9   :  { %v415_v10 = vpop.f32.mrf.mxu1  ;;  %v252_v14 = vadd.f32 %v1340_v48, %v251_v6  ;;  %537 = vmatmul.f32.gmra.mxu3 %v159_v11 }
  0xda   :  { %760 = vst [vmem:[%s1861_s3 + $0x30] sm:$0xff] %v711_v3  ;;  %626 = vmatmul.f32.gmra.mxu2 %v85_v1 }
  0xdb   :  { %v416_v15 = vadd.f32 %v415_v10, %v252_v14  ;;  %298 = vmatmul.f32.gmra.mxu0 %v83_v12  ;;  %v100_v10 = vld [vmem:[%s1859_s0 + $0x2b0] sm:$0xff]  ;;  %v139_v12 = vld [vmem:[%s1859_s0 + $0x3e8] sm:$0xff] }
  0xdc   :  { %462 = vmatmul.f32.gmra.mxu1 %v84_v13  ;;  %v1481_v16 = vpop.f32.mrf.mxu3 }
  0xdd   :  { %v579_v18 = vpop.f32.mrf.mxu2 }
  0xde   :  { %v580_v19 = vadd.f32 %v579_v18, %v416_v15  ;;  %v98_v18 = vld [vmem:[%s1859_s0 + $0x2a0] sm:$0xff] }
  0xe0   :  { %v712_v22 = vmax.f32 %v580_v19, 0.0  ;;  %v254_v23 = vpop.f32.mrf.mxu0  ;;  %v99_v19 = vld [vmem:[%s1859_s0 + $0x2a8] sm:$0xff] }
  0xe1   :  { %v418_v24 = vpop.f32.mrf.mxu1  ;;  %v255_v27 = vadd.f32 %v1340_v48, %v254_v23  ;;  %668 = vmatmul.f32.vlgmr.msra.gmra.mxu3 %v127_v21  ;;  %v342_v21 = vadd.f32 %v1340_v48, %v1355_v57  ;;  %v101_v57 = vld [vmem:[%s1859_s0 + $0x2b8] sm:$0xff] }
  0xe2   :  { %761 = vst [vmem:[%s1861_s3 + $0x38] sm:$0xff] %v712_v22  ;;  %629 = vmatmul.f32.gmra.mxu2 %v88_v20 }
  0xe3   :  { %v419_v28 = vadd.f32 %v418_v24, %v255_v27  ;;  %301 = vmatmul.f32.gmra.mxu0 %v86_v25  ;;  %v103_v27 = vld [vmem:[%s1859_s0 + $0x2c8] sm:$0xff] }
  0xe4   :  { %465 = vmatmul.f32.gmra.mxu1 %v87_v26  ;;  %v1499_v30 = vpop.f32.mrf.mxu3 }
  0xe5   :  { %v582_v31 = vpop.f32.mrf.mxu2 }
  0xe6   :  { %v583_v32 = vadd.f32 %v582_v31, %v419_v28  ;;  %v142_v28 = vld [vmem:[%s1859_s0 + $0x400] sm:$0xff] }
  0xe8   :  { %v713_v35 = vmax.f32 %v583_v32, 0.0  ;;  %v257_v36 = vpop.f32.mrf.mxu0 }
  0xe9   :  { %v421_v37 = vpop.f32.mrf.mxu1  ;;  %v258_v40 = vadd.f32 %v1340_v48, %v257_v36  ;;  %671 = vmatmul.f32.gmra.mxu3 %v130_v34  ;;  %v102_v34 = vld [vmem:[%s1859_s0 + $0x2c0] sm:$0xff]  ;;  %v345_v36 = vadd.f32 %v1340_v48, %v1373_v8  ;;  %v104_v8 = vld [vmem:[%s1859_s0 + $0x2d0] sm:$0xff] }
  0xea   :  { %762 = vst [vmem:[%s1861_s3 + $0x40] sm:$0xff] %v713_v35  ;;  %632 = vmatmul.f32.gmra.mxu2 %v91_v33 }
  0xeb   :  { %v422_v42 = vadd.f32 %v421_v37, %v258_v40  ;;  %304 = vmatmul.f32.gmra.mxu0 %v89_v38 }
  0xec   :  { %468 = vmatmul.f32.gmra.mxu1 %v90_v39  ;;  %v1517_v43 = vpop.f32.mrf.mxu3 }
  0xed   :  { %v585_v44 = vpop.f32.mrf.mxu2 }
  0xee   :  { %v586_v45 = vadd.f32 %v585_v44, %v422_v42  ;;  %v106_v44 = vld [vmem:[%s1859_s0 + $0x2e0] sm:$0xff] }
  0xf0   :  { %v714_v49 = vmax.f32 %v586_v45, 0.0  ;;  %v260_v50 = vpop.f32.mrf.mxu0  ;;  %v145_v45 = vld [vmem:[%s1859_s0 + $0x418] sm:$0xff] }
  0xf1   :  { %v424_v51 = vpop.f32.mrf.mxu1  ;;  %v261_v55 = vadd.f32 %v1340_v48, %v260_v50  ;;  %674 = vmatmul.f32.gmra.mxu3 %v133_v47  ;;  %v105_v50 = vld [vmem:[%s1859_s0 + $0x2d8] sm:$0xff] }
  0xf2   :  { %763 = vst [vmem:[%s1861_s3 + $0x48] sm:$0xff] %v714_v49  ;;  %635 = vmatmul.f32.gmra.mxu2 %v94_v46 }
  0xf3   :  { %v425_v56 = vadd.f32 %v424_v51, %v261_v55  ;;  %307 = vmatmul.f32.gmra.mxu0 %v92_v52  ;;  %v348_v52 = vadd.f32 %v1340_v48, %v1391_v17  ;;  %v107_v17 = vld [vmem:[%s1859_s0 + $0x2e8] sm:$0xff] }
  0xf4   :  { %471 = vmatmul.f32.gmra.mxu1 %v93_v53  ;;  %v1535_v58 = vpop.f32.mrf.mxu3 }
  0xf5   :  { %v588_v59 = vpop.f32.mrf.mxu2 }
  0xf6   :  { %v589_v60 = vadd.f32 %v588_v59, %v425_v56 }
  0xf8   :  { %v715_v63 = vmax.f32 %v589_v60, 0.0  ;;  %v263_v0 = vpop.f32.mrf.mxu0 }
  0xf9   :  { %v427_v2 = vpop.f32.mrf.mxu1  ;;  %v264_v9 = vadd.f32 %v1340_v48, %v263_v0  ;;  %677 = vmatmul.f32.gmra.mxu3 %v136_v62  ;;  %v148_v62 = vld [vmem:[%s1859_s0 + $0x430] sm:$0xff] }
  0xfa   :  { %764 = vst [vmem:[%s1861_s3 + $0x50] sm:$0xff] %v715_v63  ;;  %638 = vmatmul.f32.gmra.mxu2 %v97_v61  ;;  %v109_v61 = vld [vmem:[%s1859_s0 + $0x2f8] sm:$0xff] }
  0xfb   :  { %v428_v11 = vadd.f32 %v427_v2, %v264_v9  ;;  %310 = vmatmul.f32.gmra.mxu0 %v95_v4  ;;  %v108_v4 = vld [vmem:[%s1859_s0 + $0x2f0] sm:$0xff]  ;;  %v351_v9 = vadd.f32 %v1340_v48, %v1409_v29  ;;  %v110_v29 = vld [vmem:[%s1859_s0 + $0x300] sm:$0xff] }
  0xfc   :  { %474 = vmatmul.f32.gmra.mxu1 %v96_v7  ;;  %v1553_v1 = vpop.f32.mrf.mxu3 }
  0xfd   :  { %v591_v3 = vpop.f32.mrf.mxu2 }
  0xfe   :  { %v592_v6 = vadd.f32 %v591_v3, %v428_v11 }
 0x100   :  { %v716_v13 = vmax.f32 %v592_v6, 0.0  ;;  %v266_v14 = vpop.f32.mrf.mxu0 }
 0x101   :  { %v430_v15 = vpop.f32.mrf.mxu1  ;;  %v267_v20 = vadd.f32 %v1340_v48, %v266_v14  ;;  %680 = vmatmul.f32.gmra.mxu3 %v139_v12  ;;  %v151_v14 = vld [vmem:[%s1859_s0 + $0x448] sm:$0xff] }
 0x102   :  { %765 = vst [vmem:[%s1861_s3 + $0x58] sm:$0xff] %v716_v13  ;;  %641 = vmatmul.f32.gmra.mxu2 %v100_v10  ;;  %v112_v13 = vld [vmem:[%s1859_s0 + $0x310] sm:$0xff] }
 0x103   :  { %v431_v22 = vadd.f32 %v430_v15, %v267_v20  ;;  %313 = vmatmul.f32.gmra.mxu0 %v98_v18  ;;  %v111_v20 = vld [vmem:[%s1859_s0 + $0x308] sm:$0xff] }
 0x104   :  { %477 = vmatmul.f32.gmra.mxu1 %v99_v19  ;;  %v505_v23 = vpop.f32.mrf.mxu3 }
 0x105   :  { %v594_v24 = vpop.f32.mrf.mxu2  ;;  %v1573_v25 = vadd.f32 %v505_v23, %v342_v21 }
 0x106   :  { %v595_v26 = vadd.f32 %v594_v24, %v431_v22  ;;  %v354_v22 = vadd.f32 %v1340_v48, %v1427_v41  ;;  %v113_v41 = vld [vmem:[%s1859_s0 + $0x318] sm:$0xff] }
 0x108   :  { %v717_v31 = vmax.f32 %v595_v26, 0.0  ;;  %v269_v32 = vpop.f32.mrf.mxu0 }
 0x109   :  { %v433_v33 = vpop.f32.mrf.mxu1  ;;  %v270_v35 = vadd.f32 %v1340_v48, %v269_v32  ;;  %683 = vmatmul.f32.gmra.mxu3 %v142_v28  ;;  %v154_v32 = vld [vmem:[%s1859_s0 + $0x460] sm:$0xff] }
 0x10a   :  { %766 = vst [vmem:[%s1861_s3 + $0x60] sm:$0xff] %v717_v31  ;;  %644 = vmatmul.f32.gmra.mxu2 %v103_v27  ;;  %v115_v31 = vld [vmem:[%s1859_s0 + $0x328] sm:$0xff] }
 0x10b   :  { %v434_v37 = vadd.f32 %v433_v33, %v270_v35  ;;  %316 = vmatmul.f32.gmra.mxu0 %v101_v57  ;;  %v114_v35 = vld [vmem:[%s1859_s0 + $0x320] sm:$0xff] }
 0x10c   :  { %480 = vmatmul.f32.gmra.mxu1 %v102_v34  ;;  %v508_v38 = vpop.f32.mrf.mxu3 }
 0x10d   :  { %v597_v39 = vpop.f32.mrf.mxu2  ;;  %v1593_v40 = vadd.f32 %v508_v38, %v345_v36 }
 0x10e   :  { %v598_v42 = vadd.f32 %v597_v39, %v434_v37  ;;  %v357_v37 = vadd.f32 %v1340_v48, %v1445_v54  ;;  %v116_v54 = vld [vmem:[%s1859_s0 + $0x330] sm:$0xff] }
 0x110   :  { %v718_v46 = vmax.f32 %v598_v42, 0.0  ;;  %v272_v47 = vpop.f32.mrf.mxu0 }
 0x111   :  { %v436_v49 = vpop.f32.mrf.mxu1  ;;  %v273_v51 = vadd.f32 %v1340_v48, %v272_v47  ;;  %686 = vmatmul.f32.gmra.mxu3 %v145_v45  ;;  %v157_v47 = vld [vmem:[%s1859_s0 + $0x478] sm:$0xff] }
 0x112   :  { %767 = vst [vmem:[%s1861_s3 + $0x68] sm:$0xff] %v718_v46  ;;  %647 = vmatmul.f32.gmra.mxu2 %v106_v44  ;;  %v118_v46 = vld [vmem:[%s1859_s0 + $0x340] sm:$0xff] }
 0x113   :  { %v437_v53 = vadd.f32 %v436_v49, %v273_v51  ;;  %319 = vmatmul.f32.gmra.mxu0 %v104_v8  ;;  %v117_v51 = vld [vmem:[%s1859_s0 + $0x338] sm:$0xff] }
 0x114   :  { %483 = vmatmul.f32.gmra.mxu1 %v105_v50  ;;  %v511_v55 = vpop.f32.mrf.mxu3 }
 0x115   :  { %v600_v56 = vpop.f32.mrf.mxu2  ;;  %v1613_v59 = vadd.f32 %v511_v55, %v348_v52 }
 0x116   :  { %v601_v60 = vadd.f32 %v600_v56, %v437_v53  ;;  %v360_v53 = vadd.f32 %v1340_v48, %v1463_v5  ;;  %v119_v5 = vld [vmem:[%s1859_s0 + $0x348] sm:$0xff] }
 0x118   :  { %v719_v63 = vmax.f32 %v601_v60, 0.0  ;;  %v275_v0 = vpop.f32.mrf.mxu0 }
 0x119   :  { %v439_v2 = vpop.f32.mrf.mxu1  ;;  %v276_v7 = vadd.f32 %v1340_v48, %v275_v0  ;;  %689 = vmatmul.f32.gmra.mxu3 %v148_v62  ;;  %v160_v0 = vld [vmem:[%s1859_s0 + $0x490] sm:$0xff] }
 0x11a   :  { %768 = vst [vmem:[%s1861_s3 + $0x70] sm:$0xff] %v719_v63  ;;  %650 = vmatmul.f32.gmra.mxu2 %v109_v61  ;;  %v121_v63 = vld [vmem:[%s1859_s0 + $0x358] sm:$0xff] }
 0x11b   :  { %v440_v11 = vadd.f32 %v439_v2, %v276_v7  ;;  %322 = vmatmul.f32.gmra.mxu0 %v107_v17  ;;  %v120_v7 = vld [vmem:[%s1859_s0 + $0x350] sm:$0xff] }
 0x11c   :  { %486 = vmatmul.f32.gmra.mxu1 %v108_v4  ;;  %v514_v3 = vpop.f32.mrf.mxu3 }
 0x11d   :  { %v603_v6 = vpop.f32.mrf.mxu2  ;;  %v1633_v10 = vadd.f32 %v514_v3, %v351_v9 }
 0x11e   :  { %v604_v12 = vadd.f32 %v603_v6, %v440_v11  ;;  %v363_v11 = vadd.f32 %v1340_v48, %v1481_v16  ;;  %v123_v16 = vld [vmem:[%s1859_s0 + $0x368] sm:$0xff] }
 0x120   :  { %v720_v15 = vmax.f32 %v604_v12, 0.0  ;;  %v278_v18 = vpop.f32.mrf.mxu0 }
 0x121   :  { %v442_v19 = vpop.f32.mrf.mxu1  ;;  %v279_v21 = vadd.f32 %v1340_v48, %v278_v18  ;;  %692 = vmatmul.f32.gmra.mxu3 %v151_v14 }
 0x122   :  { %769 = vst [vmem:[%s1861_s3 + $0x78] sm:$0xff] %v720_v15  ;;  %653 = vmatmul.f32.gmra.mxu2 %v112_v13  ;;  %v124_v15 = vld [vmem:[%s1859_s0 + $0x370] sm:$0xff] }
 0x123   :  { %v443_v23 = vadd.f32 %v442_v19, %v279_v21  ;;  %325 = vmatmul.f32.gmra.mxu0 %v110_v29 }
 0x124   :  { %489 = vmatmul.f32.gmra.mxu1 %v111_v20  ;;  %v517_v24 = vpop.f32.mrf.mxu3  ;;  %v122_v20 = vld [vmem:[%s1859_s0 + $0x360] sm:$0xff] }
 0x125   :  { %v606_v26 = vpop.f32.mrf.mxu2  ;;  %v1653_v27 = vadd.f32 %v517_v24, %v354_v22  ;;  %v366_v22 = vadd.f32 %v1340_v48, %v1499_v30  ;;  %v369_v30 = vadd.f32 %v1340_v48, %v1517_v43 }
 0x126   :  { %v607_v28 = vadd.f32 %v606_v26, %v443_v23 }
 0x128   :  { %v721_v33 = vmax.f32 %v607_v28, 0.0  ;;  %v281_v57 = vpop.f32.mrf.mxu0 }
 0x129   :  { %v445_v34 = vpop.f32.mrf.mxu1  ;;  %v282_v36 = vadd.f32 %v1340_v48, %v281_v57  ;;  %695 = vmatmul.f32.gmra.mxu3 %v154_v32 }
 0x12a   :  { %770 = vst [vmem:[%s1861_s3 + $0x80] sm:$0xff] %v721_v33  ;;  %656 = vmatmul.f32.gmra.mxu2 %v115_v31 }
 0x12b   :  { %v446_v38 = vadd.f32 %v445_v34, %v282_v36  ;;  %328 = vmatmul.f32.gmra.mxu0 %v113_v41 }
 0x12c   :  { %492 = vmatmul.f32.gmra.mxu1 %v114_v35  ;;  %v520_v39 = vpop.f32.mrf.mxu3 }
 0x12d   :  { %v609_v42 = vpop.f32.mrf.mxu2  ;;  %v1673_v44 = vadd.f32 %v520_v39, %v357_v37 }
 0x12e   :  { %v610_v45 = vadd.f32 %v609_v42, %v446_v38 }
 0x130   :  { %v722_v49 = vmax.f32 %v610_v45, 0.0  ;;  %v284_v8 = vpop.f32.mrf.mxu0 }
 0x131   :  { %v448_v50 = vpop.f32.mrf.mxu1  ;;  %v285_v52 = vadd.f32 %v1340_v48, %v284_v8  ;;  %698 = vmatmul.f32.gmra.mxu3 %v157_v47  ;;  %v372_v47 = vadd.f32 %v1340_v48, %v1535_v58 }
 0x132   :  { %771 = vst [vmem:[%s1861_s3 + $0x88] sm:$0xff] %v722_v49  ;;  %659 = vmatmul.f32.gmra.mxu2 %v118_v46 }
 0x133   :  { %v449_v55 = vadd.f32 %v448_v50, %v285_v52  ;;  %331 = vmatmul.f32.gmra.mxu0 %v116_v54 }
 0x134   :  { %495 = vmatmul.f32.gmra.mxu1 %v117_v51  ;;  %v523_v56 = vpop.f32.mrf.mxu3 }
 0x135   :  { %v612_v60 = vpop.f32.mrf.mxu2  ;;  %v1693_v61 = vadd.f32 %v523_v56, %v360_v53  ;;  %v375_v56 = vadd.f32 %v1340_v48, %v1553_v1 }
 0x136   :  { %v613_v62 = vadd.f32 %v612_v60, %v449_v55 }
 0x138   :  { %v723_v2 = vmax.f32 %v613_v62, 0.0  ;;  %v287_v17 = vpop.f32.mrf.mxu0 }
 0x139   :  { %v451_v4 = vpop.f32.mrf.mxu1  ;;  %v288_v9 = vadd.f32 %v1340_v48, %v287_v17  ;;  %701 = vmatmul.f32.gmra.mxu3 %v160_v0 }
 0x13a   :  { %772 = vst [vmem:[%s1861_s3 + $0x90] sm:$0xff] %v723_v2  ;;  %662 = vmatmul.f32.gmra.mxu2 %v121_v63 }
 0x13b   :  { %v452_v3 = vadd.f32 %v451_v4, %v288_v9  ;;  %334 = vmatmul.f32.gmra.mxu0 %v119_v5 }
 0x13c   :  { %498 = vmatmul.f32.gmra.mxu1 %v120_v7  ;;  %v526_v6 = vpop.f32.mrf.mxu3 }
 0x13d   :  { %v615_v12 = vpop.f32.mrf.mxu2  ;;  %v1713_v13 = vadd.f32 %v526_v6, %v363_v11 }
 0x13e   :  { %v616_v14 = vadd.f32 %v615_v12, %v452_v3 }
 0x140   :  { %v724_v18 = vmax.f32 %v616_v14, 0.0  ;;  %v290_v19 = vpop.f32.mrf.mxu0 }
 0x141   :  { %v454_v29 = vpop.f32.mrf.mxu1  ;;  %v291_v21 = vadd.f32 %v1340_v48, %v290_v19 }
 0x142   :  { %773 = vst [vmem:[%s1861_s3 + $0x98] sm:$0xff] %v724_v18  ;;  %665 = vmatmul.f32.gmra.mxu2 %v124_v15 }
 0x143   :  { %v455_v23 = vadd.f32 %v454_v29, %v291_v21  ;;  %337 = vmatmul.f32.gmra.mxu0 %v122_v20 }
 0x144   :  { %501 = vmatmul.f32.gmra.mxu1 %v123_v16  ;;  %v529_v24 = vpop.f32.mrf.mxu3 }
 0x145   :  { %v618_v26 = vpop.f32.mrf.mxu2  ;;  %v1730_v28 = vadd.f32 %v529_v24, %v366_v22 }
 0x146   :  { %v619_v31 = vadd.f32 %v618_v26, %v455_v23 }
 0x148   :  { %v725_v32 = vmax.f32 %v619_v31, 0.0  ;;  %v293_v33 = vpop.f32.mrf.mxu0 }
 0x149   :  { %v457_v57 = vpop.f32.mrf.mxu1  ;;  %v294_v34 = vadd.f32 %v1340_v48, %v293_v33 }
 0x14a   :  { %774 = vst [vmem:[%s1861_s3 + $0xa0] sm:$0xff] %v725_v32 }
 0x14b   :  { %v458_v41 = vadd.f32 %v457_v57, %v294_v34 }
 0x14c   :  { %v532_v35 = vpop.f32.mrf.mxu3 }
 0x14d   :  { %v621_v36 = vpop.f32.mrf.mxu2  ;;  %v1738_v37 = vadd.f32 %v532_v35, %v369_v30 }
 0x14e   :  { %v622_v38 = vadd.f32 %v621_v36, %v458_v41 }
 0x150   :  { %v726_v39 = vmax.f32 %v622_v38, 0.0  ;;  %v296_v42 = vpop.f32.mrf.mxu0 }
 0x151   :  { %v460_v45 = vpop.f32.mrf.mxu1  ;;  %v297_v46 = vadd.f32 %v1340_v48, %v296_v42 }
 0x152   :  { %775 = vst [vmem:[%s1861_s3 + $0xa8] sm:$0xff] %v726_v39 }
 0x153   :  { %v461_v49 = vadd.f32 %v460_v45, %v297_v46 }
 0x154   :  { %v535_v43 = vpop.f32.mrf.mxu3 }
 0x155   :  { %v624_v8 = vpop.f32.mrf.mxu2  ;;  %v1746_v50 = vadd.f32 %v535_v43, %v372_v47 }
 0x156   :  { %v625_v54 = vadd.f32 %v624_v8, %v461_v49 }
 0x158   :  { %v727_v51 = vmax.f32 %v625_v54, 0.0  ;;  %v299_v52 = vpop.f32.mrf.mxu0 }
 0x159   :  { %v463_v53 = vpop.f32.mrf.mxu1  ;;  %v300_v55 = vadd.f32 %v1340_v48, %v299_v52 }
 0x15a   :  { %776 = vst [vmem:[%s1861_s3 + $0xb0] sm:$0xff] %v727_v51 }
 0x15b   :  { %v464_v60 = vadd.f32 %v463_v53, %v300_v55 }
 0x15c   :  { %v538_v58 = vpop.f32.mrf.mxu3 }
 0x15d   :  { %v627_v62 = vpop.f32.mrf.mxu2  ;;  %v1754_v63 = vadd.f32 %v538_v58, %v375_v56 }
 0x15e   :  { %v628_v0 = vadd.f32 %v627_v62, %v464_v60 }
 0x160   :  { %v728_v2 = vmax.f32 %v628_v0, 0.0  ;;  %v302_v17 = vpop.f32.mrf.mxu0 }
 0x161   :  { %v466_v4 = vpop.f32.mrf.mxu1  ;;  %v303_v5 = vadd.f32 %v1340_v48, %v302_v17 }
 0x162   :  { %777 = vst [vmem:[%s1861_s3 + $0xb8] sm:$0xff] %v728_v2 }
 0x163   :  { %v467_v7 = vadd.f32 %v466_v4, %v303_v5 }
 0x164   :  { %v669_v11 = vpop.f32.mrf.mxu3 }
 0x165   :  { %v630_v9 = vpop.f32.mrf.mxu2  ;;  %v670_v1 = vadd.f32 %v669_v11, %v1573_v25 }
 0x166   :  { %v631_v3 = vadd.f32 %v630_v9, %v467_v7 }
 0x167   :  { %v742_v12 = vmax.f32 %v670_v1, 0.0 }
 0x168   :  { %v729_v6 = vmax.f32 %v631_v3, 0.0  ;;  %v305_v14 = vpop.f32.mrf.mxu0 }
 0x169   :  { %v469_v15 = vpop.f32.mrf.mxu1  ;;  %v306_v18 = vadd.f32 %v1340_v48, %v305_v14  ;;  %791 = vst [vmem:[%s1861_s3 + $0x128] sm:$0xff] %v742_v12 }
 0x16a   :  { %778 = vst [vmem:[%s1861_s3 + $0xc0] sm:$0xff] %v729_v6 }
 0x16b   :  { %v470_v19 = vadd.f32 %v469_v15, %v306_v18 }
 0x16c   :  { %v672_v20 = vpop.f32.mrf.mxu3 }
 0x16d   :  { %v633_v29 = vpop.f32.mrf.mxu2  ;;  %v673_v25 = vadd.f32 %v672_v20, %v1593_v40 }
 0x16e   :  { %v634_v16 = vadd.f32 %v633_v29, %v470_v19 }
 0x16f   :  { %v743_v22 = vmax.f32 %v673_v25, 0.0 }
 0x170   :  { %v730_v21 = vmax.f32 %v634_v16, 0.0  ;;  %v308_v23 = vpop.f32.mrf.mxu0 }
 0x171   :  { %v472_v24 = vpop.f32.mrf.mxu1  ;;  %v309_v26 = vadd.f32 %v1340_v48, %v308_v23  ;;  %792 = vst [vmem:[%s1861_s3 + $0x130] sm:$0xff] %v743_v22 }
 0x172   :  { %779 = vst [vmem:[%s1861_s3 + $0xc8] sm:$0xff] %v730_v21 }
 0x173   :  { %v473_v31 = vadd.f32 %v472_v24, %v309_v26 }
 0x174   :  { %v675_v33 = vpop.f32.mrf.mxu3 }
 0x175   :  { %v636_v32 = vpop.f32.mrf.mxu2  ;;  %v676_v40 = vadd.f32 %v675_v33, %v1613_v59 }
 0x176   :  { %v637_v57 = vadd.f32 %v636_v32, %v473_v31 }
 0x177   :  { %v744_v30 = vmax.f32 %v676_v40, 0.0 }
 0x178   :  { %v731_v34 = vmax.f32 %v637_v57, 0.0  ;;  %v311_v41 = vpop.f32.mrf.mxu0 }
 0x179   :  { %v475_v35 = vpop.f32.mrf.mxu1  ;;  %v312_v36 = vadd.f32 %v1340_v48, %v311_v41  ;;  %793 = vst [vmem:[%s1861_s3 + $0x138] sm:$0xff] %v744_v30 }
 0x17a   :  { %780 = vst [vmem:[%s1861_s3 + $0xd0] sm:$0xff] %v731_v34 }
 0x17b   :  { %v476_v38 = vadd.f32 %v475_v35, %v312_v36 }
 0x17c   :  { %v678_v42 = vpop.f32.mrf.mxu3 }
 0x17d   :  { %v639_v39 = vpop.f32.mrf.mxu2  ;;  %v679_v59 = vadd.f32 %v678_v42, %v1633_v10 }
 0x17e   :  { %v640_v45 = vadd.f32 %v639_v39, %v476_v38 }
 0x17f   :  { %v745_v47 = vmax.f32 %v679_v59, 0.0 }
 0x180   :  { %v732_v46 = vmax.f32 %v640_v45, 0.0  ;;  %v314_v49 = vpop.f32.mrf.mxu0 }
 0x181   :  { %v478_v43 = vpop.f32.mrf.mxu1  ;;  %v315_v8 = vadd.f32 %v1340_v48, %v314_v49  ;;  %794 = vst [vmem:[%s1861_s3 + $0x140] sm:$0xff] %v745_v47 }
 0x182   :  { %781 = vst [vmem:[%s1861_s3 + $0xd8] sm:$0xff] %v732_v46 }
 0x183   :  { %v479_v54 = vadd.f32 %v478_v43, %v315_v8 }
 0x184   :  { %v681_v52 = vpop.f32.mrf.mxu3 }
 0x185   :  { %v642_v51 = vpop.f32.mrf.mxu2  ;;  %v682_v10 = vadd.f32 %v681_v52, %v1653_v27 }
 0x186   :  { %v643_v53 = vadd.f32 %v642_v51, %v479_v54 }
 0x187   :  { %v746_v56 = vmax.f32 %v682_v10, 0.0 }
 0x188   :  { %v733_v55 = vmax.f32 %v643_v53, 0.0  ;;  %v317_v60 = vpop.f32.mrf.mxu0 }
 0x189   :  { %v481_v58 = vpop.f32.mrf.mxu1  ;;  %v318_v62 = vadd.f32 %v1340_v48, %v317_v60  ;;  %795 = vst [vmem:[%s1861_s3 + $0x148] sm:$0xff] %v746_v56 }
 0x18a   :  { %782 = vst [vmem:[%s1861_s3 + $0xe0] sm:$0xff] %v733_v55 }
 0x18b   :  { %v482_v0 = vadd.f32 %v481_v58, %v318_v62 }
 0x18c   :  { %v684_v17 = vpop.f32.mrf.mxu3 }
 0x18d   :  { %v645_v2 = vpop.f32.mrf.mxu2  ;;  %v685_v27 = vadd.f32 %v684_v17, %v1673_v44 }
 0x18e   :  { %v646_v4 = vadd.f32 %v645_v2, %v482_v0 }
 0x18f   :  { %v747_v7 = vmax.f32 %v685_v27, 0.0 }
 0x190   :  { %v734_v5 = vmax.f32 %v646_v4, 0.0  ;;  %v320_v9 = vpop.f32.mrf.mxu0 }
 0x191   :  { %v484_v11 = vpop.f32.mrf.mxu1  ;;  %v321_v3 = vadd.f32 %v1340_v48, %v320_v9  ;;  %796 = vst [vmem:[%s1861_s3 + $0x150] sm:$0xff] %v747_v7 }
 0x192   :  { %783 = vst [vmem:[%s1861_s3 + $0xe8] sm:$0xff] %v734_v5 }
 0x193   :  { %v485_v1 = vadd.f32 %v484_v11, %v321_v3 }
 0x194   :  { %v687_v12 = vpop.f32.mrf.mxu3 }
 0x195   :  { %v648_v6 = vpop.f32.mrf.mxu2  ;;  %v688_v44 = vadd.f32 %v687_v12, %v1693_v61 }
 0x196   :  { %v649_v14 = vadd.f32 %v648_v6, %v485_v1 }
 0x197   :  { %v748_v18 = vmax.f32 %v688_v44, 0.0 }
 0x198   :  { %v735_v15 = vmax.f32 %v649_v14, 0.0  ;;  %v323_v19 = vpop.f32.mrf.mxu0 }
 0x199   :  { %v487_v29 = vpop.f32.mrf.mxu1  ;;  %v324_v20 = vadd.f32 %v1340_v48, %v323_v19  ;;  %797 = vst [vmem:[%s1861_s3 + $0x158] sm:$0xff] %v748_v18 }
 0x19a   :  { %784 = vst [vmem:[%s1861_s3 + $0xf0] sm:$0xff] %v735_v15 }
 0x19b   :  { %v488_v16 = vadd.f32 %v487_v29, %v324_v20 }
 0x19c   :  { %v690_v21 = vpop.f32.mrf.mxu3 }
 0x19d   :  { %v651_v25 = vpop.f32.mrf.mxu2  ;;  %v691_v61 = vadd.f32 %v690_v21, %v1713_v13 }
 0x19e   :  { %v652_v22 = vadd.f32 %v651_v25, %v488_v16 }
 0x19f   :  { %v749_v24 = vmax.f32 %v691_v61, 0.0 }
 0x1a0   :  { %v736_v23 = vmax.f32 %v652_v22, 0.0  ;;  %v326_v26 = vpop.f32.mrf.mxu0 }
 0x1a1   :  { %v490_v31 = vpop.f32.mrf.mxu1  ;;  %v327_v32 = vadd.f32 %v1340_v48, %v326_v26  ;;  %798 = vst [vmem:[%s1861_s3 + $0x160] sm:$0xff] %v749_v24  ;;  %v856_v48 = vld [vmem:[%s1860_s2] ss:$0 sm:$0xff] }
 0x1a2   :  { %785 = vst [vmem:[%s1861_s3 + $0xf8] sm:$0xff] %v736_v23 }
 0x1a3   :  { %v491_v33 = vadd.f32 %v490_v31, %v327_v32 }
 0x1a4   :  { %v693_v40 = vpop.f32.mrf.mxu3 }
 0x1a5   :  { %v654_v57 = vpop.f32.mrf.mxu2  ;;  %v694_v13 = vadd.f32 %v693_v40, %v1730_v28 }
 0x1a6   :  { %v655_v34 = vadd.f32 %v654_v57, %v491_v33 }
 0x1a7   :  { %v750_v41 = vmax.f32 %v694_v13, 0.0 }
 0x1a8   :  { %v737_v30 = vmax.f32 %v655_v34, 0.0  ;;  %v329_v35 = vpop.f32.mrf.mxu0 }
 0x1a9   :  { %v493_v36 = vpop.f32.mrf.mxu1  ;;  %v330_v38 = vadd.f32 %v856_v48, %v329_v35  ;;  %799 = vst [vmem:[%s1861_s3 + $0x168] sm:$0xff] %v750_v41 }
 0x1aa   :  { %786 = vst [vmem:[%s1861_s3 + $0x100] sm:$0xff] %v737_v30 }
 0x1ab   :  { %v494_v39 = vadd.f32 %v493_v36, %v330_v38 }
 0x1ac   :  { %v696_v28 = vpop.f32.mrf.mxu3 }
 0x1ad   :  { %v657_v42 = vpop.f32.mrf.mxu2  ;;  %v697_v59 = vadd.f32 %v696_v28, %v1738_v37 }
 0x1ae   :  { %v658_v45 = vadd.f32 %v657_v42, %v494_v39 }
 0x1af   :  { %v751_v47 = vmax.f32 %v697_v59, 0.0 }
 0x1b0   :  { %v738_v46 = vmax.f32 %v658_v45, 0.0  ;;  %v332_v49 = vpop.f32.mrf.mxu0 }
 0x1b1   :  { %v496_v43 = vpop.f32.mrf.mxu1  ;;  %v333_v8 = vadd.f32 %v856_v48, %v332_v49  ;;  %800 = vst [vmem:[%s1861_s3 + $0x170] sm:$0xff] %v751_v47 }
 0x1b2   :  { %787 = vst [vmem:[%s1861_s3 + $0x108] sm:$0xff] %v738_v46 }
 0x1b3   :  { %v497_v54 = vadd.f32 %v496_v43, %v333_v8 }
 0x1b4   :  { %v699_v52 = vpop.f32.mrf.mxu3 }
 0x1b5   :  { %v660_v51 = vpop.f32.mrf.mxu2  ;;  %v700_v10 = vadd.f32 %v699_v52, %v1746_v50 }
 0x1b6   :  { %v661_v53 = vadd.f32 %v660_v51, %v497_v54 }
 0x1b7   :  { %v752_v55 = vmax.f32 %v700_v10, 0.0 }
 0x1b8   :  { %v739_v37 = vmax.f32 %v661_v53, 0.0  ;;  %v335_v56 = vpop.f32.mrf.mxu0 }
 0x1b9   :  { %v499_v60 = vpop.f32.mrf.mxu1  ;;  %v336_v58 = vadd.f32 %v856_v48, %v335_v56  ;;  %801 = vst [vmem:[%s1861_s3 + $0x178] sm:$0xff] %v752_v55 }
 0x1ba   :  { %788 = vst [vmem:[%s1861_s3 + $0x110] sm:$0xff] %v739_v37 }
 0x1bb   :  { %v500_v62 = vadd.f32 %v499_v60, %v336_v58 }
 0x1bc   :  { %v702_v2 = vpop.f32.mrf.mxu3 }
 0x1bd   :  { %v663_v0 = vpop.f32.mrf.mxu2  ;;  %v703_v4 = vadd.f32 %v702_v2, %v1754_v63 }
 0x1be   :  { %v664_v17 = vadd.f32 %v663_v0, %v500_v62 }
 0x1bf   :  { %v753_v27 = vmax.f32 %v703_v4, 0.0 }
 0x1c0   :  { %v740_v50 = vmax.f32 %v664_v17, 0.0  ;;  %v338_v5 = vpop.f32.mrf.mxu0 }
 0x1c1   :  { %v502_v7 = vpop.f32.mrf.mxu1  ;;  %v339_v9 = vadd.f32 %v856_v48, %v338_v5  ;;  %802 = vst [vmem:[%s1861_s3 + $0x180] sm:$0xff] %v753_v27 }
 0x1c2   :  { %789 = vst [vmem:[%s1861_s3 + $0x118] sm:$0xff] %v740_v50 }
 0x1c3   :  { %v503_v11 = vadd.f32 %v502_v7, %v339_v9 }
 0x1c5   :  { %v666_v3 = vpop.f32.mrf.mxu2 }
 0x1c6   :  { %v667_v1 = vadd.f32 %v666_v3, %v503_v11 }
 0x1c8   :  { %v741_v6 = vmax.f32 %v667_v1, 0.0 }
 0x1ca   :  { %790 = vst [vmem:[%s1861_s3 + $0x120] sm:$0xff] %v741_v6 }

// kernel: hypernetwork_forward.5
= control target key start
LH: loop header
LB: loop body
LE: loop exit
PB: predicated region body
PF: predicated region fallthrough
CT: control target
= control target key end

     0   :  { %s6754_s1 = inlined_call_operand.vmem [shape: f32[3200,384], index: 1, kind: input, shape index: {}]   ;;  %s6755_s0 = inlined_call_operand.vmem [shape: f32[8,3200], index: 0, kind: input, shape index: {}]   ;;  %s6756_s2 = inlined_call_operand.vmem [shape: f32[1,384], index: 2, kind: input, shape index: {}]   ;;  %s6757_s3 = inlined_call_operand.vmem [shape: f32[8,384], index: 3, kind: output, shape index: {}]  }
   0x1   :  { %v84_v0 = vld [vmem:[%s6754_s1 + $0x168] sm:$0xff]  ;;  %v81_v2 = vld [vmem:[%s6754_s1 + $0x150] sm:$0xff]  ;;  %v78_v6 = vld [vmem:[%s6754_s1 + $0x138] sm:$0xff] }
   0x2   :  { %v180_v1 = vld [vmem:[%s6754_s1 + $0x468] sm:$0xff]  ;;  %1247 = vmatpush.msra.mxu0 %v84_v0  ;;  %v177_v4 = vld [vmem:[%s6754_s1 + $0x450] sm:$0xff]  ;;  %v174_v8 = vld [vmem:[%s6754_s1 + $0x438] sm:$0xff] }
   0x3   :  { %1287 = vmatpush.msra.mxu2 %v180_v1  ;;  %v132_v3 = vld [vmem:[%s6754_s1 + $0x2e8] sm:$0xff]  ;;  %v129_v7 = vld [vmem:[%s6754_s1 + $0x2d0] sm:$0xff]  ;;  %v126_v10 = vld [vmem:[%s6754_s1 + $0x2b8] sm:$0xff] }
   0x4   :  { %v228_v5 = vld [vmem:[%s6754_s1 + $0x5e8] sm:$0xff]  ;;  %1267 = vmatpush.msra.mxu1 %v132_v3  ;;  %1248 = vmatpush.msra.mxu0 %v81_v2  ;;  %v225_v9 = vld [vmem:[%s6754_s1 + $0x5d0] sm:$0xff]  ;;  %v75_v11 = vld [vmem:[%s6754_s1 + $0x120] sm:$0xff] }
   0x5   :  { %1307 = vmatpush.msra.mxu3 %v228_v5  ;;  %1288 = vmatpush.msra.mxu2 %v177_v4  ;;  %v171_v12 = vld [vmem:[%s6754_s1 + $0x420] sm:$0xff]  ;;  %v222_v13 = vld [vmem:[%s6754_s1 + $0x5b8] sm:$0xff]  ;;  %v72_v16 = vld [vmem:[%s6754_s1 + $0x108] sm:$0xff] }
   0x6   :  { %1268 = vmatpush.msra.mxu1 %v129_v7  ;;  %1249 = vmatpush.msra.mxu0 %v78_v6  ;;  %v123_v14 = vld [vmem:[%s6754_s1 + $0x2a0] sm:$0xff]  ;;  %v168_v17 = vld [vmem:[%s6754_s1 + $0x408] sm:$0xff]  ;;  %v69_v20 = vld [vmem:[%s6754_s1 + $0xf0] sm:$0xff] }
   0x7   :  { %1308 = vmatpush.msra.mxu3 %v225_v9  ;;  %1289 = vmatpush.msra.mxu2 %v174_v8  ;;  %v219_v15 = vld [vmem:[%s6754_s1 + $0x5a0] sm:$0xff]  ;;  %v120_v18 = vld [vmem:[%s6754_s1 + $0x288] sm:$0xff]  ;;  %v165_v21 = vld [vmem:[%s6754_s1 + $0x3f0] sm:$0xff] }
   0x8   :  { %1269 = vmatpush.msra.mxu1 %v126_v10  ;;  %1250 = vmatpush.msra.mxu0 %v75_v11  ;;  %v216_v19 = vld [vmem:[%s6754_s1 + $0x588] sm:$0xff]  ;;  %v117_v22 = vld [vmem:[%s6754_s1 + $0x270] sm:$0xff]  ;;  %v66_v24 = vld [vmem:[%s6754_s1 + $0xd8] sm:$0xff] }
   0x9   :  { %1309 = vmatpush.msra.mxu3 %v222_v13  ;;  %1290 = vmatpush.msra.mxu2 %v171_v12  ;;  %v213_v23 = vld [vmem:[%s6754_s1 + $0x570] sm:$0xff]  ;;  %v162_v25 = vld [vmem:[%s6754_s1 + $0x3d8] sm:$0xff]  ;;  %v63_v28 = vld [vmem:[%s6754_s1 + $0xc0] sm:$0xff] }
   0xa   :  { %1270 = vmatpush.msra.mxu1 %v123_v14  ;;  %1251 = vmatpush.msra.mxu0 %v72_v16  ;;  %v114_v26 = vld [vmem:[%s6754_s1 + $0x258] sm:$0xff]  ;;  %v159_v29 = vld [vmem:[%s6754_s1 + $0x3c0] sm:$0xff]  ;;  %v60_v32 = vld [vmem:[%s6754_s1 + $0xa8] sm:$0xff] }
   0xb   :  { %1310 = vmatpush.msra.mxu3 %v219_v15  ;;  %1291 = vmatpush.msra.mxu2 %v168_v17  ;;  %v210_v27 = vld [vmem:[%s6754_s1 + $0x558] sm:$0xff]  ;;  %v111_v30 = vld [vmem:[%s6754_s1 + $0x240] sm:$0xff]  ;;  %v156_v33 = vld [vmem:[%s6754_s1 + $0x3a8] sm:$0xff] }
   0xc   :  { %1271 = vmatpush.msra.mxu1 %v120_v18  ;;  %1252 = vmatpush.msra.mxu0 %v69_v20  ;;  %v207_v31 = vld [vmem:[%s6754_s1 + $0x540] sm:$0xff]  ;;  %v108_v34 = vld [vmem:[%s6754_s1 + $0x228] sm:$0xff]  ;;  %v57_v36 = vld [vmem:[%s6754_s1 + $0x90] sm:$0xff] }
   0xd   :  { %1311 = vmatpush.msra.mxu3 %v216_v19  ;;  %1292 = vmatpush.msra.mxu2 %v165_v21  ;;  %v204_v35 = vld [vmem:[%s6754_s1 + $0x528] sm:$0xff]  ;;  %v153_v37 = vld [vmem:[%s6754_s1 + $0x390] sm:$0xff]  ;;  %v54_v40 = vld [vmem:[%s6754_s1 + $0x78] sm:$0xff] }
   0xe   :  { %1272 = vmatpush.msra.mxu1 %v117_v22  ;;  %1253 = vmatpush.msra.mxu0 %v66_v24  ;;  %v105_v38 = vld [vmem:[%s6754_s1 + $0x210] sm:$0xff]  ;;  %v150_v41 = vld [vmem:[%s6754_s1 + $0x378] sm:$0xff]  ;;  %v51_v44 = vld [vmem:[%s6754_s1 + $0x60] sm:$0xff] }
   0xf   :  { %1312 = vmatpush.msra.mxu3 %v213_v23  ;;  %1293 = vmatpush.msra.mxu2 %v162_v25  ;;  %v201_v39 = vld [vmem:[%s6754_s1 + $0x510] sm:$0xff]  ;;  %v102_v42 = vld [vmem:[%s6754_s1 + $0x1f8] sm:$0xff]  ;;  %v147_v45 = vld [vmem:[%s6754_s1 + $0x360] sm:$0xff] }
  0x10   :  { %1273 = vmatpush.msra.mxu1 %v114_v26  ;;  %1254 = vmatpush.msra.mxu0 %v63_v28  ;;  %v198_v43 = vld [vmem:[%s6754_s1 + $0x4f8] sm:$0xff]  ;;  %v99_v46 = vld [vmem:[%s6754_s1 + $0x1e0] sm:$0xff]  ;;  %v48_v48 = vld [vmem:[%s6754_s1 + $0x48] sm:$0xff] }
  0x11   :  { %1313 = vmatpush.msra.mxu3 %v210_v27  ;;  %1294 = vmatpush.msra.mxu2 %v159_v29  ;;  %v195_v47 = vld [vmem:[%s6754_s1 + $0x4e0] sm:$0xff]  ;;  %v144_v49 = vld [vmem:[%s6754_s1 + $0x348] sm:$0xff]  ;;  %v45_v52 = vld [vmem:[%s6754_s1 + $0x30] sm:$0xff] }
  0x12   :  { %1274 = vmatpush.msra.mxu1 %v111_v30  ;;  %1255 = vmatpush.msra.mxu0 %v60_v32  ;;  %v96_v50 = vld [vmem:[%s6754_s1 + $0x1c8] sm:$0xff]  ;;  %v141_v53 = vld [vmem:[%s6754_s1 + $0x330] sm:$0xff]  ;;  %v42_v56 = vld [vmem:[%s6754_s1 + $0x18] sm:$0xff] }
  0x13   :  { %1314 = vmatpush.msra.mxu3 %v207_v31  ;;  %1295 = vmatpush.msra.mxu2 %v156_v33  ;;  %v192_v51 = vld [vmem:[%s6754_s1 + $0x4c8] sm:$0xff]  ;;  %v93_v54 = vld [vmem:[%s6754_s1 + $0x1b0] sm:$0xff]  ;;  %v138_v57 = vld [vmem:[%s6754_s1 + $0x318] sm:$0xff] }
  0x14   :  { %1275 = vmatpush.msra.mxu1 %v108_v34  ;;  %1256 = vmatpush.msra.mxu0 %v57_v36  ;;  %v189_v55 = vld [vmem:[%s6754_s1 + $0x4b0] sm:$0xff]  ;;  %v90_v58 = vld [vmem:[%s6754_s1 + $0x198] sm:$0xff]  ;;  %v39_v60 = vld [vmem:[%s6754_s1] sm:$0xff] }
  0x15   :  { %1315 = vmatpush.msra.mxu3 %v204_v35  ;;  %1296 = vmatpush.msra.mxu2 %v153_v37  ;;  %v186_v59 = vld [vmem:[%s6754_s1 + $0x498] sm:$0xff]  ;;  %v135_v61 = vld [vmem:[%s6754_s1 + $0x300] sm:$0xff]  ;;  %v276_v62 = vld [vmem:[%s6754_s1 + $0x768] sm:$0xff] }
  0x16   :  { %1276 = vmatpush.msra.mxu1 %v105_v38  ;;  %1257 = vmatpush.msra.mxu0 %v54_v40  ;;  %v372_v63 = vld [vmem:[%s6754_s1 + $0xa68] sm:$0xff]  ;;  %v87_v0 = vld [vmem:[%s6754_s1 + $0x180] sm:$0xff]  ;;  %v273_v2 = vld [vmem:[%s6754_s1 + $0x750] sm:$0xff] }
  0x17   :  { %1316 = vmatpush.msra.mxu3 %v201_v39  ;;  %1297 = vmatpush.msra.mxu2 %v150_v41  ;;  %v183_v1 = vld [vmem:[%s6754_s1 + $0x480] sm:$0xff]  ;;  %v324_v3 = vld [vmem:[%s6754_s1 + $0x8e8] sm:$0xff]  ;;  %v369_v4 = vld [vmem:[%s6754_s1 + $0xa50] sm:$0xff] }
  0x18   :  { %1277 = vmatpush.msra.mxu1 %v102_v42  ;;  %1258 = vmatpush.msra.mxu0 %v51_v44  ;;  %v420_v5 = vld [vmem:[%s6754_s1 + $0xbe8] sm:$0xff]  ;;  %v270_v6 = vld [vmem:[%s6754_s1 + $0x738] sm:$0xff]  ;;  %v321_v7 = vld [vmem:[%s6754_s1 + $0x8d0] sm:$0xff] }
  0x19   :  { %1317 = vmatpush.msra.mxu3 %v198_v43  ;;  %1298 = vmatpush.msra.mxu2 %v147_v45  ;;  %v366_v8 = vld [vmem:[%s6754_s1 + $0xa38] sm:$0xff]  ;;  %v417_v9 = vld [vmem:[%s6754_s1 + $0xbd0] sm:$0xff]  ;;  %v267_v10 = vld [vmem:[%s6754_s1 + $0x720] sm:$0xff] }
  0x1a   :  { %1278 = vmatpush.msra.mxu1 %v99_v46  ;;  %1259 = vmatpush.msra.mxu0 %v48_v48  ;;  %v318_v11 = vld [vmem:[%s6754_s1 + $0x8b8] sm:$0xff]  ;;  %v363_v12 = vld [vmem:[%s6754_s1 + $0xa20] sm:$0xff]  ;;  %v264_v14 = vld [vmem:[%s6754_s1 + $0x708] sm:$0xff] }
  0x1b   :  { %1318 = vmatpush.msra.mxu3 %v195_v47  ;;  %1299 = vmatpush.msra.mxu2 %v144_v49  ;;  %v414_v13 = vld [vmem:[%s6754_s1 + $0xbb8] sm:$0xff]  ;;  %v315_v15 = vld [vmem:[%s6754_s1 + $0x8a0] sm:$0xff]  ;;  %v360_v16 = vld [vmem:[%s6754_s1 + $0xa08] sm:$0xff] }
  0x1c   :  { %1279 = vmatpush.msra.mxu1 %v96_v50  ;;  %1260 = vmatpush.msra.mxu0 %v45_v52  ;;  %v411_v17 = vld [vmem:[%s6754_s1 + $0xba0] sm:$0xff]  ;;  %v261_v18 = vld [vmem:[%s6754_s1 + $0x6f0] sm:$0xff]  ;;  %v312_v19 = vld [vmem:[%s6754_s1 + $0x888] sm:$0xff] }
  0x1d   :  { %1319 = vmatpush.msra.mxu3 %v192_v51  ;;  %1300 = vmatpush.msra.mxu2 %v141_v53  ;;  %v357_v20 = vld [vmem:[%s6754_s1 + $0x9f0] sm:$0xff]  ;;  %v408_v21 = vld [vmem:[%s6754_s1 + $0xb88] sm:$0xff]  ;;  %v258_v22 = vld [vmem:[%s6754_s1 + $0x6d8] sm:$0xff] }
  0x1e   :  { %1280 = vmatpush.msra.mxu1 %v93_v54  ;;  %1261 = vmatpush.msra.mxu0 %v42_v56  ;;  %v309_v23 = vld [vmem:[%s6754_s1 + $0x870] sm:$0xff]  ;;  %v354_v24 = vld [vmem:[%s6754_s1 + $0x9d8] sm:$0xff]  ;;  %v255_v26 = vld [vmem:[%s6754_s1 + $0x6c0] sm:$0xff] }
  0x1f   :  { %1320 = vmatpush.msra.mxu3 %v189_v55  ;;  %1301 = vmatpush.msra.mxu2 %v138_v57  ;;  %v405_v25 = vld [vmem:[%s6754_s1 + $0xb70] sm:$0xff]  ;;  %v306_v27 = vld [vmem:[%s6754_s1 + $0x858] sm:$0xff]  ;;  %v351_v28 = vld [vmem:[%s6754_s1 + $0x9c0] sm:$0xff] }
  0x20   :  { %1281 = vmatpush.msra.mxu1 %v90_v58  ;;  %1262 = vmatpush.msra.mxu0 %v39_v60  ;;  %v402_v29 = vld [vmem:[%s6754_s1 + $0xb58] sm:$0xff]  ;;  %v252_v30 = vld [vmem:[%s6754_s1 + $0x6a8] sm:$0xff]  ;;  %v303_v31 = vld [vmem:[%s6754_s1 + $0x840] sm:$0xff] }
  0x21   :  { %1321 = vmatpush.msra.mxu3 %v186_v59  ;;  %1302 = vmatpush.msra.mxu2 %v135_v61  ;;  %v348_v32 = vld [vmem:[%s6754_s1 + $0x9a8] sm:$0xff]  ;;  %v399_v33 = vld [vmem:[%s6754_s1 + $0xb40] sm:$0xff]  ;;  %v249_v34 = vld [vmem:[%s6754_s1 + $0x690] sm:$0xff] }
  0x22   :  { %1327 = vmatpush.msrb.mxu0 %v276_v62  ;;  %1282 = vmatpush.msra.mxu1 %v87_v0  ;;  %v300_v35 = vld [vmem:[%s6754_s1 + $0x828] sm:$0xff]  ;;  %v345_v36 = vld [vmem:[%s6754_s1 + $0x990] sm:$0xff]  ;;  %v246_v38 = vld [vmem:[%s6754_s1 + $0x678] sm:$0xff] }
  0x23   :  { %1367 = vmatpush.msrb.mxu2 %v372_v63  ;;  %1322 = vmatpush.msra.mxu3 %v183_v1  ;;  %v396_v37 = vld [vmem:[%s6754_s1 + $0xb28] sm:$0xff]  ;;  %v297_v39 = vld [vmem:[%s6754_s1 + $0x810] sm:$0xff]  ;;  %v342_v40 = vld [vmem:[%s6754_s1 + $0x978] sm:$0xff] }
  0x24   :  { %1328 = vmatpush.msrb.mxu0 %v273_v2  ;;  %1347 = vmatpush.msrb.mxu1 %v324_v3  ;;  %v393_v41 = vld [vmem:[%s6754_s1 + $0xb10] sm:$0xff]  ;;  %v243_v42 = vld [vmem:[%s6754_s1 + $0x660] sm:$0xff]  ;;  %v294_v43 = vld [vmem:[%s6754_s1 + $0x7f8] sm:$0xff] }
  0x25   :  { %1368 = vmatpush.msrb.mxu2 %v369_v4  ;;  %1387 = vmatpush.msrb.mxu3 %v420_v5  ;;  %v339_v44 = vld [vmem:[%s6754_s1 + $0x960] sm:$0xff]  ;;  %v390_v45 = vld [vmem:[%s6754_s1 + $0xaf8] sm:$0xff]  ;;  %v240_v46 = vld [vmem:[%s6754_s1 + $0x648] sm:$0xff] }
  0x26   :  { %1329 = vmatpush.msrb.mxu0 %v270_v6  ;;  %1348 = vmatpush.msrb.mxu1 %v321_v7  ;;  %v291_v47 = vld [vmem:[%s6754_s1 + $0x7e0] sm:$0xff]  ;;  %v336_v48 = vld [vmem:[%s6754_s1 + $0x948] sm:$0xff]  ;;  %v237_v50 = vld [vmem:[%s6754_s1 + $0x630] sm:$0xff] }
  0x27   :  { %1369 = vmatpush.msrb.mxu2 %v366_v8  ;;  %1388 = vmatpush.msrb.mxu3 %v417_v9  ;;  %v387_v49 = vld [vmem:[%s6754_s1 + $0xae0] sm:$0xff]  ;;  %v288_v51 = vld [vmem:[%s6754_s1 + $0x7c8] sm:$0xff]  ;;  %v333_v52 = vld [vmem:[%s6754_s1 + $0x930] sm:$0xff] }
  0x28   :  { %1330 = vmatpush.msrb.mxu0 %v267_v10  ;;  %1349 = vmatpush.msrb.mxu1 %v318_v11  ;;  %v384_v53 = vld [vmem:[%s6754_s1 + $0xac8] sm:$0xff]  ;;  %v234_v54 = vld [vmem:[%s6754_s1 + $0x618] sm:$0xff]  ;;  %v285_v55 = vld [vmem:[%s6754_s1 + $0x7b0] sm:$0xff] }
  0x29   :  { %1370 = vmatpush.msrb.mxu2 %v363_v12  ;;  %1389 = vmatpush.msrb.mxu3 %v414_v13  ;;  %v330_v56 = vld [vmem:[%s6754_s1 + $0x918] sm:$0xff]  ;;  %v381_v57 = vld [vmem:[%s6754_s1 + $0xab0] sm:$0xff]  ;;  %v231_v58 = vld [vmem:[%s6754_s1 + $0x600] sm:$0xff] }
  0x2a   :  { %1331 = vmatpush.msrb.mxu0 %v264_v14  ;;  %1350 = vmatpush.msrb.mxu1 %v315_v15  ;;  %v282_v59 = vld [vmem:[%s6754_s1 + $0x798] sm:$0xff]  ;;  %v327_v60 = vld [vmem:[%s6754_s1 + $0x900] sm:$0xff]  ;;  %v16_v63 = vld [vmem:[%s6755_s0 + $0x10] sm:$0xff] }
  0x2b   :  { %1371 = vmatpush.msrb.mxu2 %v360_v16  ;;  %1390 = vmatpush.msrb.mxu3 %v411_v17  ;;  %v378_v61 = vld [vmem:[%s6754_s1 + $0xa98] sm:$0xff]  ;;  %v14_v62 = vld [vmem:[%s6755_s0] sm:$0xff]  ;;  %v468_v0 = vld [vmem:[%s6754_s1 + $0xd68] sm:$0xff] }
  0x2c   :  { %1332 = vmatpush.msrb.mxu0 %v261_v18  ;;  %1351 = vmatpush.msrb.mxu1 %v312_v19  ;;  %v564_v1 = vld [vmem:[%s6754_s1 + $0x1068] sm:$0xff]  ;;  %v279_v2 = vld [vmem:[%s6754_s1 + $0x780] sm:$0xff]  ;;  %v17_v5 = vld [vmem:[%s6755_s0 + $0x18] sm:$0xff] }
  0x2d   :  { %1372 = vmatpush.msrb.mxu2 %v357_v20  ;;  %1391 = vmatpush.msrb.mxu3 %v408_v21  ;;  %v375_v3 = vld [vmem:[%s6754_s1 + $0xa80] sm:$0xff]  ;;  %v15_v4 = vld [vmem:[%s6755_s0 + $0x8] sm:$0xff]  ;;  %v465_v6 = vld [vmem:[%s6754_s1 + $0xd50] sm:$0xff] }
  0x2e   :  { %1333 = vmatpush.msrb.mxu0 %v258_v22  ;;  %1352 = vmatpush.msrb.mxu1 %v309_v23  ;;  %v516_v7 = vld [vmem:[%s6754_s1 + $0xee8] sm:$0xff]  ;;  %v561_v8 = vld [vmem:[%s6754_s1 + $0x1050] sm:$0xff]  ;;  %v462_v10 = vld [vmem:[%s6754_s1 + $0xd38] sm:$0xff] }
  0x2f   :  { %1373 = vmatpush.msrb.mxu2 %v354_v24  ;;  %1392 = vmatpush.msrb.mxu3 %v405_v25  ;;  %v612_v9 = vld [vmem:[%s6754_s1 + $0x11e8] sm:$0xff]  ;;  %v513_v11 = vld [vmem:[%s6754_s1 + $0xed0] sm:$0xff]  ;;  %v558_v12 = vld [vmem:[%s6754_s1 + $0x1038] sm:$0xff] }
  0x30   :  { %1334 = vmatpush.msrb.mxu0 %v255_v26  ;;  %1353 = vmatpush.msrb.mxu1 %v306_v27  ;;  %v609_v13 = vld [vmem:[%s6754_s1 + $0x11d0] sm:$0xff]  ;;  %v459_v14 = vld [vmem:[%s6754_s1 + $0xd20] sm:$0xff]  ;;  %v510_v15 = vld [vmem:[%s6754_s1 + $0xeb8] sm:$0xff] }
  0x31   :  { %1374 = vmatpush.msrb.mxu2 %v351_v28  ;;  %1393 = vmatpush.msrb.mxu3 %v402_v29  ;;  %v555_v16 = vld [vmem:[%s6754_s1 + $0x1020] sm:$0xff]  ;;  %v606_v17 = vld [vmem:[%s6754_s1 + $0x11b8] sm:$0xff]  ;;  %v20_v18 = vld [vmem:[%s6755_s0 + $0x30] sm:$0xff] }
  0x32   :  { %1335 = vmatpush.msrb.mxu0 %v252_v30  ;;  %1354 = vmatpush.msrb.mxu1 %v303_v31  ;;  %v456_v19 = vld [vmem:[%s6754_s1 + $0xd08] sm:$0xff]  ;;  %v507_v20 = vld [vmem:[%s6754_s1 + $0xea0] sm:$0xff]  ;;  %v21_v24 = vld [vmem:[%s6755_s0 + $0x38] sm:$0xff] }
  0x33   :  { %1375 = vmatpush.msrb.mxu2 %v348_v32  ;;  %1394 = vmatpush.msrb.mxu3 %v399_v33  ;;  %v552_v21 = vld [vmem:[%s6754_s1 + $0x1008] sm:$0xff]  ;;  %v603_v22 = vld [vmem:[%s6754_s1 + $0x11a0] sm:$0xff]  ;;  %v453_v25 = vld [vmem:[%s6754_s1 + $0xcf0] sm:$0xff] }
  0x34   :  { %1336 = vmatpush.msrb.mxu0 %v249_v34  ;;  %1355 = vmatpush.msrb.mxu1 %v300_v35  ;;  %v18_v23 = vld [vmem:[%s6755_s0 + $0x20] sm:$0xff]  ;;  %v504_v26 = vld [vmem:[%s6754_s1 + $0xe88] sm:$0xff]  ;;  %v549_v27 = vld [vmem:[%s6754_s1 + $0xff0] sm:$0xff] }
  0x35   :  { %1376 = vmatpush.msrb.mxu2 %v345_v36  ;;  %1395 = vmatpush.msrb.mxu3 %v396_v37  ;;  %v600_v28 = vld [vmem:[%s6754_s1 + $0x1188] sm:$0xff]  ;;  %v450_v30 = vld [vmem:[%s6754_s1 + $0xcd8] sm:$0xff]  ;;  %v501_v31 = vld [vmem:[%s6754_s1 + $0xe70] sm:$0xff] }
  0x36   :  { %1337 = vmatpush.msrb.mxu0 %v246_v38  ;;  %1356 = vmatpush.msrb.mxu1 %v297_v39  ;;  %v19_v29 = vld [vmem:[%s6755_s0 + $0x28] sm:$0xff]  ;;  %v546_v32 = vld [vmem:[%s6754_s1 + $0xfd8] sm:$0xff]  ;;  %v597_v33 = vld [vmem:[%s6754_s1 + $0x1170] sm:$0xff] }
  0x37   :  { %1377 = vmatpush.msrb.mxu2 %v342_v40  ;;  %1396 = vmatpush.msrb.mxu3 %v393_v41  ;;  %v447_v34 = vld [vmem:[%s6754_s1 + $0xcc0] sm:$0xff]  ;;  %v498_v35 = vld [vmem:[%s6754_s1 + $0xe58] sm:$0xff]  ;;  %v444_v38 = vld [vmem:[%s6754_s1 + $0xca8] sm:$0xff] }
  0x38   :  { %1338 = vmatpush.msrb.mxu0 %v243_v42  ;;  %1357 = vmatpush.msrb.mxu1 %v294_v43  ;;  %v543_v36 = vld [vmem:[%s6754_s1 + $0xfc0] sm:$0xff]  ;;  %v594_v37 = vld [vmem:[%s6754_s1 + $0x1158] sm:$0xff]  ;;  %v540_v40 = vld [vmem:[%s6754_s1 + $0xfa8] sm:$0xff] }
  0x39   :  { %1378 = vmatpush.msrb.mxu2 %v339_v44  ;;  %1397 = vmatpush.msrb.mxu3 %v390_v45  ;;  %v495_v39 = vld [vmem:[%s6754_s1 + $0xe40] sm:$0xff]  ;;  %v441_v42 = vld [vmem:[%s6754_s1 + $0xc90] sm:$0xff]  ;;  %v492_v43 = vld [vmem:[%s6754_s1 + $0xe28] sm:$0xff] }
  0x3a   :  { %1339 = vmatpush.msrb.mxu0 %v240_v46  ;;  %1358 = vmatpush.msrb.mxu1 %v291_v47  ;;  %v591_v41 = vld [vmem:[%s6754_s1 + $0x1140] sm:$0xff]  ;;  %v537_v44 = vld [vmem:[%s6754_s1 + $0xf90] sm:$0xff]  ;;  %v588_v45 = vld [vmem:[%s6754_s1 + $0x1128] sm:$0xff] }
  0x3b   :  { %1379 = vmatpush.msrb.mxu2 %v336_v48  ;;  %1398 = vmatpush.msrb.mxu3 %v387_v49  ;;  %v438_v46 = vld [vmem:[%s6754_s1 + $0xc78] sm:$0xff]  ;;  %v489_v47 = vld [vmem:[%s6754_s1 + $0xe10] sm:$0xff] }
  0x3c   :  { %1340 = vmatpush.msrb.mxu0 %v237_v50  ;;  %1359 = vmatpush.msrb.mxu1 %v288_v51  ;;  %v534_v48 = vld [vmem:[%s6754_s1 + $0xf78] sm:$0xff]  ;;  %v585_v49 = vld [vmem:[%s6754_s1 + $0x1110] sm:$0xff]  ;;  %v435_v50 = vld [vmem:[%s6754_s1 + $0xc60] sm:$0xff] }
  0x3d   :  { %1380 = vmatpush.msrb.mxu2 %v333_v52  ;;  %1399 = vmatpush.msrb.mxu3 %v384_v53  ;;  %v486_v51 = vld [vmem:[%s6754_s1 + $0xdf8] sm:$0xff]  ;;  %v531_v52 = vld [vmem:[%s6754_s1 + $0xf60] sm:$0xff] }
  0x3e   :  { %1341 = vmatpush.msrb.mxu0 %v234_v54  ;;  %1360 = vmatpush.msrb.mxu1 %v285_v55  ;;  %v582_v53 = vld [vmem:[%s6754_s1 + $0x10f8] sm:$0xff]  ;;  %v432_v54 = vld [vmem:[%s6754_s1 + $0xc48] sm:$0xff]  ;;  %v483_v55 = vld [vmem:[%s6754_s1 + $0xde0] sm:$0xff] }
  0x3f   :  { %1381 = vmatpush.msrb.mxu2 %v330_v56  ;;  %1400 = vmatpush.msrb.mxu3 %v381_v57  ;;  %v528_v56 = vld [vmem:[%s6754_s1 + $0xf48] sm:$0xff]  ;;  %v579_v57 = vld [vmem:[%s6754_s1 + $0x10e0] sm:$0xff] }
  0x40   :  { %1342 = vmatpush.msrb.mxu0 %v231_v58  ;;  %1361 = vmatpush.msrb.mxu1 %v282_v59  ;;  %v429_v58 = vld [vmem:[%s6754_s1 + $0xc30] sm:$0xff]  ;;  %v480_v59 = vld [vmem:[%s6754_s1 + $0xdc8] sm:$0xff] }
  0x41   :  { %1382 = vmatpush.msrb.mxu2 %v327_v60  ;;  %1401 = vmatpush.msrb.mxu3 %v378_v61  ;;  %v525_v60 = vld [vmem:[%s6754_s1 + $0xf30] sm:$0xff]  ;;  %v576_v61 = vld [vmem:[%s6754_s1 + $0x10c8] sm:$0xff] }
  0x42   :  { %1263 = vmatmul.f32.vlgmr.msra.gmra.mxu0 %v14_v62  ;;  %1303 = vmatmul.f32.vlgmr.msra.gmra.mxu2 %v16_v63  ;;  %v426_v62 = vld [vmem:[%s6754_s1 + $0xc18] sm:$0xff]  ;;  %v477_v63 = vld [vmem:[%s6754_s1 + $0xdb0] sm:$0xff] }
  0x43   :  { %1407 = vmatpush.msra.mxu0 %v468_v0  ;;  %1447 = vmatpush.msra.mxu2 %v564_v1  ;;  %v522_v0 = vld [vmem:[%s6754_s1 + $0xf18] sm:$0xff]  ;;  %v573_v1 = vld [vmem:[%s6754_s1 + $0x10b0] sm:$0xff] }
  0x44   :  { %1362 = vmatpush.msrb.mxu1 %v279_v2  ;;  %1402 = vmatpush.msrb.mxu3 %v375_v3  ;;  %v423_v2 = vld [vmem:[%s6754_s1 + $0xc00] sm:$0xff]  ;;  %v474_v3 = vld [vmem:[%s6754_s1 + $0xd98] sm:$0xff] }
  0x45   :  { %1283 = vmatmul.f32.vlgmr.msra.gmra.mxu1 %v15_v4  ;;  %1323 = vmatmul.f32.vlgmr.msra.gmra.mxu3 %v17_v5  ;;  %v519_v4 = vld [vmem:[%s6754_s1 + $0xf00] sm:$0xff]  ;;  %v570_v5 = vld [vmem:[%s6754_s1 + $0x1098] sm:$0xff] }
  0x46   :  { %1408 = vmatpush.msra.mxu0 %v465_v6  ;;  %1427 = vmatpush.msra.mxu1 %v516_v7  ;;  %v22_v6 = vld [vmem:[%s6755_s0 + $0x40] sm:$0xff]  ;;  %v24_v7 = vld [vmem:[%s6755_s0 + $0x50] sm:$0xff] }
  0x47   :  { %1448 = vmatpush.msra.mxu2 %v561_v8  ;;  %1467 = vmatpush.msra.mxu3 %v612_v9  ;;  %v660_v8 = vld [vmem:[%s6754_s1 + $0x1368] sm:$0xff] }
  0x48   :  { %1409 = vmatpush.msra.mxu0 %v462_v10  ;;  %1428 = vmatpush.msra.mxu1 %v513_v11  ;;  %v756_v9 = vld [vmem:[%s6754_s1 + $0x1668] sm:$0xff]  ;;  %v471_v10 = vld [vmem:[%s6754_s1 + $0xd80] sm:$0xff] }
  0x49   :  { %1449 = vmatpush.msra.mxu2 %v558_v12  ;;  %1468 = vmatpush.msra.mxu3 %v609_v13  ;;  %v567_v11 = vld [vmem:[%s6754_s1 + $0x1080] sm:$0xff]  ;;  %v23_v12 = vld [vmem:[%s6755_s0 + $0x48] sm:$0xff]  ;;  %v25_v13 = vld [vmem:[%s6755_s0 + $0x58] sm:$0xff] }
  0x4a   :  { %1410 = vmatpush.msra.mxu0 %v459_v14  ;;  %1429 = vmatpush.msra.mxu1 %v510_v15  ;;  %v657_v14 = vld [vmem:[%s6754_s1 + $0x1350] sm:$0xff]  ;;  %v708_v15 = vld [vmem:[%s6754_s1 + $0x14e8] sm:$0xff] }
  0x4b   :  { %1450 = vmatpush.msra.mxu2 %v555_v16  ;;  %1469 = vmatpush.msra.mxu3 %v606_v17  ;;  %v753_v16 = vld [vmem:[%s6754_s1 + $0x1650] sm:$0xff]  ;;  %v804_v17 = vld [vmem:[%s6754_s1 + $0x17e8] sm:$0xff] }
  0x4c   :  { %1383 = vmatmul.f32.vlgmr.msrb.gmra.mxu2 %v20_v18  ;;  %1411 = vmatpush.msra.mxu0 %v456_v19  ;;  %v654_v18 = vld [vmem:[%s6754_s1 + $0x1338] sm:$0xff]  ;;  %v705_v19 = vld [vmem:[%s6754_s1 + $0x14d0] sm:$0xff] }
  0x4d   :  { %1430 = vmatpush.msra.mxu1 %v507_v20  ;;  %1451 = vmatpush.msra.mxu2 %v552_v21  ;;  %v750_v20 = vld [vmem:[%s6754_s1 + $0x1638] sm:$0xff]  ;;  %v801_v21 = vld [vmem:[%s6754_s1 + $0x17d0] sm:$0xff] }
  0x4e   :  { %1470 = vmatpush.msra.mxu3 %v603_v22  ;;  %1343 = vmatmul.f32.vlgmr.msrb.gmra.mxu0 %v18_v23  ;;  %v651_v22 = vld [vmem:[%s6754_s1 + $0x1320] sm:$0xff]  ;;  %v702_v23 = vld [vmem:[%s6754_s1 + $0x14b8] sm:$0xff] }
  0x4f   :  { %1403 = vmatmul.f32.vlgmr.msrb.gmra.mxu3 %v21_v24  ;;  %1412 = vmatpush.msra.mxu0 %v453_v25  ;;  %v747_v24 = vld [vmem:[%s6754_s1 + $0x1620] sm:$0xff]  ;;  %v798_v25 = vld [vmem:[%s6754_s1 + $0x17b8] sm:$0xff] }
  0x50   :  { %1431 = vmatpush.msra.mxu1 %v504_v26  ;;  %1452 = vmatpush.msra.mxu2 %v549_v27  ;;  %v648_v26 = vld [vmem:[%s6754_s1 + $0x1308] sm:$0xff]  ;;  %v699_v27 = vld [vmem:[%s6754_s1 + $0x14a0] sm:$0xff] }
  0x51   :  { %1471 = vmatpush.msra.mxu3 %v600_v28  ;;  %1363 = vmatmul.f32.vlgmr.msrb.gmra.mxu1 %v19_v29  ;;  %v744_v28 = vld [vmem:[%s6754_s1 + $0x1608] sm:$0xff]  ;;  %v795_v29 = vld [vmem:[%s6754_s1 + $0x17a0] sm:$0xff] }
  0x52   :  { %1413 = vmatpush.msra.mxu0 %v450_v30  ;;  %1432 = vmatpush.msra.mxu1 %v501_v31  ;;  %v645_v30 = vld [vmem:[%s6754_s1 + $0x12f0] sm:$0xff]  ;;  %v696_v31 = vld [vmem:[%s6754_s1 + $0x1488] sm:$0xff] }
  0x53   :  { %1453 = vmatpush.msra.mxu2 %v546_v32  ;;  %1472 = vmatpush.msra.mxu3 %v597_v33  ;;  %v741_v32 = vld [vmem:[%s6754_s1 + $0x15f0] sm:$0xff]  ;;  %v792_v33 = vld [vmem:[%s6754_s1 + $0x1788] sm:$0xff] }
  0x54   :  { %1414 = vmatpush.msra.mxu0 %v447_v34  ;;  %1433 = vmatpush.msra.mxu1 %v498_v35  ;;  %v642_v34 = vld [vmem:[%s6754_s1 + $0x12d8] sm:$0xff]  ;;  %v693_v35 = vld [vmem:[%s6754_s1 + $0x1470] sm:$0xff] }
  0x55   :  { %1454 = vmatpush.msra.mxu2 %v543_v36  ;;  %1473 = vmatpush.msra.mxu3 %v594_v37  ;;  %v738_v36 = vld [vmem:[%s6754_s1 + $0x15d8] sm:$0xff]  ;;  %v789_v37 = vld [vmem:[%s6754_s1 + $0x1770] sm:$0xff] }
  0x56   :  { %1415 = vmatpush.msra.mxu0 %v444_v38  ;;  %1434 = vmatpush.msra.mxu1 %v495_v39  ;;  %v639_v38 = vld [vmem:[%s6754_s1 + $0x12c0] sm:$0xff]  ;;  %v690_v39 = vld [vmem:[%s6754_s1 + $0x1458] sm:$0xff] }
  0x57   :  { %1455 = vmatpush.msra.mxu2 %v540_v40  ;;  %1474 = vmatpush.msra.mxu3 %v591_v41  ;;  %v735_v40 = vld [vmem:[%s6754_s1 + $0x15c0] sm:$0xff]  ;;  %v786_v41 = vld [vmem:[%s6754_s1 + $0x1758] sm:$0xff] }
  0x58   :  { %1416 = vmatpush.msra.mxu0 %v441_v42  ;;  %1435 = vmatpush.msra.mxu1 %v492_v43  ;;  %v636_v42 = vld [vmem:[%s6754_s1 + $0x12a8] sm:$0xff]  ;;  %v687_v43 = vld [vmem:[%s6754_s1 + $0x1440] sm:$0xff] }
  0x59   :  { %1456 = vmatpush.msra.mxu2 %v537_v44  ;;  %1475 = vmatpush.msra.mxu3 %v588_v45  ;;  %v732_v44 = vld [vmem:[%s6754_s1 + $0x15a8] sm:$0xff]  ;;  %v783_v45 = vld [vmem:[%s6754_s1 + $0x1740] sm:$0xff] }
  0x5a   :  { %1417 = vmatpush.msra.mxu0 %v438_v46  ;;  %1436 = vmatpush.msra.mxu1 %v489_v47  ;;  %v633_v46 = vld [vmem:[%s6754_s1 + $0x1290] sm:$0xff]  ;;  %v684_v47 = vld [vmem:[%s6754_s1 + $0x1428] sm:$0xff] }
  0x5b   :  { %1457 = vmatpush.msra.mxu2 %v534_v48  ;;  %1476 = vmatpush.msra.mxu3 %v585_v49  ;;  %v729_v48 = vld [vmem:[%s6754_s1 + $0x1590] sm:$0xff]  ;;  %v780_v49 = vld [vmem:[%s6754_s1 + $0x1728] sm:$0xff] }
  0x5c   :  { %1418 = vmatpush.msra.mxu0 %v435_v50  ;;  %1437 = vmatpush.msra.mxu1 %v486_v51  ;;  %v630_v50 = vld [vmem:[%s6754_s1 + $0x1278] sm:$0xff]  ;;  %v681_v51 = vld [vmem:[%s6754_s1 + $0x1410] sm:$0xff] }
  0x5d   :  { %1458 = vmatpush.msra.mxu2 %v531_v52  ;;  %1477 = vmatpush.msra.mxu3 %v582_v53  ;;  %v726_v52 = vld [vmem:[%s6754_s1 + $0x1578] sm:$0xff]  ;;  %v777_v53 = vld [vmem:[%s6754_s1 + $0x1710] sm:$0xff] }
  0x5e   :  { %1419 = vmatpush.msra.mxu0 %v432_v54  ;;  %1438 = vmatpush.msra.mxu1 %v483_v55  ;;  %v627_v54 = vld [vmem:[%s6754_s1 + $0x1260] sm:$0xff]  ;;  %v678_v55 = vld [vmem:[%s6754_s1 + $0x13f8] sm:$0xff] }
  0x5f   :  { %1459 = vmatpush.msra.mxu2 %v528_v56  ;;  %1478 = vmatpush.msra.mxu3 %v579_v57  ;;  %v723_v56 = vld [vmem:[%s6754_s1 + $0x1560] sm:$0xff]  ;;  %v774_v57 = vld [vmem:[%s6754_s1 + $0x16f8] sm:$0xff] }
  0x60   :  { %1420 = vmatpush.msra.mxu0 %v429_v58  ;;  %1439 = vmatpush.msra.mxu1 %v480_v59  ;;  %v624_v58 = vld [vmem:[%s6754_s1 + $0x1248] sm:$0xff]  ;;  %v675_v59 = vld [vmem:[%s6754_s1 + $0x13e0] sm:$0xff] }
  0x61   :  { %1460 = vmatpush.msra.mxu2 %v525_v60  ;;  %1479 = vmatpush.msra.mxu3 %v576_v61  ;;  %v720_v60 = vld [vmem:[%s6754_s1 + $0x1548] sm:$0xff]  ;;  %v771_v61 = vld [vmem:[%s6754_s1 + $0x16e0] sm:$0xff] }
  0x62   :  { %1421 = vmatpush.msra.mxu0 %v426_v62  ;;  %1440 = vmatpush.msra.mxu1 %v477_v63  ;;  %v621_v62 = vld [vmem:[%s6754_s1 + $0x1230] sm:$0xff]  ;;  %v672_v63 = vld [vmem:[%s6754_s1 + $0x13c8] sm:$0xff] }
  0x63   :  { %1461 = vmatpush.msra.mxu2 %v522_v0  ;;  %1480 = vmatpush.msra.mxu3 %v573_v1  ;;  %v717_v0 = vld [vmem:[%s6754_s1 + $0x1530] sm:$0xff]  ;;  %v768_v1 = vld [vmem:[%s6754_s1 + $0x16c8] sm:$0xff] }
  0x64   :  { %1422 = vmatpush.msra.mxu0 %v423_v2  ;;  %1441 = vmatpush.msra.mxu1 %v474_v3  ;;  %v618_v2 = vld [vmem:[%s6754_s1 + $0x1218] sm:$0xff]  ;;  %v669_v3 = vld [vmem:[%s6754_s1 + $0x13b0] sm:$0xff] }
  0x65   :  { %1462 = vmatpush.msra.mxu2 %v519_v4  ;;  %1481 = vmatpush.msra.mxu3 %v570_v5  ;;  %v714_v4 = vld [vmem:[%s6754_s1 + $0x1518] sm:$0xff]  ;;  %v765_v5 = vld [vmem:[%s6754_s1 + $0x16b0] sm:$0xff] }
  0x66   :  { %1423 = vmatmul.f32.vlgmr.msra.gmra.mxu0 %v22_v6  ;;  %1463 = vmatmul.f32.vlgmr.msra.gmra.mxu2 %v24_v7  ;;  %v615_v6 = vld [vmem:[%s6754_s1 + $0x1200] sm:$0xff]  ;;  %v666_v7 = vld [vmem:[%s6754_s1 + $0x1398] sm:$0xff] }
  0x67   :  { %1487 = vmatpush.msrb.mxu0 %v660_v8  ;;  %1527 = vmatpush.msrb.mxu2 %v756_v9  ;;  %v711_v8 = vld [vmem:[%s6754_s1 + $0x1500] sm:$0xff]  ;;  %v762_v9 = vld [vmem:[%s6754_s1 + $0x1698] sm:$0xff] }
  0x68   :  { %1442 = vmatpush.msra.mxu1 %v471_v10  ;;  %1482 = vmatpush.msra.mxu3 %v567_v11  ;;  %v26_v10 = vld [vmem:[%s6755_s0 + $0x60] sm:$0xff]  ;;  %v28_v11 = vld [vmem:[%s6755_s0 + $0x70] sm:$0xff] }
  0x69   :  { %1443 = vmatmul.f32.vlgmr.msra.gmra.mxu1 %v23_v12  ;;  %1483 = vmatmul.f32.vlgmr.msra.gmra.mxu3 %v25_v13  ;;  %v852_v12 = vld [vmem:[%s6754_s1 + $0x1968] sm:$0xff] }
  0x6a   :  { %1488 = vmatpush.msrb.mxu0 %v657_v14  ;;  %1507 = vmatpush.msrb.mxu1 %v708_v15  ;;  %v948_v13 = vld [vmem:[%s6754_s1 + $0x1c68] sm:$0xff]  ;;  %v663_v14 = vld [vmem:[%s6754_s1 + $0x1380] sm:$0xff] }
  0x6b   :  { %1528 = vmatpush.msrb.mxu2 %v753_v16  ;;  %1547 = vmatpush.msrb.mxu3 %v804_v17  ;;  %v759_v15 = vld [vmem:[%s6754_s1 + $0x1680] sm:$0xff]  ;;  %v27_v16 = vld [vmem:[%s6755_s0 + $0x68] sm:$0xff]  ;;  %v29_v17 = vld [vmem:[%s6755_s0 + $0x78] sm:$0xff] }
  0x6c   :  { %1489 = vmatpush.msrb.mxu0 %v654_v18  ;;  %1508 = vmatpush.msrb.mxu1 %v705_v19  ;;  %v849_v18 = vld [vmem:[%s6754_s1 + $0x1950] sm:$0xff]  ;;  %v900_v19 = vld [vmem:[%s6754_s1 + $0x1ae8] sm:$0xff] }
  0x6d   :  { %1529 = vmatpush.msrb.mxu2 %v750_v20  ;;  %1548 = vmatpush.msrb.mxu3 %v801_v21  ;;  %v945_v20 = vld [vmem:[%s6754_s1 + $0x1c50] sm:$0xff]  ;;  %v996_v21 = vld [vmem:[%s6754_s1 + $0x1de8] sm:$0xff] }
  0x6e   :  { %1490 = vmatpush.msrb.mxu0 %v651_v22  ;;  %1509 = vmatpush.msrb.mxu1 %v702_v23  ;;  %v846_v22 = vld [vmem:[%s6754_s1 + $0x1938] sm:$0xff]  ;;  %v897_v23 = vld [vmem:[%s6754_s1 + $0x1ad0] sm:$0xff] }
  0x6f   :  { %1530 = vmatpush.msrb.mxu2 %v747_v24  ;;  %1549 = vmatpush.msrb.mxu3 %v798_v25  ;;  %v942_v24 = vld [vmem:[%s6754_s1 + $0x1c38] sm:$0xff]  ;;  %v993_v25 = vld [vmem:[%s6754_s1 + $0x1dd0] sm:$0xff] }
  0x70   :  { %1491 = vmatpush.msrb.mxu0 %v648_v26  ;;  %1510 = vmatpush.msrb.mxu1 %v699_v27  ;;  %v843_v26 = vld [vmem:[%s6754_s1 + $0x1920] sm:$0xff]  ;;  %v894_v27 = vld [vmem:[%s6754_s1 + $0x1ab8] sm:$0xff] }
  0x71   :  { %1531 = vmatpush.msrb.mxu2 %v744_v28  ;;  %1550 = vmatpush.msrb.mxu3 %v795_v29  ;;  %v939_v28 = vld [vmem:[%s6754_s1 + $0x1c20] sm:$0xff]  ;;  %v990_v29 = vld [vmem:[%s6754_s1 + $0x1db8] sm:$0xff] }
  0x72   :  { %1492 = vmatpush.msrb.mxu0 %v645_v30  ;;  %1511 = vmatpush.msrb.mxu1 %v696_v31  ;;  %v840_v30 = vld [vmem:[%s6754_s1 + $0x1908] sm:$0xff]  ;;  %v891_v31 = vld [vmem:[%s6754_s1 + $0x1aa0] sm:$0xff] }
  0x73   :  { %1532 = vmatpush.msrb.mxu2 %v741_v32  ;;  %1551 = vmatpush.msrb.mxu3 %v792_v33  ;;  %v936_v32 = vld [vmem:[%s6754_s1 + $0x1c08] sm:$0xff]  ;;  %v987_v33 = vld [vmem:[%s6754_s1 + $0x1da0] sm:$0xff] }
  0x74   :  { %1493 = vmatpush.msrb.mxu0 %v642_v34  ;;  %1512 = vmatpush.msrb.mxu1 %v693_v35  ;;  %v837_v34 = vld [vmem:[%s6754_s1 + $0x18f0] sm:$0xff]  ;;  %v888_v35 = vld [vmem:[%s6754_s1 + $0x1a88] sm:$0xff] }
  0x75   :  { %1533 = vmatpush.msrb.mxu2 %v738_v36  ;;  %1552 = vmatpush.msrb.mxu3 %v789_v37  ;;  %v933_v36 = vld [vmem:[%s6754_s1 + $0x1bf0] sm:$0xff]  ;;  %v984_v37 = vld [vmem:[%s6754_s1 + $0x1d88] sm:$0xff] }
  0x76   :  { %1494 = vmatpush.msrb.mxu0 %v639_v38  ;;  %1513 = vmatpush.msrb.mxu1 %v690_v39  ;;  %v834_v38 = vld [vmem:[%s6754_s1 + $0x18d8] sm:$0xff]  ;;  %v885_v39 = vld [vmem:[%s6754_s1 + $0x1a70] sm:$0xff] }
  0x77   :  { %1534 = vmatpush.msrb.mxu2 %v735_v40  ;;  %1553 = vmatpush.msrb.mxu3 %v786_v41  ;;  %v930_v40 = vld [vmem:[%s6754_s1 + $0x1bd8] sm:$0xff]  ;;  %v981_v41 = vld [vmem:[%s6754_s1 + $0x1d70] sm:$0xff] }
  0x78   :  { %1495 = vmatpush.msrb.mxu0 %v636_v42  ;;  %1514 = vmatpush.msrb.mxu1 %v687_v43  ;;  %v831_v42 = vld [vmem:[%s6754_s1 + $0x18c0] sm:$0xff]  ;;  %v882_v43 = vld [vmem:[%s6754_s1 + $0x1a58] sm:$0xff] }
  0x79   :  { %1535 = vmatpush.msrb.mxu2 %v732_v44  ;;  %1554 = vmatpush.msrb.mxu3 %v783_v45  ;;  %v927_v44 = vld [vmem:[%s6754_s1 + $0x1bc0] sm:$0xff]  ;;  %v978_v45 = vld [vmem:[%s6754_s1 + $0x1d58] sm:$0xff] }
  0x7a   :  { %1496 = vmatpush.msrb.mxu0 %v633_v46  ;;  %1515 = vmatpush.msrb.mxu1 %v684_v47  ;;  %v828_v46 = vld [vmem:[%s6754_s1 + $0x18a8] sm:$0xff]  ;;  %v879_v47 = vld [vmem:[%s6754_s1 + $0x1a40] sm:$0xff] }
  0x7b   :  { %1536 = vmatpush.msrb.mxu2 %v729_v48  ;;  %1555 = vmatpush.msrb.mxu3 %v780_v49  ;;  %v924_v48 = vld [vmem:[%s6754_s1 + $0x1ba8] sm:$0xff]  ;;  %v975_v49 = vld [vmem:[%s6754_s1 + $0x1d40] sm:$0xff] }
  0x7c   :  { %1497 = vmatpush.msrb.mxu0 %v630_v50  ;;  %1516 = vmatpush.msrb.mxu1 %v681_v51  ;;  %v825_v50 = vld [vmem:[%s6754_s1 + $0x1890] sm:$0xff]  ;;  %v876_v51 = vld [vmem:[%s6754_s1 + $0x1a28] sm:$0xff] }
  0x7d   :  { %1537 = vmatpush.msrb.mxu2 %v726_v52  ;;  %1556 = vmatpush.msrb.mxu3 %v777_v53  ;;  %v921_v52 = vld [vmem:[%s6754_s1 + $0x1b90] sm:$0xff]  ;;  %v972_v53 = vld [vmem:[%s6754_s1 + $0x1d28] sm:$0xff] }
  0x7e   :  { %1498 = vmatpush.msrb.mxu0 %v627_v54  ;;  %1517 = vmatpush.msrb.mxu1 %v678_v55  ;;  %v822_v54 = vld [vmem:[%s6754_s1 + $0x1878] sm:$0xff]  ;;  %v873_v55 = vld [vmem:[%s6754_s1 + $0x1a10] sm:$0xff] }
  0x7f   :  { %1538 = vmatpush.msrb.mxu2 %v723_v56  ;;  %1557 = vmatpush.msrb.mxu3 %v774_v57  ;;  %v918_v56 = vld [vmem:[%s6754_s1 + $0x1b78] sm:$0xff]  ;;  %v969_v57 = vld [vmem:[%s6754_s1 + $0x1d10] sm:$0xff] }
  0x80   :  { %1499 = vmatpush.msrb.mxu0 %v624_v58  ;;  %1518 = vmatpush.msrb.mxu1 %v675_v59  ;;  %v819_v58 = vld [vmem:[%s6754_s1 + $0x1860] sm:$0xff]  ;;  %v870_v59 = vld [vmem:[%s6754_s1 + $0x19f8] sm:$0xff] }
  0x81   :  { %1539 = vmatpush.msrb.mxu2 %v720_v60  ;;  %1558 = vmatpush.msrb.mxu3 %v771_v61  ;;  %v915_v60 = vld [vmem:[%s6754_s1 + $0x1b60] sm:$0xff]  ;;  %v966_v61 = vld [vmem:[%s6754_s1 + $0x1cf8] sm:$0xff] }
  0x82   :  { %1500 = vmatpush.msrb.mxu0 %v621_v62  ;;  %1519 = vmatpush.msrb.mxu1 %v672_v63  ;;  %v816_v62 = vld [vmem:[%s6754_s1 + $0x1848] sm:$0xff]  ;;  %v867_v63 = vld [vmem:[%s6754_s1 + $0x19e0] sm:$0xff] }
  0x83   :  { %1540 = vmatpush.msrb.mxu2 %v717_v0  ;;  %1559 = vmatpush.msrb.mxu3 %v768_v1  ;;  %v912_v0 = vld [vmem:[%s6754_s1 + $0x1b48] sm:$0xff]  ;;  %v963_v1 = vld [vmem:[%s6754_s1 + $0x1ce0] sm:$0xff] }
  0x84   :  { %1501 = vmatpush.msrb.mxu0 %v618_v2  ;;  %1520 = vmatpush.msrb.mxu1 %v669_v3  ;;  %v813_v2 = vld [vmem:[%s6754_s1 + $0x1830] sm:$0xff]  ;;  %v864_v3 = vld [vmem:[%s6754_s1 + $0x19c8] sm:$0xff] }
  0x85   :  { %1541 = vmatpush.msrb.mxu2 %v714_v4  ;;  %1560 = vmatpush.msrb.mxu3 %v765_v5  ;;  %v909_v4 = vld [vmem:[%s6754_s1 + $0x1b30] sm:$0xff]  ;;  %v960_v5 = vld [vmem:[%s6754_s1 + $0x1cc8] sm:$0xff] }
  0x86   :  { %1502 = vmatpush.msrb.mxu0 %v615_v6  ;;  %1521 = vmatpush.msrb.mxu1 %v666_v7  ;;  %v810_v6 = vld [vmem:[%s6754_s1 + $0x1818] sm:$0xff]  ;;  %v861_v7 = vld [vmem:[%s6754_s1 + $0x19b0] sm:$0xff] }
  0x87   :  { %1542 = vmatpush.msrb.mxu2 %v711_v8  ;;  %1561 = vmatpush.msrb.mxu3 %v762_v9  ;;  %v906_v8 = vld [vmem:[%s6754_s1 + $0x1b18] sm:$0xff]  ;;  %v957_v9 = vld [vmem:[%s6754_s1 + $0x1cb0] sm:$0xff] }
  0x88   :  { %1503 = vmatmul.f32.vlgmr.msrb.gmra.mxu0 %v26_v10  ;;  %1543 = vmatmul.f32.vlgmr.msrb.gmra.mxu2 %v28_v11  ;;  %v807_v10 = vld [vmem:[%s6754_s1 + $0x1800] sm:$0xff]  ;;  %v858_v11 = vld [vmem:[%s6754_s1 + $0x1998] sm:$0xff] }
  0x89   :  { %1567 = vmatpush.msra.mxu0 %v852_v12  ;;  %1607 = vmatpush.msra.mxu2 %v948_v13  ;;  %v903_v12 = vld [vmem:[%s6754_s1 + $0x1b00] sm:$0xff]  ;;  %v954_v13 = vld [vmem:[%s6754_s1 + $0x1c98] sm:$0xff] }
  0x8a   :  { %1522 = vmatpush.msrb.mxu1 %v663_v14  ;;  %1562 = vmatpush.msrb.mxu3 %v759_v15  ;;  %v30_v14 = vld [vmem:[%s6755_s0 + $0x80] sm:$0xff]  ;;  %v32_v15 = vld [vmem:[%s6755_s0 + $0x90] sm:$0xff] }
  0x8b   :  { %1523 = vmatmul.f32.vlgmr.msrb.gmra.mxu1 %v27_v16  ;;  %1563 = vmatmul.f32.vlgmr.msrb.gmra.mxu3 %v29_v17  ;;  %v1044_v16 = vld [vmem:[%s6754_s1 + $0x1f68] sm:$0xff] }
  0x8c   :  { %1568 = vmatpush.msra.mxu0 %v849_v18  ;;  %1587 = vmatpush.msra.mxu1 %v900_v19  ;;  %v1140_v17 = vld [vmem:[%s6754_s1 + $0x2268] sm:$0xff]  ;;  %v855_v18 = vld [vmem:[%s6754_s1 + $0x1980] sm:$0xff] }
  0x8d   :  { %1608 = vmatpush.msra.mxu2 %v945_v20  ;;  %1627 = vmatpush.msra.mxu3 %v996_v21  ;;  %v951_v19 = vld [vmem:[%s6754_s1 + $0x1c80] sm:$0xff]  ;;  %v31_v20 = vld [vmem:[%s6755_s0 + $0x88] sm:$0xff]  ;;  %v33_v21 = vld [vmem:[%s6755_s0 + $0x98] sm:$0xff] }
  0x8e   :  { %1569 = vmatpush.msra.mxu0 %v846_v22  ;;  %1588 = vmatpush.msra.mxu1 %v897_v23  ;;  %v1041_v22 = vld [vmem:[%s6754_s1 + $0x1f50] sm:$0xff]  ;;  %v1092_v23 = vld [vmem:[%s6754_s1 + $0x20e8] sm:$0xff] }
  0x8f   :  { %1609 = vmatpush.msra.mxu2 %v942_v24  ;;  %1628 = vmatpush.msra.mxu3 %v993_v25  ;;  %v1137_v24 = vld [vmem:[%s6754_s1 + $0x2250] sm:$0xff]  ;;  %v1188_v25 = vld [vmem:[%s6754_s1 + $0x23e8] sm:$0xff] }
  0x90   :  { %1570 = vmatpush.msra.mxu0 %v843_v26  ;;  %1589 = vmatpush.msra.mxu1 %v894_v27  ;;  %v1038_v26 = vld [vmem:[%s6754_s1 + $0x1f38] sm:$0xff]  ;;  %v1089_v27 = vld [vmem:[%s6754_s1 + $0x20d0] sm:$0xff] }
  0x91   :  { %1610 = vmatpush.msra.mxu2 %v939_v28  ;;  %1629 = vmatpush.msra.mxu3 %v990_v29  ;;  %v1134_v28 = vld [vmem:[%s6754_s1 + $0x2238] sm:$0xff]  ;;  %v1185_v29 = vld [vmem:[%s6754_s1 + $0x23d0] sm:$0xff] }
  0x92   :  { %1571 = vmatpush.msra.mxu0 %v840_v30  ;;  %1590 = vmatpush.msra.mxu1 %v891_v31  ;;  %v1035_v30 = vld [vmem:[%s6754_s1 + $0x1f20] sm:$0xff]  ;;  %v1086_v31 = vld [vmem:[%s6754_s1 + $0x20b8] sm:$0xff] }
  0x93   :  { %1611 = vmatpush.msra.mxu2 %v936_v32  ;;  %1630 = vmatpush.msra.mxu3 %v987_v33  ;;  %v1131_v32 = vld [vmem:[%s6754_s1 + $0x2220] sm:$0xff]  ;;  %v1182_v33 = vld [vmem:[%s6754_s1 + $0x23b8] sm:$0xff] }
  0x94   :  { %1572 = vmatpush.msra.mxu0 %v837_v34  ;;  %1591 = vmatpush.msra.mxu1 %v888_v35  ;;  %v1032_v34 = vld [vmem:[%s6754_s1 + $0x1f08] sm:$0xff]  ;;  %v1083_v35 = vld [vmem:[%s6754_s1 + $0x20a0] sm:$0xff] }
  0x95   :  { %1612 = vmatpush.msra.mxu2 %v933_v36  ;;  %1631 = vmatpush.msra.mxu3 %v984_v37  ;;  %v1128_v36 = vld [vmem:[%s6754_s1 + $0x2208] sm:$0xff]  ;;  %v1179_v37 = vld [vmem:[%s6754_s1 + $0x23a0] sm:$0xff] }
  0x96   :  { %1573 = vmatpush.msra.mxu0 %v834_v38  ;;  %1592 = vmatpush.msra.mxu1 %v885_v39  ;;  %v1029_v38 = vld [vmem:[%s6754_s1 + $0x1ef0] sm:$0xff]  ;;  %v1080_v39 = vld [vmem:[%s6754_s1 + $0x2088] sm:$0xff] }
  0x97   :  { %1613 = vmatpush.msra.mxu2 %v930_v40  ;;  %1632 = vmatpush.msra.mxu3 %v981_v41  ;;  %v1125_v40 = vld [vmem:[%s6754_s1 + $0x21f0] sm:$0xff]  ;;  %v1176_v41 = vld [vmem:[%s6754_s1 + $0x2388] sm:$0xff] }
  0x98   :  { %1574 = vmatpush.msra.mxu0 %v831_v42  ;;  %1593 = vmatpush.msra.mxu1 %v882_v43  ;;  %v1026_v42 = vld [vmem:[%s6754_s1 + $0x1ed8] sm:$0xff]  ;;  %v1077_v43 = vld [vmem:[%s6754_s1 + $0x2070] sm:$0xff] }
  0x99   :  { %1614 = vmatpush.msra.mxu2 %v927_v44  ;;  %1633 = vmatpush.msra.mxu3 %v978_v45  ;;  %v1122_v44 = vld [vmem:[%s6754_s1 + $0x21d8] sm:$0xff]  ;;  %v1173_v45 = vld [vmem:[%s6754_s1 + $0x2370] sm:$0xff] }
  0x9a   :  { %1575 = vmatpush.msra.mxu0 %v828_v46  ;;  %1594 = vmatpush.msra.mxu1 %v879_v47  ;;  %v1023_v46 = vld [vmem:[%s6754_s1 + $0x1ec0] sm:$0xff]  ;;  %v1074_v47 = vld [vmem:[%s6754_s1 + $0x2058] sm:$0xff] }
  0x9b   :  { %1615 = vmatpush.msra.mxu2 %v924_v48  ;;  %1634 = vmatpush.msra.mxu3 %v975_v49  ;;  %v1119_v48 = vld [vmem:[%s6754_s1 + $0x21c0] sm:$0xff]  ;;  %v1170_v49 = vld [vmem:[%s6754_s1 + $0x2358] sm:$0xff] }
  0x9c   :  { %1576 = vmatpush.msra.mxu0 %v825_v50  ;;  %1595 = vmatpush.msra.mxu1 %v876_v51  ;;  %v1020_v50 = vld [vmem:[%s6754_s1 + $0x1ea8] sm:$0xff]  ;;  %v1071_v51 = vld [vmem:[%s6754_s1 + $0x2040] sm:$0xff] }
  0x9d   :  { %1616 = vmatpush.msra.mxu2 %v921_v52  ;;  %1635 = vmatpush.msra.mxu3 %v972_v53  ;;  %v1116_v52 = vld [vmem:[%s6754_s1 + $0x21a8] sm:$0xff]  ;;  %v1167_v53 = vld [vmem:[%s6754_s1 + $0x2340] sm:$0xff] }
  0x9e   :  { %1577 = vmatpush.msra.mxu0 %v822_v54  ;;  %1596 = vmatpush.msra.mxu1 %v873_v55  ;;  %v1017_v54 = vld [vmem:[%s6754_s1 + $0x1e90] sm:$0xff]  ;;  %v1068_v55 = vld [vmem:[%s6754_s1 + $0x2028] sm:$0xff] }
  0x9f   :  { %1617 = vmatpush.msra.mxu2 %v918_v56  ;;  %1636 = vmatpush.msra.mxu3 %v969_v57  ;;  %v1113_v56 = vld [vmem:[%s6754_s1 + $0x2190] sm:$0xff]  ;;  %v1164_v57 = vld [vmem:[%s6754_s1 + $0x2328] sm:$0xff] }
  0xa0   :  { %1578 = vmatpush.msra.mxu0 %v819_v58  ;;  %1597 = vmatpush.msra.mxu1 %v870_v59  ;;  %v1014_v58 = vld [vmem:[%s6754_s1 + $0x1e78] sm:$0xff]  ;;  %v1065_v59 = vld [vmem:[%s6754_s1 + $0x2010] sm:$0xff] }
  0xa1   :  { %1618 = vmatpush.msra.mxu2 %v915_v60  ;;  %1637 = vmatpush.msra.mxu3 %v966_v61  ;;  %v1110_v60 = vld [vmem:[%s6754_s1 + $0x2178] sm:$0xff]  ;;  %v1161_v61 = vld [vmem:[%s6754_s1 + $0x2310] sm:$0xff] }
  0xa2   :  { %1579 = vmatpush.msra.mxu0 %v816_v62  ;;  %1598 = vmatpush.msra.mxu1 %v867_v63  ;;  %v1011_v62 = vld [vmem:[%s6754_s1 + $0x1e60] sm:$0xff]  ;;  %v1062_v63 = vld [vmem:[%s6754_s1 + $0x1ff8] sm:$0xff] }
  0xa3   :  { %1619 = vmatpush.msra.mxu2 %v912_v0  ;;  %1638 = vmatpush.msra.mxu3 %v963_v1  ;;  %v1107_v0 = vld [vmem:[%s6754_s1 + $0x2160] sm:$0xff]  ;;  %v1158_v1 = vld [vmem:[%s6754_s1 + $0x22f8] sm:$0xff] }
  0xa4   :  { %1580 = vmatpush.msra.mxu0 %v813_v2  ;;  %1599 = vmatpush.msra.mxu1 %v864_v3  ;;  %v1008_v2 = vld [vmem:[%s6754_s1 + $0x1e48] sm:$0xff]  ;;  %v1059_v3 = vld [vmem:[%s6754_s1 + $0x1fe0] sm:$0xff] }
  0xa5   :  { %1620 = vmatpush.msra.mxu2 %v909_v4  ;;  %1639 = vmatpush.msra.mxu3 %v960_v5  ;;  %v1104_v4 = vld [vmem:[%s6754_s1 + $0x2148] sm:$0xff]  ;;  %v1155_v5 = vld [vmem:[%s6754_s1 + $0x22e0] sm:$0xff] }
  0xa6   :  { %1581 = vmatpush.msra.mxu0 %v810_v6  ;;  %1600 = vmatpush.msra.mxu1 %v861_v7  ;;  %v1005_v6 = vld [vmem:[%s6754_s1 + $0x1e30] sm:$0xff]  ;;  %v1056_v7 = vld [vmem:[%s6754_s1 + $0x1fc8] sm:$0xff] }
  0xa7   :  { %1621 = vmatpush.msra.mxu2 %v906_v8  ;;  %1640 = vmatpush.msra.mxu3 %v957_v9  ;;  %v1101_v8 = vld [vmem:[%s6754_s1 + $0x2130] sm:$0xff]  ;;  %v1152_v9 = vld [vmem:[%s6754_s1 + $0x22c8] sm:$0xff] }
  0xa8   :  { %1582 = vmatpush.msra.mxu0 %v807_v10  ;;  %1601 = vmatpush.msra.mxu1 %v858_v11  ;;  %v1002_v10 = vld [vmem:[%s6754_s1 + $0x1e18] sm:$0xff]  ;;  %v1053_v11 = vld [vmem:[%s6754_s1 + $0x1fb0] sm:$0xff] }
  0xa9   :  { %1622 = vmatpush.msra.mxu2 %v903_v12  ;;  %1641 = vmatpush.msra.mxu3 %v954_v13  ;;  %v1098_v12 = vld [vmem:[%s6754_s1 + $0x2118] sm:$0xff]  ;;  %v1149_v13 = vld [vmem:[%s6754_s1 + $0x22b0] sm:$0xff] }
  0xaa   :  { %1583 = vmatmul.f32.vlgmr.msra.gmra.mxu0 %v30_v14  ;;  %1623 = vmatmul.f32.vlgmr.msra.gmra.mxu2 %v32_v15  ;;  %v999_v14 = vld [vmem:[%s6754_s1 + $0x1e00] sm:$0xff]  ;;  %v1050_v15 = vld [vmem:[%s6754_s1 + $0x1f98] sm:$0xff] }
  0xab   :  { %1647 = vmatpush.msrb.mxu0 %v1044_v16  ;;  %1687 = vmatpush.msrb.mxu2 %v1140_v17  ;;  %v1095_v16 = vld [vmem:[%s6754_s1 + $0x2100] sm:$0xff]  ;;  %v1146_v17 = vld [vmem:[%s6754_s1 + $0x2298] sm:$0xff] }
  0xac   :  { %1602 = vmatpush.msra.mxu1 %v855_v18  ;;  %1642 = vmatpush.msra.mxu3 %v951_v19  ;;  %v34_v18 = vld [vmem:[%s6755_s0 + $0xa0] sm:$0xff]  ;;  %v36_v19 = vld [vmem:[%s6755_s0 + $0xb0] sm:$0xff] }
  0xad   :  { %1603 = vmatmul.f32.vlgmr.msra.gmra.mxu1 %v31_v20  ;;  %1643 = vmatmul.f32.vlgmr.msra.gmra.mxu3 %v33_v21  ;;  %v1236_v20 = vld [vmem:[%s6754_s1 + $0x2568] sm:$0xff]  ;;  %v133_v21 = vld [vmem:[%s6754_s1 + $0x2f0] sm:$0xff] }
  0xae   :  { %1648 = vmatpush.msrb.mxu0 %v1041_v22  ;;  %1667 = vmatpush.msrb.mxu1 %v1092_v23  ;;  %v1047_v22 = vld [vmem:[%s6754_s1 + $0x1f80] sm:$0xff] }
  0xaf   :  { %1688 = vmatpush.msrb.mxu2 %v1137_v24  ;;  %1707 = vmatpush.msrb.mxu3 %v1188_v25  ;;  %v1143_v23 = vld [vmem:[%s6754_s1 + $0x2280] sm:$0xff]  ;;  %v35_v24 = vld [vmem:[%s6755_s0 + $0xa8] sm:$0xff]  ;;  %v37_v25 = vld [vmem:[%s6755_s0 + $0xb8] sm:$0xff] }
  0xb0   :  { %1649 = vmatpush.msrb.mxu0 %v1038_v26  ;;  %1668 = vmatpush.msrb.mxu1 %v1089_v27  ;;  %v1233_v26 = vld [vmem:[%s6754_s1 + $0x2550] sm:$0xff] }
  0xb1   :  { %1689 = vmatpush.msrb.mxu2 %v1134_v28  ;;  %1708 = vmatpush.msrb.mxu3 %v1185_v29  ;;  %v85_v27 = vld [vmem:[%s6754_s1 + $0x170] sm:$0xff]  ;;  %v130_v28 = vld [vmem:[%s6754_s1 + $0x2d8] sm:$0xff] }
  0xb2   :  { %1650 = vmatpush.msrb.mxu0 %v1035_v30  ;;  %1669 = vmatpush.msrb.mxu1 %v1086_v31  ;;  %v181_v29 = vld [vmem:[%s6754_s1 + $0x470] sm:$0xff]  ;;  %v1230_v30 = vld [vmem:[%s6754_s1 + $0x2538] sm:$0xff] }
  0xb3   :  { %1690 = vmatpush.msrb.mxu2 %v1131_v32  ;;  %1709 = vmatpush.msrb.mxu3 %v1182_v33  ;;  %v82_v31 = vld [vmem:[%s6754_s1 + $0x158] sm:$0xff]  ;;  %v127_v32 = vld [vmem:[%s6754_s1 + $0x2c0] sm:$0xff] }
  0xb4   :  { %1651 = vmatpush.msrb.mxu0 %v1032_v34  ;;  %1670 = vmatpush.msrb.mxu1 %v1083_v35  ;;  %v178_v33 = vld [vmem:[%s6754_s1 + $0x458] sm:$0xff]  ;;  %v1227_v34 = vld [vmem:[%s6754_s1 + $0x2520] sm:$0xff] }
  0xb5   :  { %1691 = vmatpush.msrb.mxu2 %v1128_v36  ;;  %1710 = vmatpush.msrb.mxu3 %v1179_v37  ;;  %v79_v35 = vld [vmem:[%s6754_s1 + $0x140] sm:$0xff]  ;;  %v124_v36 = vld [vmem:[%s6754_s1 + $0x2a8] sm:$0xff] }
  0xb6   :  { %1652 = vmatpush.msrb.mxu0 %v1029_v38  ;;  %1671 = vmatpush.msrb.mxu1 %v1080_v39  ;;  %v175_v37 = vld [vmem:[%s6754_s1 + $0x440] sm:$0xff]  ;;  %v1224_v38 = vld [vmem:[%s6754_s1 + $0x2508] sm:$0xff] }
  0xb7   :  { %1692 = vmatpush.msrb.mxu2 %v1125_v40  ;;  %1711 = vmatpush.msrb.mxu3 %v1176_v41  ;;  %v76_v39 = vld [vmem:[%s6754_s1 + $0x128] sm:$0xff]  ;;  %v121_v40 = vld [vmem:[%s6754_s1 + $0x290] sm:$0xff] }
  0xb8   :  { %1653 = vmatpush.msrb.mxu0 %v1026_v42  ;;  %1672 = vmatpush.msrb.mxu1 %v1077_v43  ;;  %v172_v41 = vld [vmem:[%s6754_s1 + $0x428] sm:$0xff]  ;;  %v1221_v42 = vld [vmem:[%s6754_s1 + $0x24f0] sm:$0xff] }
  0xb9   :  { %1693 = vmatpush.msrb.mxu2 %v1122_v44  ;;  %1712 = vmatpush.msrb.mxu3 %v1173_v45  ;;  %v73_v43 = vld [vmem:[%s6754_s1 + $0x110] sm:$0xff]  ;;  %v118_v44 = vld [vmem:[%s6754_s1 + $0x278] sm:$0xff] }
  0xba   :  { %1654 = vmatpush.msrb.mxu0 %v1023_v46  ;;  %1673 = vmatpush.msrb.mxu1 %v1074_v47  ;;  %v169_v45 = vld [vmem:[%s6754_s1 + $0x410] sm:$0xff]  ;;  %v1218_v46 = vld [vmem:[%s6754_s1 + $0x24d8] sm:$0xff] }
  0xbb   :  { %1694 = vmatpush.msrb.mxu2 %v1119_v48  ;;  %1713 = vmatpush.msrb.mxu3 %v1170_v49  ;;  %v70_v47 = vld [vmem:[%s6754_s1 + $0xf8] sm:$0xff]  ;;  %v115_v48 = vld [vmem:[%s6754_s1 + $0x260] sm:$0xff] }
  0xbc   :  { %1655 = vmatpush.msrb.mxu0 %v1020_v50  ;;  %1674 = vmatpush.msrb.mxu1 %v1071_v51  ;;  %v166_v49 = vld [vmem:[%s6754_s1 + $0x3f8] sm:$0xff]  ;;  %v1215_v50 = vld [vmem:[%s6754_s1 + $0x24c0] sm:$0xff] }
  0xbd   :  { %1695 = vmatpush.msrb.mxu2 %v1116_v52  ;;  %1714 = vmatpush.msrb.mxu3 %v1167_v53  ;;  %v67_v51 = vld [vmem:[%s6754_s1 + $0xe0] sm:$0xff]  ;;  %v112_v52 = vld [vmem:[%s6754_s1 + $0x248] sm:$0xff] }
  0xbe   :  { %1656 = vmatpush.msrb.mxu0 %v1017_v54  ;;  %1675 = vmatpush.msrb.mxu1 %v1068_v55  ;;  %v163_v53 = vld [vmem:[%s6754_s1 + $0x3e0] sm:$0xff]  ;;  %v1212_v54 = vld [vmem:[%s6754_s1 + $0x24a8] sm:$0xff] }
  0xbf   :  { %1696 = vmatpush.msrb.mxu2 %v1113_v56  ;;  %1715 = vmatpush.msrb.mxu3 %v1164_v57  ;;  %v64_v55 = vld [vmem:[%s6754_s1 + $0xc8] sm:$0xff]  ;;  %v109_v56 = vld [vmem:[%s6754_s1 + $0x230] sm:$0xff] }
  0xc0   :  { %1657 = vmatpush.msrb.mxu0 %v1014_v58  ;;  %1676 = vmatpush.msrb.mxu1 %v1065_v59  ;;  %v160_v57 = vld [vmem:[%s6754_s1 + $0x3c8] sm:$0xff]  ;;  %v1209_v58 = vld [vmem:[%s6754_s1 + $0x2490] sm:$0xff] }
  0xc1   :  { %1697 = vmatpush.msrb.mxu2 %v1110_v60  ;;  %1716 = vmatpush.msrb.mxu3 %v1161_v61  ;;  %v61_v59 = vld [vmem:[%s6754_s1 + $0xb0] sm:$0xff]  ;;  %v106_v60 = vld [vmem:[%s6754_s1 + $0x218] sm:$0xff] }
  0xc2   :  { %1658 = vmatpush.msrb.mxu0 %v1011_v62  ;;  %1677 = vmatpush.msrb.mxu1 %v1062_v63  ;;  %v157_v61 = vld [vmem:[%s6754_s1 + $0x3b0] sm:$0xff]  ;;  %v1206_v62 = vld [vmem:[%s6754_s1 + $0x2478] sm:$0xff] }
  0xc3   :  { %1698 = vmatpush.msrb.mxu2 %v1107_v0  ;;  %1717 = vmatpush.msrb.mxu3 %v1158_v1  ;;  %v58_v63 = vld [vmem:[%s6754_s1 + $0x98] sm:$0xff]  ;;  %v103_v0 = vld [vmem:[%s6754_s1 + $0x200] sm:$0xff] }
  0xc4   :  { %1659 = vmatpush.msrb.mxu0 %v1008_v2  ;;  %1678 = vmatpush.msrb.mxu1 %v1059_v3  ;;  %v154_v1 = vld [vmem:[%s6754_s1 + $0x398] sm:$0xff]  ;;  %v1203_v2 = vld [vmem:[%s6754_s1 + $0x2460] sm:$0xff] }
  0xc5   :  { %1699 = vmatpush.msrb.mxu2 %v1104_v4  ;;  %1718 = vmatpush.msrb.mxu3 %v1155_v5  ;;  %v55_v3 = vld [vmem:[%s6754_s1 + $0x80] sm:$0xff]  ;;  %v100_v4 = vld [vmem:[%s6754_s1 + $0x1e8] sm:$0xff] }
  0xc6   :  { %1660 = vmatpush.msrb.mxu0 %v1005_v6  ;;  %1679 = vmatpush.msrb.mxu1 %v1056_v7  ;;  %v151_v5 = vld [vmem:[%s6754_s1 + $0x380] sm:$0xff]  ;;  %v1200_v6 = vld [vmem:[%s6754_s1 + $0x2448] sm:$0xff] }
  0xc7   :  { %1700 = vmatpush.msrb.mxu2 %v1101_v8  ;;  %1719 = vmatpush.msrb.mxu3 %v1152_v9  ;;  %v52_v7 = vld [vmem:[%s6754_s1 + $0x68] sm:$0xff]  ;;  %v97_v8 = vld [vmem:[%s6754_s1 + $0x1d0] sm:$0xff] }
  0xc8   :  { %1661 = vmatpush.msrb.mxu0 %v1002_v10  ;;  %1680 = vmatpush.msrb.mxu1 %v1053_v11  ;;  %v148_v9 = vld [vmem:[%s6754_s1 + $0x368] sm:$0xff]  ;;  %v1197_v10 = vld [vmem:[%s6754_s1 + $0x2430] sm:$0xff] }
  0xc9   :  { %1701 = vmatpush.msrb.mxu2 %v1098_v12  ;;  %1720 = vmatpush.msrb.mxu3 %v1149_v13  ;;  %v49_v11 = vld [vmem:[%s6754_s1 + $0x50] sm:$0xff]  ;;  %v94_v12 = vld [vmem:[%s6754_s1 + $0x1b8] sm:$0xff] }
  0xca   :  { %1662 = vmatpush.msrb.mxu0 %v999_v14  ;;  %1681 = vmatpush.msrb.mxu1 %v1050_v15  ;;  %v145_v13 = vld [vmem:[%s6754_s1 + $0x350] sm:$0xff]  ;;  %v1194_v14 = vld [vmem:[%s6754_s1 + $0x2418] sm:$0xff] }
  0xcb   :  { %1702 = vmatpush.msrb.mxu2 %v1095_v16  ;;  %1721 = vmatpush.msrb.mxu3 %v1146_v17  ;;  %v46_v15 = vld [vmem:[%s6754_s1 + $0x38] sm:$0xff]  ;;  %v91_v16 = vld [vmem:[%s6754_s1 + $0x1a0] sm:$0xff] }
  0xcc   :  { %1663 = vmatmul.f32.vlgmr.msrb.gmra.mxu0 %v34_v18  ;;  %1703 = vmatmul.f32.vlgmr.msrb.gmra.mxu2 %v36_v19  ;;  %v142_v17 = vld [vmem:[%s6754_s1 + $0x338] sm:$0xff]  ;;  %v1191_v18 = vld [vmem:[%s6754_s1 + $0x2400] sm:$0xff] }
  0xcd   :  { %1727 = vmatpush.msra.mxu0 %v1236_v20  ;;  %1767 = vmatpush.msra.mxu2 %v133_v21  ;;  %v43_v19 = vld [vmem:[%s6754_s1 + $0x20] sm:$0xff]  ;;  %v88_v20 = vld [vmem:[%s6754_s1 + $0x188] sm:$0xff] }
  0xce   :  { %1682 = vmatpush.msrb.mxu1 %v1047_v22  ;;  %1722 = vmatpush.msrb.mxu3 %v1143_v23  ;;  %v139_v21 = vld [vmem:[%s6754_s1 + $0x320] sm:$0xff]  ;;  %v325_v23 = vld [vmem:[%s6754_s1 + $0x8f0] sm:$0xff] }
  0xcf   :  { %1683 = vmatmul.f32.vlgmr.msrb.gmra.mxu1 %v35_v24  ;;  %1723 = vmatmul.f32.vlgmr.msrb.gmra.mxu3 %v37_v25  ;;  %v38_v22 = vld [vmem:[%s6755_s0 + $0xc0] sm:$0xff]  ;;  %v229_v24 = vld [vmem:[%s6754_s1 + $0x5f0] sm:$0xff]  ;;  %v40_v25 = vld [vmem:[%s6754_s1 + $0x8] sm:$0xff] }
  0xd0   :  { %1728 = vmatpush.msra.mxu0 %v1233_v26  ;;  %1747 = vmatpush.msra.mxu1 %v85_v27  ;;  %v136_v26 = vld [vmem:[%s6754_s1 + $0x308] sm:$0xff]  ;;  %v277_v27 = vld [vmem:[%s6754_s1 + $0x770] sm:$0xff] }
  0xd1   :  { %1768 = vmatpush.msra.mxu2 %v130_v28  ;;  %1787 = vmatpush.msra.mxu3 %v181_v29  ;;  %v226_v28 = vld [vmem:[%s6754_s1 + $0x5d8] sm:$0xff] }
  0xd2   :  { %1729 = vmatpush.msra.mxu0 %v1230_v30  ;;  %1748 = vmatpush.msra.mxu1 %v82_v31  ;;  %v322_v29 = vld [vmem:[%s6754_s1 + $0x8d8] sm:$0xff]  ;;  %v373_v30 = vld [vmem:[%s6754_s1 + $0xa70] sm:$0xff] }
  0xd3   :  { %1769 = vmatpush.msra.mxu2 %v127_v32  ;;  %1788 = vmatpush.msra.mxu3 %v178_v33  ;;  %v274_v31 = vld [vmem:[%s6754_s1 + $0x758] sm:$0xff]  ;;  %v223_v32 = vld [vmem:[%s6754_s1 + $0x5c0] sm:$0xff] }
  0xd4   :  { %1730 = vmatpush.msra.mxu0 %v1227_v34  ;;  %1749 = vmatpush.msra.mxu1 %v79_v35  ;;  %v319_v33 = vld [vmem:[%s6754_s1 + $0x8c0] sm:$0xff]  ;;  %v370_v34 = vld [vmem:[%s6754_s1 + $0xa58] sm:$0xff] }
  0xd5   :  { %1770 = vmatpush.msra.mxu2 %v124_v36  ;;  %1789 = vmatpush.msra.mxu3 %v175_v37  ;;  %v271_v35 = vld [vmem:[%s6754_s1 + $0x740] sm:$0xff]  ;;  %v220_v36 = vld [vmem:[%s6754_s1 + $0x5a8] sm:$0xff] }
  0xd6   :  { %1731 = vmatpush.msra.mxu0 %v1224_v38  ;;  %1750 = vmatpush.msra.mxu1 %v76_v39  ;;  %v316_v37 = vld [vmem:[%s6754_s1 + $0x8a8] sm:$0xff]  ;;  %v367_v38 = vld [vmem:[%s6754_s1 + $0xa40] sm:$0xff] }
  0xd7   :  { %1771 = vmatpush.msra.mxu2 %v121_v40  ;;  %1790 = vmatpush.msra.mxu3 %v172_v41  ;;  %v268_v39 = vld [vmem:[%s6754_s1 + $0x728] sm:$0xff]  ;;  %v217_v40 = vld [vmem:[%s6754_s1 + $0x590] sm:$0xff] }
  0xd8   :  { %1732 = vmatpush.msra.mxu0 %v1221_v42  ;;  %1751 = vmatpush.msra.mxu1 %v73_v43  ;;  %v313_v41 = vld [vmem:[%s6754_s1 + $0x890] sm:$0xff]  ;;  %v364_v42 = vld [vmem:[%s6754_s1 + $0xa28] sm:$0xff] }
  0xd9   :  { %1772 = vmatpush.msra.mxu2 %v118_v44  ;;  %1791 = vmatpush.msra.mxu3 %v169_v45  ;;  %v265_v43 = vld [vmem:[%s6754_s1 + $0x710] sm:$0xff]  ;;  %v214_v44 = vld [vmem:[%s6754_s1 + $0x578] sm:$0xff] }
  0xda   :  { %1733 = vmatpush.msra.mxu0 %v1218_v46  ;;  %1752 = vmatpush.msra.mxu1 %v70_v47  ;;  %v310_v45 = vld [vmem:[%s6754_s1 + $0x878] sm:$0xff]  ;;  %v361_v46 = vld [vmem:[%s6754_s1 + $0xa10] sm:$0xff] }
  0xdb   :  { %1773 = vmatpush.msra.mxu2 %v115_v48  ;;  %1792 = vmatpush.msra.mxu3 %v166_v49  ;;  %v262_v47 = vld [vmem:[%s6754_s1 + $0x6f8] sm:$0xff]  ;;  %v211_v48 = vld [vmem:[%s6754_s1 + $0x560] sm:$0xff] }
  0xdc   :  { %1734 = vmatpush.msra.mxu0 %v1215_v50  ;;  %1753 = vmatpush.msra.mxu1 %v67_v51  ;;  %v307_v49 = vld [vmem:[%s6754_s1 + $0x860] sm:$0xff]  ;;  %v358_v50 = vld [vmem:[%s6754_s1 + $0x9f8] sm:$0xff] }
  0xdd   :  { %1774 = vmatpush.msra.mxu2 %v112_v52  ;;  %1793 = vmatpush.msra.mxu3 %v163_v53  ;;  %v259_v51 = vld [vmem:[%s6754_s1 + $0x6e0] sm:$0xff]  ;;  %v208_v52 = vld [vmem:[%s6754_s1 + $0x548] sm:$0xff] }
  0xde   :  { %1735 = vmatpush.msra.mxu0 %v1212_v54  ;;  %1754 = vmatpush.msra.mxu1 %v64_v55  ;;  %v304_v53 = vld [vmem:[%s6754_s1 + $0x848] sm:$0xff]  ;;  %v355_v54 = vld [vmem:[%s6754_s1 + $0x9e0] sm:$0xff] }
  0xdf   :  { %1775 = vmatpush.msra.mxu2 %v109_v56  ;;  %1794 = vmatpush.msra.mxu3 %v160_v57  ;;  %v256_v55 = vld [vmem:[%s6754_s1 + $0x6c8] sm:$0xff]  ;;  %v205_v56 = vld [vmem:[%s6754_s1 + $0x530] sm:$0xff] }
  0xe0   :  { %1736 = vmatpush.msra.mxu0 %v1209_v58  ;;  %1755 = vmatpush.msra.mxu1 %v61_v59  ;;  %v301_v57 = vld [vmem:[%s6754_s1 + $0x830] sm:$0xff]  ;;  %v352_v58 = vld [vmem:[%s6754_s1 + $0x9c8] sm:$0xff] }
  0xe1   :  { %1776 = vmatpush.msra.mxu2 %v106_v60  ;;  %1795 = vmatpush.msra.mxu3 %v157_v61  ;;  %v253_v59 = vld [vmem:[%s6754_s1 + $0x6b0] sm:$0xff]  ;;  %v202_v60 = vld [vmem:[%s6754_s1 + $0x518] sm:$0xff] }
  0xe2   :  { %1737 = vmatpush.msra.mxu0 %v1206_v62  ;;  %1756 = vmatpush.msra.mxu1 %v58_v63  ;;  %v298_v61 = vld [vmem:[%s6754_s1 + $0x818] sm:$0xff]  ;;  %v349_v62 = vld [vmem:[%s6754_s1 + $0x9b0] sm:$0xff] }
  0xe3   :  { %1777 = vmatpush.msra.mxu2 %v103_v0  ;;  %1796 = vmatpush.msra.mxu3 %v154_v1  ;;  %v250_v63 = vld [vmem:[%s6754_s1 + $0x698] sm:$0xff]  ;;  %v199_v0 = vld [vmem:[%s6754_s1 + $0x500] sm:$0xff] }
  0xe4   :  { %1738 = vmatpush.msra.mxu0 %v1203_v2  ;;  %1757 = vmatpush.msra.mxu1 %v55_v3  ;;  %v295_v1 = vld [vmem:[%s6754_s1 + $0x800] sm:$0xff]  ;;  %v346_v2 = vld [vmem:[%s6754_s1 + $0x998] sm:$0xff] }
  0xe5   :  { %1778 = vmatpush.msra.mxu2 %v100_v4  ;;  %1797 = vmatpush.msra.mxu3 %v151_v5  ;;  %v247_v3 = vld [vmem:[%s6754_s1 + $0x680] sm:$0xff]  ;;  %v196_v4 = vld [vmem:[%s6754_s1 + $0x4e8] sm:$0xff] }
  0xe6   :  { %1739 = vmatpush.msra.mxu0 %v1200_v6  ;;  %1758 = vmatpush.msra.mxu1 %v52_v7  ;;  %v292_v5 = vld [vmem:[%s6754_s1 + $0x7e8] sm:$0xff]  ;;  %v343_v6 = vld [vmem:[%s6754_s1 + $0x980] sm:$0xff] }
  0xe7   :  { %1779 = vmatpush.msra.mxu2 %v97_v8  ;;  %1798 = vmatpush.msra.mxu3 %v148_v9  ;;  %v244_v7 = vld [vmem:[%s6754_s1 + $0x668] sm:$0xff]  ;;  %v193_v8 = vld [vmem:[%s6754_s1 + $0x4d0] sm:$0xff] }
  0xe8   :  { %1740 = vmatpush.msra.mxu0 %v1197_v10  ;;  %1759 = vmatpush.msra.mxu1 %v49_v11  ;;  %v289_v9 = vld [vmem:[%s6754_s1 + $0x7d0] sm:$0xff]  ;;  %v340_v10 = vld [vmem:[%s6754_s1 + $0x968] sm:$0xff] }
  0xe9   :  { %1780 = vmatpush.msra.mxu2 %v94_v12  ;;  %1799 = vmatpush.msra.mxu3 %v145_v13  ;;  %v241_v11 = vld [vmem:[%s6754_s1 + $0x650] sm:$0xff]  ;;  %v190_v12 = vld [vmem:[%s6754_s1 + $0x4b8] sm:$0xff] }
  0xea   :  { %1741 = vmatpush.msra.mxu0 %v1194_v14  ;;  %1760 = vmatpush.msra.mxu1 %v46_v15  ;;  %v286_v13 = vld [vmem:[%s6754_s1 + $0x7b8] sm:$0xff]  ;;  %v337_v14 = vld [vmem:[%s6754_s1 + $0x950] sm:$0xff] }
  0xeb   :  { %1781 = vmatpush.msra.mxu2 %v91_v16  ;;  %1800 = vmatpush.msra.mxu3 %v142_v17  ;;  %v238_v15 = vld [vmem:[%s6754_s1 + $0x638] sm:$0xff]  ;;  %v187_v16 = vld [vmem:[%s6754_s1 + $0x4a0] sm:$0xff] }
  0xec   :  { %1742 = vmatpush.msra.mxu0 %v1191_v18  ;;  %1761 = vmatpush.msra.mxu1 %v43_v19  ;;  %v283_v17 = vld [vmem:[%s6754_s1 + $0x7a0] sm:$0xff]  ;;  %v334_v18 = vld [vmem:[%s6754_s1 + $0x938] sm:$0xff] }
  0xed   :  { %1782 = vmatpush.msra.mxu2 %v88_v20  ;;  %1801 = vmatpush.msra.mxu3 %v139_v21  ;;  %v235_v19 = vld [vmem:[%s6754_s1 + $0x620] sm:$0xff]  ;;  %v184_v20 = vld [vmem:[%s6754_s1 + $0x488] sm:$0xff] }
  0xee   :  { %1743 = vmatmul.f32.vlgmr.msra.gmra.mxu0 %v38_v22  ;;  %1762 = vmatpush.msra.mxu1 %v40_v25  ;;  %v280_v21 = vld [vmem:[%s6754_s1 + $0x788] sm:$0xff]  ;;  %v331_v22 = vld [vmem:[%s6754_s1 + $0x920] sm:$0xff] }
  0xef   :  { %1847 = vmatpush.msrb.mxu2 %v325_v23  ;;  %1807 = vmatpush.msrb.mxu0 %v229_v24  ;;  %v421_v23 = vld [vmem:[%s6754_s1 + $0xbf0] sm:$0xff]  ;;  %v232_v25 = vld [vmem:[%s6754_s1 + $0x608] sm:$0xff] }
  0xf0   :  { %1802 = vmatpush.msra.mxu3 %v136_v26  ;;  %1827 = vmatpush.msrb.mxu1 %v277_v27  ;;  %v517_v24 = vld [vmem:[%s6754_s1 + $0xef0] sm:$0xff]  ;;  %v328_v26 = vld [vmem:[%s6754_s1 + $0x908] sm:$0xff] }
  0xf1   :  { %1808 = vmatpush.msrb.mxu0 %v226_v28  ;;  %1848 = vmatpush.msrb.mxu2 %v322_v29  ;;  %v2823_v27 = vld [vmem:[%s6755_s0 + $0x8] sm:$0xff]  ;;  %v418_v28 = vld [vmem:[%s6754_s1 + $0xbd8] sm:$0xff]  ;;  %v469_v29 = vld [vmem:[%s6754_s1 + $0xd70] sm:$0xff] }
  0xf2   :  { %1867 = vmatpush.msrb.mxu3 %v373_v30  ;;  %1828 = vmatpush.msrb.mxu1 %v274_v31  ;;  %v514_v30 = vld [vmem:[%s6754_s1 + $0xed8] sm:$0xff]  ;;  %v565_v31 = vld [vmem:[%s6754_s1 + $0x1070] sm:$0xff] }
  0xf3   :  { %1809 = vmatpush.msrb.mxu0 %v223_v32  ;;  %1849 = vmatpush.msrb.mxu2 %v319_v33  ;;  %v2824_v32 = vld [vmem:[%s6755_s0] sm:$0xff]  ;;  %v2825_v33 = vld [vmem:[%s6755_s0 + $0x10] sm:$0xff] }
  0xf4   :  { %1868 = vmatpush.msrb.mxu3 %v370_v34  ;;  %1829 = vmatpush.msrb.mxu1 %v271_v35  ;;  %v415_v34 = vld [vmem:[%s6754_s1 + $0xbc0] sm:$0xff]  ;;  %v466_v35 = vld [vmem:[%s6754_s1 + $0xd58] sm:$0xff] }
  0xf5   :  { %1810 = vmatpush.msrb.mxu0 %v220_v36  ;;  %1850 = vmatpush.msrb.mxu2 %v316_v37  ;;  %v511_v36 = vld [vmem:[%s6754_s1 + $0xec0] sm:$0xff]  ;;  %v562_v37 = vld [vmem:[%s6754_s1 + $0x1058] sm:$0xff] }
  0xf6   :  { %1869 = vmatpush.msrb.mxu3 %v367_v38  ;;  %1830 = vmatpush.msrb.mxu1 %v268_v39  ;;  %v412_v38 = vld [vmem:[%s6754_s1 + $0xba8] sm:$0xff]  ;;  %v463_v39 = vld [vmem:[%s6754_s1 + $0xd40] sm:$0xff] }
  0xf7   :  { %1811 = vmatpush.msrb.mxu0 %v217_v40  ;;  %1851 = vmatpush.msrb.mxu2 %v313_v41  ;;  %v508_v40 = vld [vmem:[%s6754_s1 + $0xea8] sm:$0xff]  ;;  %v559_v41 = vld [vmem:[%s6754_s1 + $0x1040] sm:$0xff] }
  0xf8   :  { %1870 = vmatpush.msrb.mxu3 %v364_v42  ;;  %1831 = vmatpush.msrb.mxu1 %v265_v43  ;;  %v409_v42 = vld [vmem:[%s6754_s1 + $0xb90] sm:$0xff]  ;;  %v460_v43 = vld [vmem:[%s6754_s1 + $0xd28] sm:$0xff] }
  0xf9   :  { %1812 = vmatpush.msrb.mxu0 %v214_v44  ;;  %1852 = vmatpush.msrb.mxu2 %v310_v45  ;;  %v505_v44 = vld [vmem:[%s6754_s1 + $0xe90] sm:$0xff]  ;;  %v1239_v45 = vld [vmem:[%s6756_s2] sm:$0x7] }
  0xfa   :  { %1871 = vmatpush.msrb.mxu3 %v361_v46  ;;  %1832 = vmatpush.msrb.mxu1 %v262_v47  ;;  %v556_v46 = vld [vmem:[%s6754_s1 + $0x1028] sm:$0xff] }
  0xfb   :  { %1813 = vmatpush.msrb.mxu0 %v211_v48  ;;  %1853 = vmatpush.msrb.mxu2 %v307_v49  ;;  %v2826_v47 = vld [vmem:[%s6755_s0 + $0x28] sm:$0xff]  ;;  %v406_v48 = vld [vmem:[%s6754_s1 + $0xb78] sm:$0xff]  ;;  %v457_v49 = vld [vmem:[%s6754_s1 + $0xd10] sm:$0xff] }
  0xfc   :  { %1872 = vmatpush.msrb.mxu3 %v358_v50  ;;  %1833 = vmatpush.msrb.mxu1 %v259_v51  ;;  %v502_v50 = vld [vmem:[%s6754_s1 + $0xe78] sm:$0xff]  ;;  %v1241_v51 = vperm.slane %v1239_v45, 0  ;;  %v424_v45 = vld [vmem:[%s6754_s1 + $0xc08] sm:$0xff] }
  0xfd   :  { %1814 = vmatpush.msrb.mxu0 %v208_v52  ;;  %1854 = vmatpush.msrb.mxu2 %v304_v53  ;;  %v2827_v52 = vld [vmem:[%s6755_s0 + $0x18] sm:$0xff]  ;;  %v553_v53 = vld [vmem:[%s6754_s1 + $0x1010] sm:$0xff] }
  0xfe   :  { %1873 = vmatpush.msrb.mxu3 %v355_v54  ;;  %1834 = vmatpush.msrb.mxu1 %v256_v55  ;;  %v1264_v54 = vpop.f32.mrf.mxu0  ;;  %v2828_v55 = vld [vmem:[%s6755_s0 + $0x30] sm:$0xff] }
  0xff   :  { %1815 = vmatpush.msrb.mxu0 %v205_v56  ;;  %1855 = vmatpush.msrb.mxu2 %v301_v57  ;;  %v403_v56 = vld [vmem:[%s6754_s1 + $0xb60] sm:$0xff]  ;;  %v454_v57 = vld [vmem:[%s6754_s1 + $0xcf8] sm:$0xff] }
 0x100   :  { %1874 = vmatpush.msrb.mxu3 %v352_v58  ;;  %1835 = vmatpush.msrb.mxu1 %v253_v59  ;;  %v499_v58 = vld [vmem:[%s6754_s1 + $0xe60] sm:$0xff]  ;;  %v550_v59 = vld [vmem:[%s6754_s1 + $0xff8] sm:$0xff] }
 0x101   :  { %1816 = vmatpush.msrb.mxu0 %v202_v60  ;;  %1856 = vmatpush.msrb.mxu2 %v298_v61  ;;  %v2829_v60 = vld [vmem:[%s6755_s0 + $0x20] sm:$0xff]  ;;  %v400_v61 = vld [vmem:[%s6754_s1 + $0xb48] sm:$0xff] }
 0x102   :  { %1875 = vmatpush.msrb.mxu3 %v349_v62  ;;  %1836 = vmatpush.msrb.mxu1 %v250_v63  ;;  %v451_v62 = vld [vmem:[%s6754_s1 + $0xce0] sm:$0xff]  ;;  %v1265_v63 = vadd.f32 %v1264_v54, %v1241_v51  ;;  %v610_v51 = vld [vmem:[%s6754_s1 + $0x11d8] sm:$0xff]  ;;  %v757_v54 = vld [vmem:[%s6754_s1 + $0x1670] sm:$0xff] }
 0x103   :  { %1817 = vmatpush.msrb.mxu0 %v199_v0  ;;  %1857 = vmatpush.msrb.mxu2 %v295_v1  ;;  %v496_v0 = vld [vmem:[%s6754_s1 + $0xe48] sm:$0xff]  ;;  %v547_v1 = vld [vmem:[%s6754_s1 + $0xfe0] sm:$0xff] }
 0x104   :  { %1876 = vmatpush.msrb.mxu3 %v346_v2  ;;  %1837 = vmatpush.msrb.mxu1 %v247_v3  ;;  %v1284_v2 = vpop.f32.mrf.mxu1  ;;  %v397_v3 = vld [vmem:[%s6754_s1 + $0xb30] sm:$0xff] }
 0x105   :  { %1818 = vmatpush.msrb.mxu0 %v196_v4  ;;  %1858 = vmatpush.msrb.mxu2 %v292_v5  ;;  %v448_v4 = vld [vmem:[%s6754_s1 + $0xcc8] sm:$0xff]  ;;  %v493_v5 = vld [vmem:[%s6754_s1 + $0xe30] sm:$0xff] }
 0x106   :  { %1877 = vmatpush.msrb.mxu3 %v343_v6  ;;  %1838 = vmatpush.msrb.mxu1 %v244_v7  ;;  %v544_v6 = vld [vmem:[%s6754_s1 + $0xfc8] sm:$0xff]  ;;  %v394_v7 = vld [vmem:[%s6754_s1 + $0xb18] sm:$0xff] }
 0x107   :  { %1819 = vmatpush.msrb.mxu0 %v193_v8  ;;  %1859 = vmatpush.msrb.mxu2 %v289_v9  ;;  %v445_v8 = vld [vmem:[%s6754_s1 + $0xcb0] sm:$0xff]  ;;  %v1285_v9 = vadd.f32 %v1284_v2, %v1265_v63  ;;  %v604_v63 = vld [vmem:[%s6754_s1 + $0x11a8] sm:$0xff]  ;;  %v751_v2 = vld [vmem:[%s6754_s1 + $0x1640] sm:$0xff] }
 0x108   :  { %1878 = vmatpush.msrb.mxu3 %v340_v10  ;;  %1839 = vmatpush.msrb.mxu1 %v241_v11  ;;  %v490_v10 = vld [vmem:[%s6754_s1 + $0xe18] sm:$0xff]  ;;  %v541_v11 = vld [vmem:[%s6754_s1 + $0xfb0] sm:$0xff] }
 0x109   :  { %1820 = vmatpush.msrb.mxu0 %v190_v12  ;;  %1860 = vmatpush.msrb.mxu2 %v286_v13  ;;  %v1304_v12 = vpop.f32.mrf.mxu2  ;;  %v391_v13 = vld [vmem:[%s6754_s1 + $0xb00] sm:$0xff] }
 0x10a   :  { %1879 = vmatpush.msrb.mxu3 %v337_v14  ;;  %1840 = vmatpush.msrb.mxu1 %v238_v15  ;;  %v442_v14 = vld [vmem:[%s6754_s1 + $0xc98] sm:$0xff]  ;;  %v487_v15 = vld [vmem:[%s6754_s1 + $0xe00] sm:$0xff] }
 0x10b   :  { %1821 = vmatpush.msrb.mxu0 %v187_v16  ;;  %1861 = vmatpush.msrb.mxu2 %v283_v17  ;;  %v538_v16 = vld [vmem:[%s6754_s1 + $0xf98] sm:$0xff]  ;;  %v388_v17 = vld [vmem:[%s6754_s1 + $0xae8] sm:$0xff] }
 0x10c   :  { %1880 = vmatpush.msrb.mxu3 %v334_v18  ;;  %1841 = vmatpush.msrb.mxu1 %v235_v19  ;;  %v439_v18 = vld [vmem:[%s6754_s1 + $0xc80] sm:$0xff]  ;;  %v1305_v19 = vadd.f32 %v1304_v12, %v1285_v9  ;;  %v598_v9 = vld [vmem:[%s6754_s1 + $0x1178] sm:$0xff] }
 0x10d   :  { %1822 = vmatpush.msrb.mxu0 %v184_v20  ;;  %1862 = vmatpush.msrb.mxu2 %v280_v21  ;;  %v484_v20 = vld [vmem:[%s6754_s1 + $0xde8] sm:$0xff]  ;;  %v535_v21 = vld [vmem:[%s6754_s1 + $0xf80] sm:$0xff]  ;;  %v694_v12 = vld [vmem:[%s6754_s1 + $0x1478] sm:$0xff] }
 0x10e   :  { %1881 = vmatpush.msrb.mxu3 %v331_v22  ;;  %1783 = vmatmul.f32.vlgmr.msra.gmra.mxu2 %v2823_v27  ;;  %v1324_v22 = vpop.f32.mrf.mxu3  ;;  %v382_v27 = vld [vmem:[%s6754_s1 + $0xab8] sm:$0xff] }
 0x10f   :  { %1887 = vmatpush.msra.mxu0 %v421_v23  ;;  %1927 = vmatpush.msra.mxu2 %v517_v24  ;;  %v385_v23 = vld [vmem:[%s6754_s1 + $0xad0] sm:$0xff]  ;;  %v436_v24 = vld [vmem:[%s6754_s1 + $0xc68] sm:$0xff] }
 0x110   :  { %1842 = vmatpush.msrb.mxu1 %v232_v25  ;;  %1882 = vmatpush.msrb.mxu3 %v328_v26  ;;  %v481_v25 = vld [vmem:[%s6754_s1 + $0xdd0] sm:$0xff]  ;;  %v532_v26 = vld [vmem:[%s6754_s1 + $0xf68] sm:$0xff] }
 0x111   :  { %1763 = vmatmul.f32.vlgmr.msra.gmra.mxu1 %v2824_v32  ;;  %1803 = vmatmul.f32.vlgmr.msra.gmra.mxu3 %v2825_v33  ;;  %v1344_v32 = vpop.f32.mrf.mxu0  ;;  %v379_v33 = vld [vmem:[%s6754_s1 + $0xaa0] sm:$0xff] }
 0x112   :  { %1888 = vmatpush.msra.mxu0 %v418_v28  ;;  %1907 = vmatpush.msra.mxu1 %v469_v29  ;;  %v433_v28 = vld [vmem:[%s6754_s1 + $0xc50] sm:$0xff]  ;;  %v1325_v29 = vadd.f32 %v1324_v22, %v1305_v19 }
 0x113   :  { %1928 = vmatpush.msra.mxu2 %v514_v30  ;;  %1947 = vmatpush.msra.mxu3 %v565_v31  ;;  %v478_v30 = vld [vmem:[%s6754_s1 + $0xdb8] sm:$0xff]  ;;  %v529_v31 = vld [vmem:[%s6754_s1 + $0xf50] sm:$0xff] }
 0x114   :  { %1889 = vmatpush.msra.mxu0 %v415_v34  ;;  %1908 = vmatpush.msra.mxu1 %v466_v35  ;;  %v430_v34 = vld [vmem:[%s6754_s1 + $0xc38] sm:$0xff]  ;;  %v475_v35 = vld [vmem:[%s6754_s1 + $0xda0] sm:$0xff] }
 0x115   :  { %1929 = vmatpush.msra.mxu2 %v511_v36  ;;  %1948 = vmatpush.msra.mxu3 %v562_v37  ;;  %v526_v36 = vld [vmem:[%s6754_s1 + $0xf38] sm:$0xff]  ;;  %v376_v37 = vld [vmem:[%s6754_s1 + $0xa88] sm:$0xff] }
 0x116   :  { %1890 = vmatpush.msra.mxu0 %v412_v38  ;;  %1909 = vmatpush.msra.mxu1 %v463_v39  ;;  %v427_v38 = vld [vmem:[%s6754_s1 + $0xc20] sm:$0xff]  ;;  %v1345_v39 = vadd.f32 %v1344_v32, %v1325_v29  ;;  %v736_v29 = vld [vmem:[%s6754_s1 + $0x15c8] sm:$0xff]  ;;  %v637_v32 = vld [vmem:[%s6754_s1 + $0x12b0] sm:$0xff] }
 0x117   :  { %1930 = vmatpush.msra.mxu2 %v508_v40  ;;  %1949 = vmatpush.msra.mxu3 %v559_v41  ;;  %v472_v40 = vld [vmem:[%s6754_s1 + $0xd88] sm:$0xff]  ;;  %v523_v41 = vld [vmem:[%s6754_s1 + $0xf20] sm:$0xff] }
 0x118   :  { %1863 = vmatmul.f32.vlgmr.msrb.gmra.mxu2 %v2826_v47  ;;  %1891 = vmatpush.msra.mxu0 %v409_v42  ;;  %v1364_v42 = vpop.f32.mrf.mxu1 }
 0x119   :  { %1910 = vmatpush.msra.mxu1 %v460_v43  ;;  %1931 = vmatpush.msra.mxu2 %v505_v44  ;;  %v613_v43 = vld [vmem:[%s6754_s1 + $0x11f0] sm:$0xff]  ;;  %v1365_v47 = vadd.f32 %v1364_v42, %v1345_v39  ;;  %v679_v39 = vld [vmem:[%s6754_s1 + $0x1400] sm:$0xff] }
 0x11a   :  { %1950 = vmatpush.msra.mxu3 %v556_v46  ;;  %1823 = vmatmul.f32.vlgmr.msrb.gmra.mxu0 %v2827_v52  ;;  %v709_v44 = vld [vmem:[%s6754_s1 + $0x14f0] sm:$0xff]  ;;  %v520_v46 = vld [vmem:[%s6754_s1 + $0xf08] sm:$0xff]  ;;  %v631_v42 = vld [vmem:[%s6754_s1 + $0x1280] sm:$0xff] }
 0x11b   :  { %1883 = vmatmul.f32.vlgmr.msrb.gmra.mxu3 %v2828_v55  ;;  %1892 = vmatpush.msra.mxu0 %v406_v48  ;;  %v2830_v48 = vld [vmem:[%s6755_s0 + $0x38] sm:$0xff]  ;;  %v661_v52 = vld [vmem:[%s6754_s1 + $0x1370] sm:$0xff]  ;;  %v2832_v55 = vld [vmem:[%s6755_s0 + $0x40] sm:$0xff] }
 0x11c   :  { %1911 = vmatpush.msra.mxu1 %v457_v49  ;;  %1932 = vmatpush.msra.mxu2 %v502_v50  ;;  %v2831_v49 = vld [vmem:[%s6755_s0 + $0x48] sm:$0xff]  ;;  %v1384_v50 = vpop.f32.mrf.mxu2 }
 0x11d   :  { %1951 = vmatpush.msra.mxu3 %v553_v53  ;;  %1843 = vmatmul.f32.vlgmr.msrb.gmra.mxu1 %v2829_v60  ;;  %v706_v53 = vld [vmem:[%s6754_s1 + $0x14d8] sm:$0xff]  ;;  %v703_v60 = vld [vmem:[%s6754_s1 + $0x14c0] sm:$0xff] }
 0x11e   :  { %1893 = vmatpush.msra.mxu0 %v403_v56  ;;  %1912 = vmatpush.msra.mxu1 %v454_v57  ;;  %v2833_v56 = vld [vmem:[%s6755_s0 + $0x50] sm:$0xff]  ;;  %v607_v57 = vld [vmem:[%s6754_s1 + $0x11c0] sm:$0xff] }
 0x11f   :  { %1933 = vmatpush.msra.mxu2 %v499_v58  ;;  %1952 = vmatpush.msra.mxu3 %v550_v59  ;;  %v658_v58 = vld [vmem:[%s6754_s1 + $0x1358] sm:$0xff]  ;;  %v1385_v59 = vadd.f32 %v1384_v50, %v1365_v47  ;;  %v577_v47 = vld [vmem:[%s6754_s1 + $0x10d0] sm:$0xff]  ;;  %v724_v50 = vld [vmem:[%s6754_s1 + $0x1568] sm:$0xff] }
 0x120   :  { %1894 = vmatpush.msra.mxu0 %v400_v61  ;;  %1913 = vmatpush.msra.mxu1 %v451_v62  ;;  %v754_v61 = vld [vmem:[%s6754_s1 + $0x1658] sm:$0xff]  ;;  %v1404_v62 = vpop.f32.mrf.mxu3 }
 0x121   :  { %1934 = vmatpush.msra.mxu2 %v496_v0  ;;  %1953 = vmatpush.msra.mxu3 %v547_v1  ;;  %v655_v0 = vld [vmem:[%s6754_s1 + $0x1340] sm:$0xff]  ;;  %v700_v1 = vld [vmem:[%s6754_s1 + $0x14a8] sm:$0xff] }
 0x122   :  { %1895 = vmatpush.msra.mxu0 %v397_v3  ;;  %1914 = vmatpush.msra.mxu1 %v448_v4  ;;  %v1424_v3 = vpop.f32.mrf.mxu0  ;;  %v601_v4 = vld [vmem:[%s6754_s1 + $0x1190] sm:$0xff] }
 0x123   :  { %1935 = vmatpush.msra.mxu2 %v493_v5  ;;  %1954 = vmatpush.msra.mxu3 %v544_v6  ;;  %v652_v5 = vld [vmem:[%s6754_s1 + $0x1328] sm:$0xff]  ;;  %v1405_v6 = vadd.f32 %v1404_v62, %v1385_v59 }
 0x124   :  { %1896 = vmatpush.msra.mxu0 %v394_v7  ;;  %1915 = vmatpush.msra.mxu1 %v445_v8  ;;  %v697_v7 = vld [vmem:[%s6754_s1 + $0x1490] sm:$0xff]  ;;  %v748_v8 = vld [vmem:[%s6754_s1 + $0x1628] sm:$0xff]  ;;  %v1464_v19 = vpop.f32.mrf.mxu2 }
 0x125   :  { %1936 = vmatpush.msra.mxu2 %v490_v10  ;;  %1955 = vmatpush.msra.mxu3 %v541_v11  ;;  %v649_v10 = vld [vmem:[%s6754_s1 + $0x1310] sm:$0xff]  ;;  %v1425_v11 = vadd.f32 %v1424_v3, %v1405_v6 }
 0x126   :  { %1897 = vmatpush.msra.mxu0 %v391_v13  ;;  %1916 = vmatpush.msra.mxu1 %v442_v14  ;;  %v745_v13 = vld [vmem:[%s6754_s1 + $0x1610] sm:$0xff]  ;;  %v1444_v14 = vpop.f32.mrf.mxu1 }
 0x127   :  { %1937 = vmatpush.msra.mxu2 %v487_v15  ;;  %1956 = vmatpush.msra.mxu3 %v538_v16  ;;  %v595_v15 = vld [vmem:[%s6754_s1 + $0x1160] sm:$0xff]  ;;  %v646_v16 = vld [vmem:[%s6754_s1 + $0x12f8] sm:$0xff]  ;;  %v1445_v22 = vadd.f32 %v1444_v14, %v1425_v11  ;;  %v901_v6 = vld [vmem:[%s6754_s1 + $0x1af0] sm:$0xff] }
 0x128   :  { %1898 = vmatpush.msra.mxu0 %v388_v17  ;;  %1917 = vmatpush.msra.mxu1 %v439_v18  ;;  %v691_v17 = vld [vmem:[%s6754_s1 + $0x1460] sm:$0xff]  ;;  %v742_v18 = vld [vmem:[%s6754_s1 + $0x15f8] sm:$0xff]  ;;  %v2835_v11 = vld [vmem:[%s6755_s0 + $0x68] sm:$0xff] }
 0x129   :  { %1938 = vmatpush.msra.mxu2 %v484_v20  ;;  %1957 = vmatpush.msra.mxu3 %v535_v21  ;;  %v592_v20 = vld [vmem:[%s6754_s1 + $0x1148] sm:$0xff]  ;;  %v643_v21 = vld [vmem:[%s6754_s1 + $0x12e0] sm:$0xff]  ;;  %v853_v14 = vld [vmem:[%s6754_s1 + $0x1970] sm:$0xff] }
 0x12a   :  { %1899 = vmatpush.msra.mxu0 %v385_v23  ;;  %1918 = vmatpush.msra.mxu1 %v436_v24  ;;  %v688_v23 = vld [vmem:[%s6754_s1 + $0x1448] sm:$0xff]  ;;  %v739_v24 = vld [vmem:[%s6754_s1 + $0x15e0] sm:$0xff] }
 0x12b   :  { %1939 = vmatpush.msra.mxu2 %v481_v25  ;;  %1958 = vmatpush.msra.mxu3 %v532_v26  ;;  %v589_v25 = vld [vmem:[%s6754_s1 + $0x1130] sm:$0xff]  ;;  %v640_v26 = vld [vmem:[%s6754_s1 + $0x12c8] sm:$0xff] }
 0x12c   :  { %1900 = vmatpush.msra.mxu0 %v382_v27  ;;  %1919 = vmatpush.msra.mxu1 %v433_v28  ;;  %v1465_v27 = vadd.f32 %v1464_v19, %v1445_v22  ;;  %v685_v28 = vld [vmem:[%s6754_s1 + $0x1430] sm:$0xff] }
 0x12d   :  { %1940 = vmatpush.msra.mxu2 %v478_v30  ;;  %1959 = vmatpush.msra.mxu3 %v529_v31  ;;  %v1484_v30 = vpop.f32.mrf.mxu3  ;;  %v586_v31 = vld [vmem:[%s6754_s1 + $0x1118] sm:$0xff]  ;;  %v2837_v19 = vld [vmem:[%s6755_s0 + $0x70] sm:$0xff] }
 0x12e   :  { %1901 = vmatpush.msra.mxu0 %v379_v33  ;;  %1920 = vmatpush.msra.mxu1 %v430_v34  ;;  %v682_v33 = vld [vmem:[%s6754_s1 + $0x1418] sm:$0xff]  ;;  %v733_v34 = vld [vmem:[%s6754_s1 + $0x15b0] sm:$0xff] }
 0x12f   :  { %1941 = vmatpush.msra.mxu2 %v475_v35  ;;  %1960 = vmatpush.msra.mxu3 %v526_v36  ;;  %v1504_v35 = vpop.f32.mrf.mxu0  ;;  %v583_v36 = vld [vmem:[%s6754_s1 + $0x1100] sm:$0xff] }
 0x130   :  { %1902 = vmatpush.msra.mxu0 %v376_v37  ;;  %1921 = vmatpush.msra.mxu1 %v427_v38  ;;  %v634_v37 = vld [vmem:[%s6754_s1 + $0x1298] sm:$0xff]  ;;  %v1485_v38 = vadd.f32 %v1484_v30, %v1465_v27 }
 0x131   :  { %1942 = vmatpush.msra.mxu2 %v472_v40  ;;  %1961 = vmatpush.msra.mxu3 %v523_v41  ;;  %v730_v40 = vld [vmem:[%s6754_s1 + $0x1598] sm:$0xff]  ;;  %v580_v41 = vld [vmem:[%s6754_s1 + $0x10e8] sm:$0xff] }
 0x132   :  { %1903 = vmatmul.f32.vlgmr.msra.gmra.mxu0 %v2830_v48  ;;  %1943 = vmatmul.f32.vlgmr.msra.gmra.mxu2 %v2831_v49  ;;  %v628_v48 = vld [vmem:[%s6754_s1 + $0x1268] sm:$0xff]  ;;  %v673_v49 = vld [vmem:[%s6754_s1 + $0x13d0] sm:$0xff] }
 0x133   :  { %1967 = vmatpush.msrb.mxu0 %v613_v43  ;;  %2007 = vmatpush.msrb.mxu2 %v709_v44  ;;  %v1505_v43 = vadd.f32 %v1504_v35, %v1485_v38  ;;  %v676_v44 = vld [vmem:[%s6754_s1 + $0x13e8] sm:$0xff] }
 0x134   :  { %1922 = vmatpush.msra.mxu1 %v424_v45  ;;  %1962 = vmatpush.msra.mxu3 %v520_v46  ;;  %v727_v45 = vld [vmem:[%s6754_s1 + $0x1580] sm:$0xff]  ;;  %v1524_v46 = vpop.f32.mrf.mxu1 }
 0x135   :  { %1923 = vmatmul.f32.vlgmr.msra.gmra.mxu1 %v2832_v55  ;;  %1963 = vmatmul.f32.vlgmr.msra.gmra.mxu3 %v2833_v56  ;;  %v670_v55 = vld [vmem:[%s6754_s1 + $0x13b8] sm:$0xff]  ;;  %v721_v56 = vld [vmem:[%s6754_s1 + $0x1550] sm:$0xff]  ;;  %v1564_v62 = vpop.f32.mrf.mxu3 }
 0x136   :  { %1968 = vmatpush.msrb.mxu0 %v610_v51  ;;  %1987 = vmatpush.msrb.mxu1 %v661_v52  ;;  %v1544_v51 = vpop.f32.mrf.mxu2  ;;  %v574_v52 = vld [vmem:[%s6754_s1 + $0x10b8] sm:$0xff] }
 0x137   :  { %2008 = vmatpush.msrb.mxu2 %v706_v53  ;;  %2027 = vmatpush.msrb.mxu3 %v757_v54  ;;  %v625_v53 = vld [vmem:[%s6754_s1 + $0x1250] sm:$0xff]  ;;  %v1525_v54 = vadd.f32 %v1524_v46, %v1505_v43  ;;  %v1584_v3 = vpop.f32.mrf.mxu0 }
 0x138   :  { %1969 = vmatpush.msrb.mxu0 %v607_v57  ;;  %1988 = vmatpush.msrb.mxu1 %v658_v58  ;;  %v571_v57 = vld [vmem:[%s6754_s1 + $0x10a0] sm:$0xff]  ;;  %v622_v58 = vld [vmem:[%s6754_s1 + $0x1238] sm:$0xff] }
 0x139   :  { %2009 = vmatpush.msrb.mxu2 %v703_v60  ;;  %2028 = vmatpush.msrb.mxu3 %v754_v61  ;;  %v1545_v59 = vadd.f32 %v1544_v51, %v1525_v54  ;;  %v667_v60 = vld [vmem:[%s6754_s1 + $0x13a0] sm:$0xff]  ;;  %v718_v61 = vld [vmem:[%s6754_s1 + $0x1538] sm:$0xff] }
 0x13a   :  { %1970 = vmatpush.msrb.mxu0 %v604_v63  ;;  %1989 = vmatpush.msrb.mxu1 %v655_v0  ;;  %v568_v63 = vld [vmem:[%s6754_s1 + $0x1088] sm:$0xff]  ;;  %v619_v0 = vld [vmem:[%s6754_s1 + $0x1220] sm:$0xff] }
 0x13b   :  { %2010 = vmatpush.msrb.mxu2 %v700_v1  ;;  %2029 = vmatpush.msrb.mxu3 %v751_v2  ;;  %v664_v1 = vld [vmem:[%s6754_s1 + $0x1388] sm:$0xff]  ;;  %v715_v2 = vld [vmem:[%s6754_s1 + $0x1520] sm:$0xff] }
 0x13c   :  { %1971 = vmatpush.msrb.mxu0 %v601_v4  ;;  %1990 = vmatpush.msrb.mxu1 %v652_v5  ;;  %v1565_v4 = vadd.f32 %v1564_v62, %v1545_v59  ;;  %v805_v5 = vld [vmem:[%s6754_s1 + $0x17f0] sm:$0xff] }
 0x13d   :  { %2011 = vmatpush.msrb.mxu2 %v697_v7  ;;  %2030 = vmatpush.msrb.mxu3 %v748_v8  ;;  %v616_v7 = vld [vmem:[%s6754_s1 + $0x1208] sm:$0xff]  ;;  %v1644_v30 = vpop.f32.mrf.mxu3 }
 0x13e   :  { %1972 = vmatpush.msrb.mxu0 %v598_v9  ;;  %1991 = vmatpush.msrb.mxu1 %v649_v10  ;;  %v712_v8 = vld [vmem:[%s6754_s1 + $0x1508] sm:$0xff]  ;;  %v1585_v9 = vadd.f32 %v1584_v3, %v1565_v4  ;;  %v2834_v10 = vld [vmem:[%s6755_s0 + $0x58] sm:$0xff]  ;;  %v823_v4 = vld [vmem:[%s6754_s1 + $0x1880] sm:$0xff] }
 0x13f   :  { %2012 = vmatpush.msrb.mxu2 %v694_v12  ;;  %2031 = vmatpush.msrb.mxu3 %v745_v13  ;;  %v1604_v12 = vpop.f32.mrf.mxu1  ;;  %v802_v13 = vld [vmem:[%s6754_s1 + $0x17d8] sm:$0xff]  ;;  %v772_v3 = vld [vmem:[%s6754_s1 + $0x16e8] sm:$0xff] }
 0x140   :  { %1973 = vmatpush.msrb.mxu0 %v595_v15  ;;  %1992 = vmatpush.msrb.mxu1 %v646_v16  ;;  %v898_v15 = vld [vmem:[%s6754_s1 + $0x1ad8] sm:$0xff]  ;;  %v949_v16 = vld [vmem:[%s6754_s1 + $0x1c70] sm:$0xff]  ;;  %v1605_v22 = vadd.f32 %v1604_v12, %v1585_v9  ;;  %v820_v9 = vld [vmem:[%s6754_s1 + $0x1868] sm:$0xff] }
 0x141   :  { %2013 = vmatpush.msrb.mxu2 %v691_v17  ;;  %2032 = vmatpush.msrb.mxu3 %v742_v18  ;;  %v1624_v17 = vpop.f32.mrf.mxu2  ;;  %v2836_v18 = vld [vmem:[%s6755_s0 + $0x60] sm:$0xff]  ;;  %v916_v12 = vld [vmem:[%s6754_s1 + $0x1b68] sm:$0xff] }
 0x142   :  { %1974 = vmatpush.msrb.mxu0 %v592_v20  ;;  %1993 = vmatpush.msrb.mxu1 %v643_v21  ;;  %v799_v20 = vld [vmem:[%s6754_s1 + $0x17c0] sm:$0xff]  ;;  %v850_v21 = vld [vmem:[%s6754_s1 + $0x1958] sm:$0xff]  ;;  %v1625_v27 = vadd.f32 %v1624_v17, %v1605_v22  ;;  %v913_v17 = vld [vmem:[%s6754_s1 + $0x1b50] sm:$0xff] }
 0x143   :  { %2014 = vmatpush.msrb.mxu2 %v688_v23  ;;  %2033 = vmatpush.msrb.mxu3 %v739_v24  ;;  %v895_v23 = vld [vmem:[%s6754_s1 + $0x1ac0] sm:$0xff]  ;;  %v946_v24 = vld [vmem:[%s6754_s1 + $0x1c58] sm:$0xff] }
 0x144   :  { %1975 = vmatpush.msrb.mxu0 %v589_v25  ;;  %1994 = vmatpush.msrb.mxu1 %v640_v26  ;;  %v796_v25 = vld [vmem:[%s6754_s1 + $0x17a8] sm:$0xff]  ;;  %v847_v26 = vld [vmem:[%s6754_s1 + $0x1940] sm:$0xff]  ;;  %v1645_v38 = vadd.f32 %v1644_v30, %v1625_v27  ;;  %v910_v22 = vld [vmem:[%s6754_s1 + $0x1b38] sm:$0xff] }
 0x145   :  { %2015 = vmatpush.msrb.mxu2 %v685_v28  ;;  %2034 = vmatpush.msrb.mxu3 %v736_v29  ;;  %v892_v28 = vld [vmem:[%s6754_s1 + $0x1aa8] sm:$0xff]  ;;  %v943_v29 = vld [vmem:[%s6754_s1 + $0x1c40] sm:$0xff] }
 0x146   :  { %1976 = vmatpush.msrb.mxu0 %v586_v31  ;;  %1995 = vmatpush.msrb.mxu1 %v637_v32  ;;  %v793_v31 = vld [vmem:[%s6754_s1 + $0x1790] sm:$0xff]  ;;  %v844_v32 = vld [vmem:[%s6754_s1 + $0x1928] sm:$0xff]  ;;  %v907_v27 = vld [vmem:[%s6754_s1 + $0x1b20] sm:$0xff] }
 0x147   :  { %2016 = vmatpush.msrb.mxu2 %v682_v33  ;;  %2035 = vmatpush.msrb.mxu3 %v733_v34  ;;  %v889_v33 = vld [vmem:[%s6754_s1 + $0x1a90] sm:$0xff]  ;;  %v940_v34 = vld [vmem:[%s6754_s1 + $0x1c28] sm:$0xff] }
 0x148   :  { %1977 = vmatpush.msrb.mxu0 %v583_v36  ;;  %1996 = vmatpush.msrb.mxu1 %v634_v37  ;;  %v790_v36 = vld [vmem:[%s6754_s1 + $0x1778] sm:$0xff]  ;;  %v841_v37 = vld [vmem:[%s6754_s1 + $0x1910] sm:$0xff]  ;;  %v808_v30 = vld [vmem:[%s6754_s1 + $0x1808] sm:$0xff] }
 0x149   :  { %2017 = vmatpush.msrb.mxu2 %v679_v39  ;;  %2036 = vmatpush.msrb.mxu3 %v730_v40  ;;  %v1664_v35 = vpop.f32.mrf.mxu0  ;;  %v886_v39 = vld [vmem:[%s6754_s1 + $0x1a78] sm:$0xff]  ;;  %v937_v40 = vld [vmem:[%s6754_s1 + $0x1c10] sm:$0xff] }
 0x14a   :  { %1978 = vmatpush.msrb.mxu0 %v580_v41  ;;  %1997 = vmatpush.msrb.mxu1 %v631_v42  ;;  %v787_v41 = vld [vmem:[%s6754_s1 + $0x1760] sm:$0xff]  ;;  %v838_v42 = vld [vmem:[%s6754_s1 + $0x18f8] sm:$0xff]  ;;  %v1665_v43 = vadd.f32 %v1664_v35, %v1645_v38  ;;  %v1045_v35 = vld [vmem:[%s6754_s1 + $0x1f70] sm:$0xff] }
 0x14b   :  { %2018 = vmatpush.msrb.mxu2 %v676_v44  ;;  %2037 = vmatpush.msrb.mxu3 %v727_v45  ;;  %v883_v44 = vld [vmem:[%s6754_s1 + $0x1a60] sm:$0xff]  ;;  %v934_v45 = vld [vmem:[%s6754_s1 + $0x1bf8] sm:$0xff]  ;;  %v1141_v38 = vld [vmem:[%s6754_s1 + $0x2270] sm:$0xff] }
 0x14c   :  { %1979 = vmatpush.msrb.mxu0 %v577_v47  ;;  %1998 = vmatpush.msrb.mxu1 %v628_v48  ;;  %v1684_v46 = vpop.f32.mrf.mxu1  ;;  %v784_v47 = vld [vmem:[%s6754_s1 + $0x1748] sm:$0xff]  ;;  %v835_v48 = vld [vmem:[%s6754_s1 + $0x18e0] sm:$0xff] }
 0x14d   :  { %2019 = vmatpush.msrb.mxu2 %v673_v49  ;;  %2038 = vmatpush.msrb.mxu3 %v724_v50  ;;  %v880_v49 = vld [vmem:[%s6754_s1 + $0x1a48] sm:$0xff]  ;;  %v931_v50 = vld [vmem:[%s6754_s1 + $0x1be0] sm:$0xff]  ;;  %v1685_v54 = vadd.f32 %v1684_v46, %v1665_v43  ;;  %v1042_v43 = vld [vmem:[%s6754_s1 + $0x1f58] sm:$0xff] }
 0x14e   :  { %1980 = vmatpush.msrb.mxu0 %v574_v52  ;;  %1999 = vmatpush.msrb.mxu1 %v625_v53  ;;  %v781_v52 = vld [vmem:[%s6754_s1 + $0x1730] sm:$0xff]  ;;  %v832_v53 = vld [vmem:[%s6754_s1 + $0x18c8] sm:$0xff] }
 0x14f   :  { %2020 = vmatpush.msrb.mxu2 %v670_v55  ;;  %2039 = vmatpush.msrb.mxu3 %v721_v56  ;;  %v1704_v51 = vpop.f32.mrf.mxu2  ;;  %v877_v55 = vld [vmem:[%s6754_s1 + $0x1a30] sm:$0xff]  ;;  %v928_v56 = vld [vmem:[%s6754_s1 + $0x1bc8] sm:$0xff] }
 0x150   :  { %1981 = vmatpush.msrb.mxu0 %v571_v57  ;;  %2000 = vmatpush.msrb.mxu1 %v622_v58  ;;  %v778_v57 = vld [vmem:[%s6754_s1 + $0x1718] sm:$0xff]  ;;  %v829_v58 = vld [vmem:[%s6754_s1 + $0x18b0] sm:$0xff]  ;;  %v1705_v59 = vadd.f32 %v1704_v51, %v1685_v54  ;;  %v988_v46 = vld [vmem:[%s6754_s1 + $0x1da8] sm:$0xff] }
 0x151   :  { %2021 = vmatpush.msrb.mxu2 %v667_v60  ;;  %2040 = vmatpush.msrb.mxu3 %v718_v61  ;;  %v874_v60 = vld [vmem:[%s6754_s1 + $0x1a18] sm:$0xff]  ;;  %v925_v61 = vld [vmem:[%s6754_s1 + $0x1bb0] sm:$0xff]  ;;  %v1036_v51 = vld [vmem:[%s6754_s1 + $0x1f28] sm:$0xff] }
 0x152   :  { %1982 = vmatpush.msrb.mxu0 %v568_v63  ;;  %2001 = vmatpush.msrb.mxu1 %v619_v0  ;;  %v1724_v62 = vpop.f32.mrf.mxu3  ;;  %v775_v63 = vld [vmem:[%s6754_s1 + $0x1700] sm:$0xff]  ;;  %v826_v0 = vld [vmem:[%s6754_s1 + $0x1898] sm:$0xff] }
 0x153   :  { %2022 = vmatpush.msrb.mxu2 %v664_v1  ;;  %2041 = vmatpush.msrb.mxu3 %v715_v2  ;;  %v871_v1 = vld [vmem:[%s6754_s1 + $0x1a00] sm:$0xff]  ;;  %v922_v2 = vld [vmem:[%s6754_s1 + $0x1b98] sm:$0xff] }
 0x154   :  { %1983 = vmatmul.f32.vlgmr.msrb.gmra.mxu0 %v2834_v10  ;;  %2023 = vmatmul.f32.vlgmr.msrb.gmra.mxu2 %v2835_v11  ;;  %v865_v11 = vld [vmem:[%s6754_s1 + $0x19d0] sm:$0xff]  ;;  %v982_v54 = vld [vmem:[%s6754_s1 + $0x1d78] sm:$0xff] }
 0x155   :  { %2047 = vmatpush.msra.mxu0 %v805_v5  ;;  %2087 = vmatpush.msra.mxu2 %v901_v6  ;;  %v1725_v5 = vadd.f32 %v1724_v62, %v1705_v59  ;;  %v868_v6 = vld [vmem:[%s6754_s1 + $0x19e8] sm:$0xff]  ;;  %v979_v59 = vld [vmem:[%s6754_s1 + $0x1d60] sm:$0xff] }
 0x156   :  { %2002 = vmatpush.msrb.mxu1 %v616_v7  ;;  %2042 = vmatpush.msrb.mxu3 %v712_v8  ;;  %v919_v7 = vld [vmem:[%s6754_s1 + $0x1b80] sm:$0xff]  ;;  %v769_v8 = vld [vmem:[%s6754_s1 + $0x16d0] sm:$0xff] }
 0x157   :  { %2003 = vmatmul.f32.vlgmr.msrb.gmra.mxu1 %v2836_v18  ;;  %2043 = vmatmul.f32.vlgmr.msrb.gmra.mxu3 %v2837_v19  ;;  %v763_v19 = vld [vmem:[%s6754_s1 + $0x16a0] sm:$0xff] }
 0x158   :  { %2048 = vmatpush.msra.mxu0 %v802_v13  ;;  %2067 = vmatpush.msra.mxu1 %v853_v14  ;;  %v766_v14 = vld [vmem:[%s6754_s1 + $0x16b8] sm:$0xff]  ;;  %v1075_v62 = vld [vmem:[%s6754_s1 + $0x2060] sm:$0xff] }
 0x159   :  { %2088 = vmatpush.msra.mxu2 %v898_v15  ;;  %2107 = vmatpush.msra.mxu3 %v949_v16  ;;  %v817_v15 = vld [vmem:[%s6754_s1 + $0x1850] sm:$0xff]  ;;  %v862_v16 = vld [vmem:[%s6754_s1 + $0x19b8] sm:$0xff] }
 0x15a   :  { %2049 = vmatpush.msra.mxu0 %v799_v20  ;;  %2068 = vmatpush.msra.mxu1 %v850_v21  ;;  %v814_v20 = vld [vmem:[%s6754_s1 + $0x1838] sm:$0xff]  ;;  %v859_v21 = vld [vmem:[%s6754_s1 + $0x19a0] sm:$0xff] }
 0x15b   :  { %2089 = vmatpush.msra.mxu2 %v895_v23  ;;  %2108 = vmatpush.msra.mxu3 %v946_v24  ;;  %v760_v24 = vld [vmem:[%s6754_s1 + $0x1688] sm:$0xff] }
 0x15c   :  { %2050 = vmatpush.msra.mxu0 %v796_v25  ;;  %2069 = vmatpush.msra.mxu1 %v847_v26  ;;  %v811_v25 = vld [vmem:[%s6754_s1 + $0x1820] sm:$0xff]  ;;  %v856_v26 = vld [vmem:[%s6754_s1 + $0x1988] sm:$0xff] }
 0x15d   :  { %2090 = vmatpush.msra.mxu2 %v892_v28  ;;  %2109 = vmatpush.msra.mxu3 %v943_v29  ;;  %v997_v28 = vld [vmem:[%s6754_s1 + $0x1df0] sm:$0xff] }
 0x15e   :  { %2051 = vmatpush.msra.mxu0 %v793_v31  ;;  %2070 = vmatpush.msra.mxu1 %v844_v32  ;;  %v1093_v29 = vld [vmem:[%s6754_s1 + $0x20f0] sm:$0xff]  ;;  %v904_v31 = vld [vmem:[%s6754_s1 + $0x1b08] sm:$0xff]  ;;  %v2838_v32 = vld [vmem:[%s6755_s0 + $0x78] sm:$0xff] }
 0x15f   :  { %2091 = vmatpush.msra.mxu2 %v889_v33  ;;  %2110 = vmatpush.msra.mxu3 %v940_v34  ;;  %v2839_v33 = vld [vmem:[%s6755_s0 + $0x88] sm:$0xff]  ;;  %v994_v34 = vld [vmem:[%s6754_s1 + $0x1dd8] sm:$0xff] }
 0x160   :  { %2052 = vmatpush.msra.mxu0 %v790_v36  ;;  %2071 = vmatpush.msra.mxu1 %v841_v37  ;;  %v1090_v37 = vld [vmem:[%s6754_s1 + $0x20d8] sm:$0xff] }
 0x161   :  { %2092 = vmatpush.msra.mxu2 %v886_v39  ;;  %2111 = vmatpush.msra.mxu3 %v937_v40  ;;  %v2840_v40 = vld [vmem:[%s6755_s0 + $0x80] sm:$0xff] }
 0x162   :  { %2053 = vmatpush.msra.mxu0 %v787_v41  ;;  %2072 = vmatpush.msra.mxu1 %v838_v42  ;;  %v2841_v41 = vld [vmem:[%s6755_s0 + $0x90] sm:$0xff]  ;;  %v991_v42 = vld [vmem:[%s6754_s1 + $0x1dc0] sm:$0xff] }
 0x163   :  { %2093 = vmatpush.msra.mxu2 %v883_v44  ;;  %2112 = vmatpush.msra.mxu3 %v934_v45  ;;  %v1087_v44 = vld [vmem:[%s6754_s1 + $0x20c0] sm:$0xff]  ;;  %v1138_v45 = vld [vmem:[%s6754_s1 + $0x2258] sm:$0xff] }
 0x164   :  { %2054 = vmatpush.msra.mxu0 %v784_v47  ;;  %2073 = vmatpush.msra.mxu1 %v835_v48  ;;  %v1039_v47 = vld [vmem:[%s6754_s1 + $0x1f40] sm:$0xff]  ;;  %v1084_v48 = vld [vmem:[%s6754_s1 + $0x20a8] sm:$0xff] }
 0x165   :  { %2094 = vmatpush.msra.mxu2 %v880_v49  ;;  %2113 = vmatpush.msra.mxu3 %v931_v50  ;;  %v1135_v49 = vld [vmem:[%s6754_s1 + $0x2240] sm:$0xff]  ;;  %v985_v50 = vld [vmem:[%s6754_s1 + $0x1d90] sm:$0xff] }
 0x166   :  { %2055 = vmatpush.msra.mxu0 %v781_v52  ;;  %2074 = vmatpush.msra.mxu1 %v832_v53  ;;  %v1081_v52 = vld [vmem:[%s6754_s1 + $0x2090] sm:$0xff]  ;;  %v1132_v53 = vld [vmem:[%s6754_s1 + $0x2228] sm:$0xff] }
 0x167   :  { %2095 = vmatpush.msra.mxu2 %v877_v55  ;;  %2114 = vmatpush.msra.mxu3 %v928_v56  ;;  %v1033_v55 = vld [vmem:[%s6754_s1 + $0x1f10] sm:$0xff]  ;;  %v1078_v56 = vld [vmem:[%s6754_s1 + $0x2078] sm:$0xff] }
 0x168   :  { %2056 = vmatpush.msra.mxu0 %v778_v57  ;;  %2075 = vmatpush.msra.mxu1 %v829_v58  ;;  %v1129_v57 = vld [vmem:[%s6754_s1 + $0x2210] sm:$0xff] }
 0x169   :  { %2096 = vmatpush.msra.mxu2 %v874_v60  ;;  %2115 = vmatpush.msra.mxu3 %v925_v61  ;;  %v1030_v60 = vld [vmem:[%s6754_s1 + $0x1ef8] sm:$0xff] }
 0x16a   :  { %2057 = vmatpush.msra.mxu0 %v775_v63  ;;  %2076 = vmatpush.msra.mxu1 %v826_v0  ;;  %v1126_v63 = vld [vmem:[%s6754_s1 + $0x21f8] sm:$0xff]  ;;  %v976_v0 = vld [vmem:[%s6754_s1 + $0x1d48] sm:$0xff] }
 0x16b   :  { %2097 = vmatpush.msra.mxu2 %v871_v1  ;;  %2116 = vmatpush.msra.mxu3 %v922_v2  ;;  %v1744_v10 = vpop.f32.mrf.mxu0  ;;  %v1027_v1 = vld [vmem:[%s6754_s1 + $0x1ee0] sm:$0xff] }
 0x16c   :  { %2058 = vmatpush.msra.mxu0 %v772_v3  ;;  %2077 = vmatpush.msra.mxu1 %v823_v4  ;;  %v1745_v13 = vadd.f32 %v1744_v10, %v1725_v5  ;;  %v1072_v3 = vld [vmem:[%s6754_s1 + $0x2048] sm:$0xff]  ;;  %v1123_v4 = vld [vmem:[%s6754_s1 + $0x21e0] sm:$0xff]  ;;  %v1069_v10 = vld [vmem:[%s6754_s1 + $0x2030] sm:$0xff] }
 0x16d   :  { %2098 = vmatpush.msra.mxu2 %v868_v6  ;;  %2117 = vmatpush.msra.mxu3 %v919_v7  ;;  %v973_v6 = vld [vmem:[%s6754_s1 + $0x1d30] sm:$0xff]  ;;  %v1024_v7 = vld [vmem:[%s6754_s1 + $0x1ec8] sm:$0xff] }
 0x16e   :  { %2059 = vmatpush.msra.mxu0 %v769_v8  ;;  %2078 = vmatpush.msra.mxu1 %v820_v9  ;;  %v2747_v18 = vsub.f32 0.0, %v1745_v13  ;;  %v1021_v13 = vld [vmem:[%s6754_s1 + $0x1eb0] sm:$0xff] }
 0x16f   :  { %2099 = vmatpush.msra.mxu2 %v865_v11  ;;  %2118 = vmatpush.msra.mxu3 %v916_v12  ;;  %v1120_v11 = vld [vmem:[%s6754_s1 + $0x21c8] sm:$0xff]  ;;  %v970_v12 = vld [vmem:[%s6754_s1 + $0x1d18] sm:$0xff] }
 0x170   :  { %2060 = vmatpush.msra.mxu0 %v766_v14  ;;  %2079 = vmatpush.msra.mxu1 %v817_v15  ;;  %v2750_v23 = vmul.f32 1.442695, %v2747_v18  ;;  %v1066_v15 = vld [vmem:[%s6754_s1 + $0x2018] sm:$0xff]  ;;  %v967_v18 = vld [vmem:[%s6754_s1 + $0x1d00] sm:$0xff] }
 0x171   :  { %2100 = vmatpush.msra.mxu2 %v862_v16  ;;  %2119 = vmatpush.msra.mxu3 %v913_v17  ;;  %v1117_v16 = vld [vmem:[%s6754_s1 + $0x21b0] sm:$0xff] }
 0x172   :  { %2061 = vmatpush.msra.mxu0 %v763_v19  ;;  %2080 = vmatpush.msra.mxu1 %v814_v20  ;;  %2811 = vpow2.f32 %v2750_v23  ;;  %v1018_v19 = vld [vmem:[%s6754_s1 + $0x1e98] sm:$0xff] }
 0x173   :  { %2101 = vmatpush.msra.mxu2 %v859_v21  ;;  %2120 = vmatpush.msra.mxu3 %v910_v22  ;;  %v1063_v21 = vld [vmem:[%s6754_s1 + $0x2000] sm:$0xff]  ;;  %v1114_v22 = vld [vmem:[%s6754_s1 + $0x2198] sm:$0xff] }
 0x174   :  { %2062 = vmatpush.msra.mxu0 %v760_v24  ;;  %2081 = vmatpush.msra.mxu1 %v811_v25  ;;  %v964_v24 = vld [vmem:[%s6754_s1 + $0x1ce8] sm:$0xff]  ;;  %v1015_v25 = vld [vmem:[%s6754_s1 + $0x1e80] sm:$0xff] }
 0x175   :  { %2102 = vmatpush.msra.mxu2 %v856_v26  ;;  %2121 = vmatpush.msra.mxu3 %v907_v27  ;;  %v1060_v26 = vld [vmem:[%s6754_s1 + $0x1fe8] sm:$0xff]  ;;  %v1111_v27 = vld [vmem:[%s6754_s1 + $0x2180] sm:$0xff] }
 0x176   :  { %2063 = vmatmul.f32.vlgmr.msra.gmra.mxu0 %v2838_v32  ;;  %2103 = vmatmul.f32.vlgmr.msra.gmra.mxu2 %v2839_v33  ;;  %v958_v32 = vld [vmem:[%s6754_s1 + $0x1cb8] sm:$0xff]  ;;  %v1009_v33 = vld [vmem:[%s6754_s1 + $0x1e50] sm:$0xff] }
 0x177   :  { %2127 = vmatpush.msrb.mxu0 %v997_v28  ;;  %2167 = vmatpush.msrb.mxu2 %v1093_v29  ;;  %v961_v28 = vld [vmem:[%s6754_s1 + $0x1cd0] sm:$0xff]  ;;  %v1012_v29 = vld [vmem:[%s6754_s1 + $0x1e68] sm:$0xff] }
 0x178   :  { %v2812_v36 = vpop.eup %2811  ;;  %2082 = vmatpush.msra.mxu1 %v808_v30  ;;  %2122 = vmatpush.msra.mxu3 %v904_v31  ;;  %v1057_v30 = vld [vmem:[%s6754_s1 + $0x1fd0] sm:$0xff]  ;;  %v1108_v31 = vld [vmem:[%s6754_s1 + $0x2168] sm:$0xff] }
 0x179   :  { %v5154_v39 = vadd.f32 1.0, %v2812_v36  ;;  %2083 = vmatmul.f32.vlgmr.msra.gmra.mxu1 %v2840_v40  ;;  %2123 = vmatmul.f32.vlgmr.msra.gmra.mxu3 %v2841_v41  ;;  %v955_v36 = vld [vmem:[%s6754_s1 + $0x1ca0] sm:$0xff]  ;;  %v952_v40 = vld [vmem:[%s6754_s1 + $0x1c88] sm:$0xff] }
 0x17a   :  { %2128 = vmatpush.msrb.mxu0 %v994_v34  ;;  %2147 = vmatpush.msrb.mxu1 %v1045_v35  ;;  %v1054_v34 = vld [vmem:[%s6754_s1 + $0x1fb8] sm:$0xff]  ;;  %v1105_v35 = vld [vmem:[%s6754_s1 + $0x2150] sm:$0xff]  ;;  %v1003_v41 = vld [vmem:[%s6754_s1 + $0x1e20] sm:$0xff] }
 0x17b   :  { %2813 = vrcp.f32 %v5154_v39  ;;  %2168 = vmatpush.msrb.mxu2 %v1090_v37  ;;  %2187 = vmatpush.msrb.mxu3 %v1141_v38  ;;  %v2770_v5 = vand.u32 2147483648, %v5154_v39  ;;  %v2768_v9 = vand.u32 2147483647, %v5154_v39  ;;  %vm2764_vm1 = vweird.f32 %v5154_v39  ;;  %v1006_v37 = vld [vmem:[%s6754_s1 + $0x1e38] sm:$0xff]  ;;  %v1051_v38 = vld [vmem:[%s6754_s1 + $0x1fa0] sm:$0xff] }
 0x17c   :  { %2129 = vmatpush.msrb.mxu0 %v991_v42  ;;  %2148 = vmatpush.msrb.mxu1 %v1042_v43  ;;  %v1048_v42 = vld [vmem:[%s6754_s1 + $0x1f88] sm:$0xff]  ;;  %v1099_v43 = vld [vmem:[%s6754_s1 + $0x2120] sm:$0xff] }
 0x17d   :  { %2169 = vmatpush.msrb.mxu2 %v1087_v44  ;;  %2188 = vmatpush.msrb.mxu3 %v1138_v45  ;;  %v2771_v17 = vor.u32 1.1754944e-38, %v2770_v5  ;;  %vm2769_vm3 = vcmp.eq.f32.partialorder %v2768_v9, 8.507059e+37  ;;  %v1189_v44 = vld [vmem:[%s6754_s1 + $0x23f0] sm:$0xff]  ;;  %v86_v45 = vld [vmem:[%s6754_s1 + $0x178] sm:$0xff] }
 0x17e   :  { %2130 = vmatpush.msrb.mxu0 %v988_v46  ;;  %2149 = vmatpush.msrb.mxu1 %v1039_v47  ;;  %v1000_v46 = vld [vmem:[%s6754_s1 + $0x1e08] sm:$0xff]  ;;  %v1225_v5 = vld [vmem:[%s6754_s1 + $0x2510] sm:$0xff]  ;;  %v1222_v9 = vld [vmem:[%s6754_s1 + $0x24f8] sm:$0xff] }
 0x17f   :  { %2170 = vmatpush.msrb.mxu2 %v1084_v48  ;;  %2189 = vmatpush.msrb.mxu3 %v1135_v49  ;;  %v1096_v47 = vld [vmem:[%s6754_s1 + $0x2108] sm:$0xff]  ;;  %v2842_v48 = vld [vmem:[%s6755_s0 + $0x98] sm:$0xff] }
 0x180   :  { %2131 = vmatpush.msrb.mxu0 %v985_v50  ;;  %2150 = vmatpush.msrb.mxu1 %v1036_v51  ;;  %v2843_v49 = vld [vmem:[%s6755_s0 + $0xa8] sm:$0xff]  ;;  %v1186_v50 = vld [vmem:[%s6754_s1 + $0x23d8] sm:$0xff]  ;;  %v1237_v51 = vld [vmem:[%s6754_s1 + $0x2570] sm:$0xff] }
 0x181   :  { %v2814_v58 = vpop.eup %2813  ;;  %2171 = vmatpush.msrb.mxu2 %v1081_v52  ;;  %2190 = vmatpush.msrb.mxu3 %v1132_v53  ;;  %v83_v52 = vld [vmem:[%s6754_s1 + $0x160] sm:$0xff]  ;;  %v134_v53 = vld [vmem:[%s6754_s1 + $0x2f8] sm:$0xff] }
 0x182   :  { %v2760_v61 = vmul.f32 %v2814_v58, %v5154_v39  ;;  %2132 = vmatpush.msrb.mxu0 %v982_v54  ;;  %2151 = vmatpush.msrb.mxu1 %v1033_v55  ;;  %vm2765_vm0 = vweird.f32 %v2814_v58  ;;  %v1102_v39 = vld [vmem:[%s6754_s1 + $0x2138] sm:$0xff]  ;;  %v2844_v54 = vld [vmem:[%s6755_s0 + $0xa0] sm:$0xff]  ;;  %v2845_v55 = vld [vmem:[%s6755_s0 + $0xb0] sm:$0xff] }
 0x183   :  { %2172 = vmatpush.msrb.mxu2 %v1078_v56  ;;  %2191 = vmatpush.msrb.mxu3 %v1129_v57  ;;  %vm2766_vm2 = vmor %vm2764_vm1, %vm2765_vm0  ;;  %v1183_v56 = vld [vmem:[%s6754_s1 + $0x23c0] sm:$0xff]  ;;  %v1234_v57 = vld [vmem:[%s6754_s1 + $0x2558] sm:$0xff] }
 0x184   :  { %v2761_v2 = vsub.f32 1.0, %v2760_v61  ;;  %2133 = vmatpush.msrb.mxu0 %v979_v59  ;;  %2152 = vmatpush.msrb.mxu1 %v1030_v60  ;;  %v131_v59 = vld [vmem:[%s6754_s1 + $0x2e0] sm:$0xff]  ;;  %v1180_v60 = vld [vmem:[%s6754_s1 + $0x23a8] sm:$0xff] }
 0x185   :  { %2173 = vmatpush.msrb.mxu2 %v1075_v62  ;;  %2192 = vmatpush.msrb.mxu3 %v1126_v63  ;;  %v1231_v61 = vld [vmem:[%s6754_s1 + $0x2540] sm:$0xff]  ;;  %v77_v62 = vld [vmem:[%s6754_s1 + $0x130] sm:$0xff]  ;;  %v128_v63 = vld [vmem:[%s6754_s1 + $0x2c8] sm:$0xff] }
 0x186   :  { %v2762_v8 = vmul.f32 %v2814_v58, %v2761_v2  ;;  %2134 = vmatpush.msrb.mxu0 %v976_v0  ;;  %2153 = vmatpush.msrb.mxu1 %v1027_v1  ;;  %v1177_v0 = vld [vmem:[%s6754_s1 + $0x2390] sm:$0xff]  ;;  %v1228_v1 = vld [vmem:[%s6754_s1 + $0x2528] sm:$0xff]  ;;  %v74_v2 = vld [vmem:[%s6754_s1 + $0x118] sm:$0xff] }
 0x187   :  { %2174 = vmatpush.msrb.mxu2 %v1072_v3  ;;  %2193 = vmatpush.msrb.mxu3 %v1123_v4  ;;  %v125_v3 = vld [vmem:[%s6754_s1 + $0x2b0] sm:$0xff]  ;;  %v1174_v4 = vld [vmem:[%s6754_s1 + $0x2378] sm:$0xff] }
 0x188   :  { %v2763_v14 = vadd.f32 %v2814_v58, %v2762_v8  ;;  %2135 = vmatpush.msrb.mxu0 %v973_v6  ;;  %2154 = vmatpush.msrb.mxu1 %v1024_v7  ;;  %v71_v6 = vld [vmem:[%s6754_s1 + $0x100] sm:$0xff]  ;;  %v122_v7 = vld [vmem:[%s6754_s1 + $0x298] sm:$0xff] }
 0x189   :  { %2175 = vmatpush.msrb.mxu2 %v1069_v10  ;;  %2194 = vmatpush.msrb.mxu3 %v1120_v11  ;;  %v1171_v8 = vld [vmem:[%s6754_s1 + $0x2360] sm:$0xff]  ;;  %v68_v10 = vld [vmem:[%s6754_s1 + $0xe8] sm:$0xff] }
 0x18a   :  { %v2767_v20 = vsel %vm2766_vm2, %v2814_v58, %v2763_v14  ;;  %2136 = vmatpush.msrb.mxu0 %v970_v12  ;;  %2155 = vmatpush.msrb.mxu1 %v1021_v13  ;;  %v80_v58 = vld [vmem:[%s6754_s1 + $0x148] sm:$0xff]  ;;  %v119_v11 = vld [vmem:[%s6754_s1 + $0x280] sm:$0xff]  ;;  %v65_v14 = vld [vmem:[%s6754_s1 + $0xd0] sm:$0xff] }
 0x18b   :  { %v2772_v23 = vsel %vm2769_vm3, %v2771_v17, %v2767_v20  ;;  %2176 = vmatpush.msrb.mxu2 %v1066_v15  ;;  %2195 = vmatpush.msrb.mxu3 %v1117_v16  ;;  %v1168_v12 = vld [vmem:[%s6754_s1 + $0x2348] sm:$0xff]  ;;  %v1219_v13 = vld [vmem:[%s6754_s1 + $0x24e0] sm:$0xff]  ;;  %v1165_v16 = vld [vmem:[%s6754_s1 + $0x2330] sm:$0xff] }
 0x18c   :  { %2804 = vst [vmem:[%s6757_s3] sm:$0xff] %v2772_v23  ;;  %2137 = vmatpush.msrb.mxu0 %v967_v18  ;;  %2156 = vmatpush.msrb.mxu1 %v1018_v19  ;;  %v116_v15 = vld [vmem:[%s6754_s1 + $0x268] sm:$0xff]  ;;  %v62_v18 = vld [vmem:[%s6754_s1 + $0xb8] sm:$0xff]  ;;  %v113_v19 = vld [vmem:[%s6754_s1 + $0x250] sm:$0xff] }
 0x18d   :  { %2177 = vmatpush.msrb.mxu2 %v1063_v21  ;;  %2196 = vmatpush.msrb.mxu3 %v1114_v22  ;;  %v1216_v17 = vld [vmem:[%s6754_s1 + $0x24c8] sm:$0xff]  ;;  %v1162_v20 = vld [vmem:[%s6754_s1 + $0x2318] sm:$0xff]  ;;  %v1213_v21 = vld [vmem:[%s6754_s1 + $0x24b0] sm:$0xff] }
 0x18e   :  { %2138 = vmatpush.msrb.mxu0 %v964_v24  ;;  %2157 = vmatpush.msrb.mxu1 %v1015_v25  ;;  %v59_v22 = vld [vmem:[%s6754_s1 + $0xa0] sm:$0xff]  ;;  %v110_v23 = vld [vmem:[%s6754_s1 + $0x238] sm:$0xff] }
 0x18f   :  { %2178 = vmatpush.msrb.mxu2 %v1060_v26  ;;  %2197 = vmatpush.msrb.mxu3 %v1111_v27  ;;  %v1159_v24 = vld [vmem:[%s6754_s1 + $0x2300] sm:$0xff]  ;;  %v1210_v25 = vld [vmem:[%s6754_s1 + $0x2498] sm:$0xff]  ;;  %v56_v26 = vld [vmem:[%s6754_s1 + $0x88] sm:$0xff] }
 0x190   :  { %2139 = vmatpush.msrb.mxu0 %v961_v28  ;;  %2158 = vmatpush.msrb.mxu1 %v1012_v29  ;;  %v107_v27 = vld [vmem:[%s6754_s1 + $0x220] sm:$0xff]  ;;  %v1156_v28 = vld [vmem:[%s6754_s1 + $0x22e8] sm:$0xff] }
 0x191   :  { %2179 = vmatpush.msrb.mxu2 %v1057_v30  ;;  %2198 = vmatpush.msrb.mxu3 %v1108_v31  ;;  %v1207_v29 = vld [vmem:[%s6754_s1 + $0x2480] sm:$0xff]  ;;  %v53_v30 = vld [vmem:[%s6754_s1 + $0x70] sm:$0xff]  ;;  %v104_v31 = vld [vmem:[%s6754_s1 + $0x208] sm:$0xff] }
 0x192   :  { %2140 = vmatpush.msrb.mxu0 %v958_v32  ;;  %2159 = vmatpush.msrb.mxu1 %v1009_v33  ;;  %v1153_v32 = vld [vmem:[%s6754_s1 + $0x22d0] sm:$0xff]  ;;  %v1204_v33 = vld [vmem:[%s6754_s1 + $0x2468] sm:$0xff] }
 0x193   :  { %2180 = vmatpush.msrb.mxu2 %v1054_v34  ;;  %2199 = vmatpush.msrb.mxu3 %v1105_v35  ;;  %v50_v34 = vld [vmem:[%s6754_s1 + $0x58] sm:$0xff]  ;;  %v101_v35 = vld [vmem:[%s6754_s1 + $0x1f0] sm:$0xff] }
 0x194   :  { %2141 = vmatpush.msrb.mxu0 %v955_v36  ;;  %2160 = vmatpush.msrb.mxu1 %v1006_v37  ;;  %v1150_v36 = vld [vmem:[%s6754_s1 + $0x22b8] sm:$0xff]  ;;  %v1201_v37 = vld [vmem:[%s6754_s1 + $0x2450] sm:$0xff] }
 0x195   :  { %2181 = vmatpush.msrb.mxu2 %v1051_v38  ;;  %2200 = vmatpush.msrb.mxu3 %v1102_v39  ;;  %v47_v38 = vld [vmem:[%s6754_s1 + $0x40] sm:$0xff]  ;;  %v98_v39 = vld [vmem:[%s6754_s1 + $0x1d8] sm:$0xff] }
 0x196   :  { %2142 = vmatpush.msrb.mxu0 %v952_v40  ;;  %2161 = vmatpush.msrb.mxu1 %v1003_v41  ;;  %v1147_v40 = vld [vmem:[%s6754_s1 + $0x22a0] sm:$0xff]  ;;  %v1198_v41 = vld [vmem:[%s6754_s1 + $0x2438] sm:$0xff] }
 0x197   :  { %2182 = vmatpush.msrb.mxu2 %v1048_v42  ;;  %2201 = vmatpush.msrb.mxu3 %v1099_v43  ;;  %v44_v42 = vld [vmem:[%s6754_s1 + $0x28] sm:$0xff]  ;;  %v95_v43 = vld [vmem:[%s6754_s1 + $0x1c0] sm:$0xff] }
 0x198   :  { %2143 = vmatmul.f32.vlgmr.msrb.gmra.mxu0 %v2842_v48  ;;  %2183 = vmatmul.f32.vlgmr.msrb.gmra.mxu2 %v2843_v49  ;;  %v278_v48 = vld [vmem:[%s6754_s1 + $0x778] sm:$0xff] }
 0x199   :  { %2207 = vmatpush.msra.mxu0 %v1189_v44  ;;  %2247 = vmatpush.msra.mxu2 %v86_v45  ;;  %v1144_v44 = vld [vmem:[%s6754_s1 + $0x2288] sm:$0xff]  ;;  %v1195_v45 = vld [vmem:[%s6754_s1 + $0x2420] sm:$0xff]  ;;  %v182_v49 = vld [vmem:[%s6754_s1 + $0x478] sm:$0xff] }
 0x19a   :  { %2162 = vmatpush.msrb.mxu1 %v1000_v46  ;;  %2202 = vmatpush.msrb.mxu3 %v1096_v47  ;;  %v41_v46 = vld [vmem:[%s6754_s1 + $0x10] sm:$0xff]  ;;  %v92_v47 = vld [vmem:[%s6754_s1 + $0x1a8] sm:$0xff] }
 0x19b   :  { %2163 = vmatmul.f32.vlgmr.msrb.gmra.mxu1 %v2844_v54  ;;  %2203 = vmatmul.f32.vlgmr.msrb.gmra.mxu3 %v2845_v55  ;;  %v230_v54 = vld [vmem:[%s6754_s1 + $0x5f8] sm:$0xff]  ;;  %v275_v55 = vld [vmem:[%s6754_s1 + $0x760] sm:$0xff] }
 0x19c   :  { %2208 = vmatpush.msra.mxu0 %v1186_v50  ;;  %2227 = vmatpush.msra.mxu1 %v1237_v51  ;;  %v1192_v50 = vld [vmem:[%s6754_s1 + $0x2408] sm:$0xff]  ;;  %v89_v51 = vld [vmem:[%s6754_s1 + $0x190] sm:$0xff] }
 0x19d   :  { %2248 = vmatpush.msra.mxu2 %v83_v52  ;;  %2267 = vmatpush.msra.mxu3 %v134_v53  ;;  %v2846_v52 = vld [vmem:[%s6755_s0 + $0xb8] sm:$0xff]  ;;  %v179_v53 = vld [vmem:[%s6754_s1 + $0x460] sm:$0xff] }
 0x19e   :  { %2209 = vmatpush.msra.mxu0 %v1183_v56  ;;  %2228 = vmatpush.msra.mxu1 %v1234_v57  ;;  %v326_v56 = vld [vmem:[%s6754_s1 + $0x8f8] sm:$0xff]  ;;  %v2847_v57 = vld [vmem:[%s6755_s0 + $0xc0] sm:$0xff] }
 0x19f   :  { %2249 = vmatpush.msra.mxu2 %v80_v58  ;;  %2268 = vmatpush.msra.mxu3 %v131_v59  ;;  %v176_v58 = vld [vmem:[%s6754_s1 + $0x448] sm:$0xff]  ;;  %v227_v59 = vld [vmem:[%s6754_s1 + $0x5e0] sm:$0xff] }
 0x1a0   :  { %2210 = vmatpush.msra.mxu0 %v1180_v60  ;;  %2229 = vmatpush.msra.mxu1 %v1231_v61  ;;  %v272_v60 = vld [vmem:[%s6754_s1 + $0x748] sm:$0xff]  ;;  %v323_v61 = vld [vmem:[%s6754_s1 + $0x8e0] sm:$0xff] }
 0x1a1   :  { %2250 = vmatpush.msra.mxu2 %v77_v62  ;;  %2269 = vmatpush.msra.mxu3 %v128_v63  ;;  %v173_v62 = vld [vmem:[%s6754_s1 + $0x430] sm:$0xff]  ;;  %v224_v63 = vld [vmem:[%s6754_s1 + $0x5c8] sm:$0xff] }
 0x1a2   :  { %2211 = vmatpush.msra.mxu0 %v1177_v0  ;;  %2230 = vmatpush.msra.mxu1 %v1228_v1  ;;  %v269_v0 = vld [vmem:[%s6754_s1 + $0x730] sm:$0xff]  ;;  %v320_v1 = vld [vmem:[%s6754_s1 + $0x8c8] sm:$0xff] }
 0x1a3   :  { %2251 = vmatpush.msra.mxu2 %v74_v2  ;;  %2270 = vmatpush.msra.mxu3 %v125_v3  ;;  %v170_v2 = vld [vmem:[%s6754_s1 + $0x418] sm:$0xff]  ;;  %v221_v3 = vld [vmem:[%s6754_s1 + $0x5b0] sm:$0xff] }
 0x1a4   :  { %2212 = vmatpush.msra.mxu0 %v1174_v4  ;;  %2231 = vmatpush.msra.mxu1 %v1225_v5  ;;  %v266_v4 = vld [vmem:[%s6754_s1 + $0x718] sm:$0xff]  ;;  %v317_v5 = vld [vmem:[%s6754_s1 + $0x8b0] sm:$0xff] }
 0x1a5   :  { %2252 = vmatpush.msra.mxu2 %v71_v6  ;;  %2271 = vmatpush.msra.mxu3 %v122_v7  ;;  %v167_v6 = vld [vmem:[%s6754_s1 + $0x400] sm:$0xff]  ;;  %v218_v7 = vld [vmem:[%s6754_s1 + $0x598] sm:$0xff] }
 0x1a6   :  { %2213 = vmatpush.msra.mxu0 %v1171_v8  ;;  %2232 = vmatpush.msra.mxu1 %v1222_v9  ;;  %v263_v8 = vld [vmem:[%s6754_s1 + $0x700] sm:$0xff]  ;;  %v314_v9 = vld [vmem:[%s6754_s1 + $0x898] sm:$0xff] }
 0x1a7   :  { %2253 = vmatpush.msra.mxu2 %v68_v10  ;;  %2272 = vmatpush.msra.mxu3 %v119_v11  ;;  %v164_v10 = vld [vmem:[%s6754_s1 + $0x3e8] sm:$0xff]  ;;  %v215_v11 = vld [vmem:[%s6754_s1 + $0x580] sm:$0xff] }
 0x1a8   :  { %2214 = vmatpush.msra.mxu0 %v1168_v12  ;;  %2233 = vmatpush.msra.mxu1 %v1219_v13  ;;  %v260_v12 = vld [vmem:[%s6754_s1 + $0x6e8] sm:$0xff]  ;;  %v311_v13 = vld [vmem:[%s6754_s1 + $0x880] sm:$0xff] }
 0x1a9   :  { %2254 = vmatpush.msra.mxu2 %v65_v14  ;;  %2273 = vmatpush.msra.mxu3 %v116_v15  ;;  %v161_v14 = vld [vmem:[%s6754_s1 + $0x3d0] sm:$0xff]  ;;  %v212_v15 = vld [vmem:[%s6754_s1 + $0x568] sm:$0xff] }
 0x1aa   :  { %2215 = vmatpush.msra.mxu0 %v1165_v16  ;;  %2234 = vmatpush.msra.mxu1 %v1216_v17  ;;  %v257_v16 = vld [vmem:[%s6754_s1 + $0x6d0] sm:$0xff]  ;;  %v308_v17 = vld [vmem:[%s6754_s1 + $0x868] sm:$0xff] }
 0x1ab   :  { %2255 = vmatpush.msra.mxu2 %v62_v18  ;;  %2274 = vmatpush.msra.mxu3 %v113_v19  ;;  %v158_v18 = vld [vmem:[%s6754_s1 + $0x3b8] sm:$0xff]  ;;  %v209_v19 = vld [vmem:[%s6754_s1 + $0x550] sm:$0xff] }
 0x1ac   :  { %2216 = vmatpush.msra.mxu0 %v1162_v20  ;;  %2235 = vmatpush.msra.mxu1 %v1213_v21  ;;  %v254_v20 = vld [vmem:[%s6754_s1 + $0x6b8] sm:$0xff]  ;;  %v305_v21 = vld [vmem:[%s6754_s1 + $0x850] sm:$0xff] }
 0x1ad   :  { %2256 = vmatpush.msra.mxu2 %v59_v22  ;;  %2275 = vmatpush.msra.mxu3 %v110_v23  ;;  %v155_v22 = vld [vmem:[%s6754_s1 + $0x3a0] sm:$0xff]  ;;  %v206_v23 = vld [vmem:[%s6754_s1 + $0x538] sm:$0xff] }
 0x1ae   :  { %2217 = vmatpush.msra.mxu0 %v1159_v24  ;;  %2236 = vmatpush.msra.mxu1 %v1210_v25  ;;  %v251_v24 = vld [vmem:[%s6754_s1 + $0x6a0] sm:$0xff]  ;;  %v302_v25 = vld [vmem:[%s6754_s1 + $0x838] sm:$0xff] }
 0x1af   :  { %2257 = vmatpush.msra.mxu2 %v56_v26  ;;  %2276 = vmatpush.msra.mxu3 %v107_v27  ;;  %v152_v26 = vld [vmem:[%s6754_s1 + $0x388] sm:$0xff]  ;;  %v203_v27 = vld [vmem:[%s6754_s1 + $0x520] sm:$0xff] }
 0x1b0   :  { %2218 = vmatpush.msra.mxu0 %v1156_v28  ;;  %2237 = vmatpush.msra.mxu1 %v1207_v29  ;;  %v248_v28 = vld [vmem:[%s6754_s1 + $0x688] sm:$0xff]  ;;  %v299_v29 = vld [vmem:[%s6754_s1 + $0x820] sm:$0xff] }
 0x1b1   :  { %2258 = vmatpush.msra.mxu2 %v53_v30  ;;  %2277 = vmatpush.msra.mxu3 %v104_v31  ;;  %v149_v30 = vld [vmem:[%s6754_s1 + $0x370] sm:$0xff]  ;;  %v200_v31 = vld [vmem:[%s6754_s1 + $0x508] sm:$0xff] }
 0x1b2   :  { %2219 = vmatpush.msra.mxu0 %v1153_v32  ;;  %2238 = vmatpush.msra.mxu1 %v1204_v33  ;;  %v245_v32 = vld [vmem:[%s6754_s1 + $0x670] sm:$0xff]  ;;  %v296_v33 = vld [vmem:[%s6754_s1 + $0x808] sm:$0xff] }
 0x1b3   :  { %2259 = vmatpush.msra.mxu2 %v50_v34  ;;  %2278 = vmatpush.msra.mxu3 %v101_v35  ;;  %v146_v34 = vld [vmem:[%s6754_s1 + $0x358] sm:$0xff]  ;;  %v197_v35 = vld [vmem:[%s6754_s1 + $0x4f0] sm:$0xff] }
 0x1b4   :  { %2220 = vmatpush.msra.mxu0 %v1150_v36  ;;  %2239 = vmatpush.msra.mxu1 %v1201_v37  ;;  %v242_v36 = vld [vmem:[%s6754_s1 + $0x658] sm:$0xff]  ;;  %v293_v37 = vld [vmem:[%s6754_s1 + $0x7f0] sm:$0xff] }
 0x1b5   :  { %2260 = vmatpush.msra.mxu2 %v47_v38  ;;  %2279 = vmatpush.msra.mxu3 %v98_v39  ;;  %v143_v38 = vld [vmem:[%s6754_s1 + $0x340] sm:$0xff]  ;;  %v194_v39 = vld [vmem:[%s6754_s1 + $0x4d8] sm:$0xff] }
 0x1b6   :  { %2221 = vmatpush.msra.mxu0 %v1147_v40  ;;  %2240 = vmatpush.msra.mxu1 %v1198_v41  ;;  %v239_v40 = vld [vmem:[%s6754_s1 + $0x640] sm:$0xff]  ;;  %v290_v41 = vld [vmem:[%s6754_s1 + $0x7d8] sm:$0xff] }
 0x1b7   :  { %2261 = vmatpush.msra.mxu2 %v44_v42  ;;  %2280 = vmatpush.msra.mxu3 %v95_v43  ;;  %v140_v42 = vld [vmem:[%s6754_s1 + $0x328] sm:$0xff]  ;;  %v191_v43 = vld [vmem:[%s6754_s1 + $0x4c0] sm:$0xff] }
 0x1b8   :  { %2222 = vmatpush.msra.mxu0 %v1144_v44  ;;  %2241 = vmatpush.msra.mxu1 %v1195_v45  ;;  %v236_v44 = vld [vmem:[%s6754_s1 + $0x628] sm:$0xff]  ;;  %v287_v45 = vld [vmem:[%s6754_s1 + $0x7c0] sm:$0xff] }
 0x1b9   :  { %2262 = vmatpush.msra.mxu2 %v41_v46  ;;  %2281 = vmatpush.msra.mxu3 %v92_v47  ;;  %v137_v46 = vld [vmem:[%s6754_s1 + $0x310] sm:$0xff]  ;;  %v188_v47 = vld [vmem:[%s6754_s1 + $0x4a8] sm:$0xff] }
 0x1ba   :  { %2223 = vmatmul.f32.vlgmr.msra.gmra.mxu0 %v2846_v52  ;;  %2242 = vmatpush.msra.mxu1 %v1192_v50  ;;  %v374_v50 = vld [vmem:[%s6754_s1 + $0xa78] sm:$0xff]  ;;  %v185_v52 = vld [vmem:[%s6754_s1 + $0x490] sm:$0xff] }
 0x1bb   :  { %2327 = vmatpush.msrb.mxu2 %v278_v48  ;;  %2287 = vmatpush.msrb.mxu0 %v182_v49  ;;  %v233_v48 = vld [vmem:[%s6754_s1 + $0x610] sm:$0xff]  ;;  %v284_v49 = vld [vmem:[%s6754_s1 + $0x7a8] sm:$0xff] }
 0x1bc   :  { %2282 = vmatpush.msra.mxu3 %v89_v51  ;;  %2243 = vmatmul.f32.vlgmr.msra.gmra.mxu1 %v2847_v57  ;;  %v470_v51 = vld [vmem:[%s6754_s1 + $0xd78] sm:$0xff]  ;;  %v467_v57 = vld [vmem:[%s6754_s1 + $0xd60] sm:$0xff] }
 0x1bd   :  { %2288 = vmatpush.msrb.mxu0 %v179_v53  ;;  %2307 = vmatpush.msrb.mxu1 %v230_v54  ;;  %v281_v53 = vld [vmem:[%s6754_s1 + $0x790] sm:$0xff]  ;;  %v371_v54 = vld [vmem:[%s6754_s1 + $0xa60] sm:$0xff] }
 0x1be   :  { %2328 = vmatpush.msrb.mxu2 %v275_v55  ;;  %2347 = vmatpush.msrb.mxu3 %v326_v56  ;;  %v2848_v55 = vld [vmem:[%s6755_s0] sm:$0xff]  ;;  %v422_v56 = vld [vmem:[%s6754_s1 + $0xbf8] sm:$0xff] }
 0x1bf   :  { %2289 = vmatpush.msrb.mxu0 %v176_v58  ;;  %2308 = vmatpush.msrb.mxu1 %v227_v59  ;;  %v518_v58 = vld [vmem:[%s6754_s1 + $0xef8] sm:$0xff]  ;;  %v368_v59 = vld [vmem:[%s6754_s1 + $0xa48] sm:$0xff] }
 0x1c0   :  { %2329 = vmatpush.msrb.mxu2 %v272_v60  ;;  %2348 = vmatpush.msrb.mxu3 %v323_v61  ;;  %v419_v60 = vld [vmem:[%s6754_s1 + $0xbe0] sm:$0xff]  ;;  %v2849_v61 = vld [vmem:[%s6755_s0 + $0x8] sm:$0xff] }
 0x1c1   :  { %2290 = vmatpush.msrb.mxu0 %v173_v62  ;;  %2309 = vmatpush.msrb.mxu1 %v224_v63  ;;  %v464_v62 = vld [vmem:[%s6754_s1 + $0xd48] sm:$0xff]  ;;  %v515_v63 = vld [vmem:[%s6754_s1 + $0xee0] sm:$0xff] }
 0x1c2   :  { %2330 = vmatpush.msrb.mxu2 %v269_v0  ;;  %2349 = vmatpush.msrb.mxu3 %v320_v1  ;;  %v365_v0 = vld [vmem:[%s6754_s1 + $0xa30] sm:$0xff]  ;;  %v416_v1 = vld [vmem:[%s6754_s1 + $0xbc8] sm:$0xff] }
 0x1c3   :  { %2291 = vmatpush.msrb.mxu0 %v170_v2  ;;  %2310 = vmatpush.msrb.mxu1 %v221_v3  ;;  %v461_v2 = vld [vmem:[%s6754_s1 + $0xd30] sm:$0xff]  ;;  %v512_v3 = vld [vmem:[%s6754_s1 + $0xec8] sm:$0xff] }
 0x1c4   :  { %2331 = vmatpush.msrb.mxu2 %v266_v4  ;;  %2350 = vmatpush.msrb.mxu3 %v317_v5  ;;  %v362_v4 = vld [vmem:[%s6754_s1 + $0xa18] sm:$0xff]  ;;  %v413_v5 = vld [vmem:[%s6754_s1 + $0xbb0] sm:$0xff] }
 0x1c5   :  { %2292 = vmatpush.msrb.mxu0 %v167_v6  ;;  %2311 = vmatpush.msrb.mxu1 %v218_v7  ;;  %v458_v6 = vld [vmem:[%s6754_s1 + $0xd18] sm:$0xff]  ;;  %v509_v7 = vld [vmem:[%s6754_s1 + $0xeb0] sm:$0xff] }
 0x1c6   :  { %2332 = vmatpush.msrb.mxu2 %v263_v8  ;;  %2351 = vmatpush.msrb.mxu3 %v314_v9  ;;  %v2850_v8 = vld [vmem:[%s6755_s0 + $0x20] sm:$0xff] }
 0x1c7   :  { %2293 = vmatpush.msrb.mxu0 %v164_v10  ;;  %2312 = vmatpush.msrb.mxu1 %v215_v11  ;;  %v359_v9 = vld [vmem:[%s6754_s1 + $0xa00] sm:$0xff]  ;;  %v410_v10 = vld [vmem:[%s6754_s1 + $0xb98] sm:$0xff] }
 0x1c8   :  { %2333 = vmatpush.msrb.mxu2 %v260_v12  ;;  %2352 = vmatpush.msrb.mxu3 %v311_v13  ;;  %v455_v11 = vld [vmem:[%s6754_s1 + $0xd00] sm:$0xff]  ;;  %v2851_v12 = vld [vmem:[%s6755_s0 + $0x10] sm:$0xff]  ;;  %v506_v13 = vld [vmem:[%s6754_s1 + $0xe98] sm:$0xff] }
 0x1c9   :  { %2294 = vmatpush.msrb.mxu0 %v161_v14  ;;  %2313 = vmatpush.msrb.mxu1 %v212_v15  ;;  %v2852_v14 = vld [vmem:[%s6755_s0 + $0x28] sm:$0xff] }
 0x1ca   :  { %2334 = vmatpush.msrb.mxu2 %v257_v16  ;;  %2353 = vmatpush.msrb.mxu3 %v308_v17  ;;  %v356_v15 = vld [vmem:[%s6754_s1 + $0x9e8] sm:$0xff]  ;;  %v407_v16 = vld [vmem:[%s6754_s1 + $0xb80] sm:$0xff] }
 0x1cb   :  { %2295 = vmatpush.msrb.mxu0 %v158_v18  ;;  %2314 = vmatpush.msrb.mxu1 %v209_v19  ;;  %v452_v17 = vld [vmem:[%s6754_s1 + $0xce8] sm:$0xff]  ;;  %v503_v18 = vld [vmem:[%s6754_s1 + $0xe80] sm:$0xff]  ;;  %v2853_v19 = vld [vmem:[%s6755_s0 + $0x18] sm:$0xff] }
 0x1cc   :  { %2335 = vmatpush.msrb.mxu2 %v254_v20  ;;  %2354 = vmatpush.msrb.mxu3 %v305_v21  ;;  %v353_v20 = vld [vmem:[%s6754_s1 + $0x9d0] sm:$0xff]  ;;  %v404_v21 = vld [vmem:[%s6754_s1 + $0xb68] sm:$0xff] }
 0x1cd   :  { %2296 = vmatpush.msrb.mxu0 %v155_v22  ;;  %2315 = vmatpush.msrb.mxu1 %v206_v23  ;;  %v2854_v22 = vld [vmem:[%s6756_s2] sm:$0x7] }
 0x1ce   :  { %2336 = vmatpush.msrb.mxu2 %v251_v24  ;;  %2355 = vmatpush.msrb.mxu3 %v302_v25  ;;  %v1242_v23 = vperm.slane %v2854_v22, 1  ;;  %v449_v24 = vld [vmem:[%s6754_s1 + $0xcd0] sm:$0xff]  ;;  %v500_v25 = vld [vmem:[%s6754_s1 + $0xe68] sm:$0xff] }
 0x1cf   :  { %2297 = vmatpush.msrb.mxu0 %v152_v26  ;;  %2316 = vmatpush.msrb.mxu1 %v203_v27  ;;  %v1764_v26 = vpop.f32.mrf.mxu1  ;;  %v350_v27 = vld [vmem:[%s6754_s1 + $0x9b8] sm:$0xff] }
 0x1d0   :  { %2337 = vmatpush.msrb.mxu2 %v248_v28  ;;  %2356 = vmatpush.msrb.mxu3 %v299_v29  ;;  %v401_v28 = vld [vmem:[%s6754_s1 + $0xb50] sm:$0xff]  ;;  %v446_v29 = vld [vmem:[%s6754_s1 + $0xcb8] sm:$0xff] }
 0x1d1   :  { %2298 = vmatpush.msrb.mxu0 %v149_v30  ;;  %2317 = vmatpush.msrb.mxu1 %v200_v31  ;;  %v497_v30 = vld [vmem:[%s6754_s1 + $0xe50] sm:$0xff]  ;;  %v347_v31 = vld [vmem:[%s6754_s1 + $0x9a0] sm:$0xff] }
 0x1d2   :  { %2338 = vmatpush.msrb.mxu2 %v245_v32  ;;  %2357 = vmatpush.msrb.mxu3 %v296_v33  ;;  %v398_v32 = vld [vmem:[%s6754_s1 + $0xb38] sm:$0xff]  ;;  %v1765_v33 = vadd.f32 %v1764_v26, %v1242_v23  ;;  %v557_v23 = vld [vmem:[%s6754_s1 + $0x1030] sm:$0xff]  ;;  %v704_v26 = vld [vmem:[%s6754_s1 + $0x14c8] sm:$0xff] }
 0x1d3   :  { %2299 = vmatpush.msrb.mxu0 %v146_v34  ;;  %2318 = vmatpush.msrb.mxu1 %v197_v35  ;;  %v443_v34 = vld [vmem:[%s6754_s1 + $0xca0] sm:$0xff]  ;;  %v494_v35 = vld [vmem:[%s6754_s1 + $0xe38] sm:$0xff] }
 0x1d4   :  { %2339 = vmatpush.msrb.mxu2 %v242_v36  ;;  %2358 = vmatpush.msrb.mxu3 %v293_v37  ;;  %v1784_v36 = vpop.f32.mrf.mxu2  ;;  %v344_v37 = vld [vmem:[%s6754_s1 + $0x988] sm:$0xff] }
 0x1d5   :  { %2300 = vmatpush.msrb.mxu0 %v143_v38  ;;  %2319 = vmatpush.msrb.mxu1 %v194_v39  ;;  %v395_v38 = vld [vmem:[%s6754_s1 + $0xb20] sm:$0xff]  ;;  %v440_v39 = vld [vmem:[%s6754_s1 + $0xc88] sm:$0xff] }
 0x1d6   :  { %2340 = vmatpush.msrb.mxu2 %v239_v40  ;;  %2359 = vmatpush.msrb.mxu3 %v290_v41  ;;  %v491_v40 = vld [vmem:[%s6754_s1 + $0xe20] sm:$0xff]  ;;  %v341_v41 = vld [vmem:[%s6754_s1 + $0x970] sm:$0xff] }
 0x1d7   :  { %2301 = vmatpush.msrb.mxu0 %v140_v42  ;;  %2320 = vmatpush.msrb.mxu1 %v191_v43  ;;  %v392_v42 = vld [vmem:[%s6754_s1 + $0xb08] sm:$0xff]  ;;  %v1785_v43 = vadd.f32 %v1784_v36, %v1765_v33  ;;  %v551_v33 = vld [vmem:[%s6754_s1 + $0x1000] sm:$0xff] }
 0x1d8   :  { %2341 = vmatpush.msrb.mxu2 %v236_v44  ;;  %2360 = vmatpush.msrb.mxu3 %v287_v45  ;;  %v437_v44 = vld [vmem:[%s6754_s1 + $0xc70] sm:$0xff]  ;;  %v488_v45 = vld [vmem:[%s6754_s1 + $0xe08] sm:$0xff]  ;;  %v647_v36 = vld [vmem:[%s6754_s1 + $0x1300] sm:$0xff] }
 0x1d9   :  { %2302 = vmatpush.msrb.mxu0 %v137_v46  ;;  %2321 = vmatpush.msrb.mxu1 %v188_v47  ;;  %v1804_v46 = vpop.f32.mrf.mxu3  ;;  %v338_v47 = vld [vmem:[%s6754_s1 + $0x958] sm:$0xff] }
 0x1da   :  { %2342 = vmatpush.msrb.mxu2 %v233_v48  ;;  %2361 = vmatpush.msrb.mxu3 %v284_v49  ;;  %v389_v48 = vld [vmem:[%s6754_s1 + $0xaf0] sm:$0xff]  ;;  %v434_v49 = vld [vmem:[%s6754_s1 + $0xc58] sm:$0xff] }
 0x1db   :  { %2263 = vmatmul.f32.vlgmr.msra.gmra.mxu2 %v2848_v55  ;;  %2367 = vmatpush.msra.mxu0 %v374_v50  ;;  %v485_v50 = vld [vmem:[%s6754_s1 + $0xdf0] sm:$0xff]  ;;  %v482_v55 = vld [vmem:[%s6754_s1 + $0xdd8] sm:$0xff] }
 0x1dc   :  { %2407 = vmatpush.msra.mxu2 %v470_v51  ;;  %2322 = vmatpush.msrb.mxu1 %v185_v52  ;;  %v335_v51 = vld [vmem:[%s6754_s1 + $0x940] sm:$0xff]  ;;  %v386_v52 = vld [vmem:[%s6754_s1 + $0xad8] sm:$0xff] }
 0x1dd   :  { %2362 = vmatpush.msrb.mxu3 %v281_v53  ;;  %2368 = vmatpush.msra.mxu0 %v371_v54  ;;  %v1805_v53 = vadd.f32 %v1804_v46, %v1785_v43  ;;  %v431_v54 = vld [vmem:[%s6754_s1 + $0xc40] sm:$0xff] }
 0x1de   :  { %2283 = vmatmul.f32.vlgmr.msra.gmra.mxu3 %v2849_v61  ;;  %2387 = vmatpush.msra.mxu1 %v422_v56  ;;  %v1824_v56 = vpop.f32.mrf.mxu0  ;;  %v329_v61 = vld [vmem:[%s6754_s1 + $0x910] sm:$0xff] }
 0x1df   :  { %2408 = vmatpush.msra.mxu2 %v467_v57  ;;  %2427 = vmatpush.msra.mxu3 %v518_v58  ;;  %v332_v57 = vld [vmem:[%s6754_s1 + $0x928] sm:$0xff]  ;;  %v383_v58 = vld [vmem:[%s6754_s1 + $0xac0] sm:$0xff] }
 0x1e0   :  { %2369 = vmatpush.msra.mxu0 %v368_v59  ;;  %2388 = vmatpush.msra.mxu1 %v419_v60  ;;  %v428_v59 = vld [vmem:[%s6754_s1 + $0xc28] sm:$0xff]  ;;  %v479_v60 = vld [vmem:[%s6754_s1 + $0xdc0] sm:$0xff] }
 0x1e1   :  { %2409 = vmatpush.msra.mxu2 %v464_v62  ;;  %2428 = vmatpush.msra.mxu3 %v515_v63  ;;  %v380_v62 = vld [vmem:[%s6754_s1 + $0xaa8] sm:$0xff]  ;;  %v1825_v63 = vadd.f32 %v1824_v56, %v1805_v53  ;;  %v1884_v22 = vpop.f32.mrf.mxu3  ;;  %v689_v53 = vld [vmem:[%s6754_s1 + $0x1450] sm:$0xff]  ;;  %v590_v56 = vld [vmem:[%s6754_s1 + $0x1138] sm:$0xff] }
 0x1e2   :  { %2370 = vmatpush.msra.mxu0 %v365_v0  ;;  %2389 = vmatpush.msra.mxu1 %v416_v1  ;;  %v425_v0 = vld [vmem:[%s6754_s1 + $0xc10] sm:$0xff]  ;;  %v476_v1 = vld [vmem:[%s6754_s1 + $0xda8] sm:$0xff] }
 0x1e3   :  { %2410 = vmatpush.msra.mxu2 %v461_v2  ;;  %2429 = vmatpush.msra.mxu3 %v512_v3  ;;  %v1844_v2 = vpop.f32.mrf.mxu1  ;;  %v566_v3 = vld [vmem:[%s6754_s1 + $0x1078] sm:$0xff] }
 0x1e4   :  { %2343 = vmatmul.f32.vlgmr.msrb.gmra.mxu2 %v2850_v8  ;;  %2371 = vmatpush.msra.mxu0 %v362_v4  ;;  %v662_v4 = vld [vmem:[%s6754_s1 + $0x1378] sm:$0xff]  ;;  %v2855_v8 = vld [vmem:[%s6755_s0 + $0x30] sm:$0xff] }
 0x1e5   :  { %2390 = vmatpush.msra.mxu1 %v413_v5  ;;  %2411 = vmatpush.msra.mxu2 %v458_v6  ;;  %v377_v5 = vld [vmem:[%s6754_s1 + $0xa90] sm:$0xff] }
 0x1e6   :  { %2430 = vmatpush.msra.mxu3 %v509_v7  ;;  %2303 = vmatmul.f32.vlgmr.msrb.gmra.mxu0 %v2851_v12  ;;  %v473_v6 = vld [vmem:[%s6754_s1 + $0xd90] sm:$0xff]  ;;  %v1845_v7 = vadd.f32 %v1844_v2, %v1825_v63  ;;  %v614_v12 = vld [vmem:[%s6754_s1 + $0x11f8] sm:$0xff]  ;;  %v632_v63 = vld [vmem:[%s6754_s1 + $0x1288] sm:$0xff] }
 0x1e7   :  { %2363 = vmatmul.f32.vlgmr.msrb.gmra.mxu3 %v2852_v14  ;;  %2372 = vmatpush.msra.mxu0 %v359_v9  ;;  %v2856_v9 = vld [vmem:[%s6755_s0 + $0x40] sm:$0xff]  ;;  %v710_v14 = vld [vmem:[%s6754_s1 + $0x14f8] sm:$0xff]  ;;  %v584_v2 = vld [vmem:[%s6754_s1 + $0x1108] sm:$0xff] }
 0x1e8   :  { %2391 = vmatpush.msra.mxu1 %v410_v10  ;;  %2412 = vmatpush.msra.mxu2 %v455_v11  ;;  %v1864_v10 = vpop.f32.mrf.mxu2  ;;  %v563_v11 = vld [vmem:[%s6754_s1 + $0x1060] sm:$0xff] }
 0x1e9   :  { %2431 = vmatpush.msra.mxu3 %v506_v13  ;;  %2323 = vmatmul.f32.vlgmr.msrb.gmra.mxu1 %v2853_v19  ;;  %v659_v13 = vld [vmem:[%s6754_s1 + $0x1360] sm:$0xff]  ;;  %v1865_v19 = vadd.f32 %v1864_v10, %v1845_v7  ;;  %v530_v7 = vld [vmem:[%s6754_s1 + $0xf58] sm:$0xff]  ;;  %v677_v10 = vld [vmem:[%s6754_s1 + $0x13f0] sm:$0xff] }
 0x1ea   :  { %2373 = vmatpush.msra.mxu0 %v356_v15  ;;  %2392 = vmatpush.msra.mxu1 %v407_v16  ;;  %v2857_v15 = vld [vmem:[%s6755_s0 + $0x38] sm:$0xff]  ;;  %v2858_v16 = vld [vmem:[%s6755_s0 + $0x48] sm:$0xff] }
 0x1eb   :  { %2413 = vmatpush.msra.mxu2 %v452_v17  ;;  %2432 = vmatpush.msra.mxu3 %v503_v18  ;;  %v560_v17 = vld [vmem:[%s6754_s1 + $0x1048] sm:$0xff]  ;;  %v611_v18 = vld [vmem:[%s6754_s1 + $0x11e0] sm:$0xff] }
 0x1ec   :  { %2374 = vmatpush.msra.mxu0 %v353_v20  ;;  %2393 = vmatpush.msra.mxu1 %v404_v21  ;;  %v656_v20 = vld [vmem:[%s6754_s1 + $0x1348] sm:$0xff]  ;;  %v707_v21 = vld [vmem:[%s6754_s1 + $0x14e0] sm:$0xff] }
 0x1ed   :  { %2414 = vmatpush.msra.mxu2 %v449_v24  ;;  %2433 = vmatpush.msra.mxu3 %v500_v25  ;;  %v608_v24 = vld [vmem:[%s6754_s1 + $0x11c8] sm:$0xff]  ;;  %v653_v25 = vld [vmem:[%s6754_s1 + $0x1330] sm:$0xff] }
 0x1ee   :  { %2375 = vmatpush.msra.mxu0 %v350_v27  ;;  %2394 = vmatpush.msra.mxu1 %v401_v28  ;;  %v1904_v27 = vpop.f32.mrf.mxu0  ;;  %v554_v28 = vld [vmem:[%s6754_s1 + $0x1018] sm:$0xff] }
 0x1ef   :  { %2415 = vmatpush.msra.mxu2 %v446_v29  ;;  %2434 = vmatpush.msra.mxu3 %v497_v30  ;;  %v605_v29 = vld [vmem:[%s6754_s1 + $0x11b0] sm:$0xff]  ;;  %v1885_v30 = vadd.f32 %v1884_v22, %v1865_v19 }
 0x1f0   :  { %2376 = vmatpush.msra.mxu0 %v347_v31  ;;  %2395 = vmatpush.msra.mxu1 %v398_v32  ;;  %v650_v31 = vld [vmem:[%s6754_s1 + $0x1318] sm:$0xff]  ;;  %v701_v32 = vld [vmem:[%s6754_s1 + $0x14b0] sm:$0xff]  ;;  %v1944_v43 = vpop.f32.mrf.mxu2 }
 0x1f1   :  { %2416 = vmatpush.msra.mxu2 %v443_v34  ;;  %2435 = vmatpush.msra.mxu3 %v494_v35  ;;  %v602_v34 = vld [vmem:[%s6754_s1 + $0x1198] sm:$0xff]  ;;  %v1905_v35 = vadd.f32 %v1904_v27, %v1885_v30 }
 0x1f2   :  { %2377 = vmatpush.msra.mxu0 %v344_v37  ;;  %2396 = vmatpush.msra.mxu1 %v395_v38  ;;  %v698_v37 = vld [vmem:[%s6754_s1 + $0x1498] sm:$0xff]  ;;  %v1924_v38 = vpop.f32.mrf.mxu1 }
 0x1f3   :  { %2417 = vmatpush.msra.mxu2 %v440_v39  ;;  %2436 = vmatpush.msra.mxu3 %v491_v40  ;;  %v548_v39 = vld [vmem:[%s6754_s1 + $0xfe8] sm:$0xff]  ;;  %v599_v40 = vld [vmem:[%s6754_s1 + $0x1180] sm:$0xff]  ;;  %v1925_v46 = vadd.f32 %v1924_v38, %v1905_v35  ;;  %v854_v30 = vld [vmem:[%s6754_s1 + $0x1978] sm:$0xff] }
 0x1f4   :  { %2378 = vmatpush.msra.mxu0 %v341_v41  ;;  %2397 = vmatpush.msra.mxu1 %v392_v42  ;;  %v644_v41 = vld [vmem:[%s6754_s1 + $0x12e8] sm:$0xff]  ;;  %v695_v42 = vld [vmem:[%s6754_s1 + $0x1480] sm:$0xff]  ;;  %v806_v38 = vld [vmem:[%s6754_s1 + $0x17f8] sm:$0xff] }
 0x1f5   :  { %2418 = vmatpush.msra.mxu2 %v437_v44  ;;  %2437 = vmatpush.msra.mxu3 %v488_v45  ;;  %v545_v44 = vld [vmem:[%s6754_s1 + $0xfd0] sm:$0xff]  ;;  %v596_v45 = vld [vmem:[%s6754_s1 + $0x1168] sm:$0xff]  ;;  %v2860_v35 = vld [vmem:[%s6755_s0 + $0x60] sm:$0xff] }
 0x1f6   :  { %2379 = vmatpush.msra.mxu0 %v338_v47  ;;  %2398 = vmatpush.msra.mxu1 %v389_v48  ;;  %v641_v47 = vld [vmem:[%s6754_s1 + $0x12d0] sm:$0xff]  ;;  %v692_v48 = vld [vmem:[%s6754_s1 + $0x1468] sm:$0xff] }
 0x1f7   :  { %2419 = vmatpush.msra.mxu2 %v434_v49  ;;  %2438 = vmatpush.msra.mxu3 %v485_v50  ;;  %v542_v49 = vld [vmem:[%s6754_s1 + $0xfb8] sm:$0xff]  ;;  %v593_v50 = vld [vmem:[%s6754_s1 + $0x1150] sm:$0xff] }
 0x1f8   :  { %2380 = vmatpush.msra.mxu0 %v335_v51  ;;  %2399 = vmatpush.msra.mxu1 %v386_v52  ;;  %v1945_v51 = vadd.f32 %v1944_v43, %v1925_v46  ;;  %v638_v52 = vld [vmem:[%s6754_s1 + $0x12b8] sm:$0xff]  ;;  %v2862_v43 = vld [vmem:[%s6755_s0 + $0x68] sm:$0xff] }
 0x1f9   :  { %2420 = vmatpush.msra.mxu2 %v431_v54  ;;  %2439 = vmatpush.msra.mxu3 %v482_v55  ;;  %v1964_v54 = vpop.f32.mrf.mxu3  ;;  %v539_v55 = vld [vmem:[%s6754_s1 + $0xfa0] sm:$0xff] }
 0x1fa   :  { %2381 = vmatpush.msra.mxu0 %v332_v57  ;;  %2400 = vmatpush.msra.mxu1 %v383_v58  ;;  %v635_v57 = vld [vmem:[%s6754_s1 + $0x12a0] sm:$0xff]  ;;  %v686_v58 = vld [vmem:[%s6754_s1 + $0x1438] sm:$0xff] }
 0x1fb   :  { %2421 = vmatpush.msra.mxu2 %v428_v59  ;;  %2440 = vmatpush.msra.mxu3 %v479_v60  ;;  %v1984_v59 = vpop.f32.mrf.mxu0  ;;  %v536_v60 = vld [vmem:[%s6754_s1 + $0xf88] sm:$0xff] }
 0x1fc   :  { %2382 = vmatpush.msra.mxu0 %v329_v61  ;;  %2401 = vmatpush.msra.mxu1 %v380_v62  ;;  %v587_v61 = vld [vmem:[%s6754_s1 + $0x1120] sm:$0xff]  ;;  %v1965_v62 = vadd.f32 %v1964_v54, %v1945_v51 }
 0x1fd   :  { %2422 = vmatpush.msra.mxu2 %v425_v0  ;;  %2441 = vmatpush.msra.mxu3 %v476_v1  ;;  %v683_v0 = vld [vmem:[%s6754_s1 + $0x1420] sm:$0xff]  ;;  %v533_v1 = vld [vmem:[%s6754_s1 + $0xf70] sm:$0xff] }
 0x1fe   :  { %2383 = vmatmul.f32.vlgmr.msra.gmra.mxu0 %v2855_v8  ;;  %2423 = vmatmul.f32.vlgmr.msra.gmra.mxu2 %v2856_v9  ;;  %v581_v8 = vld [vmem:[%s6754_s1 + $0x10f0] sm:$0xff]  ;;  %v626_v9 = vld [vmem:[%s6754_s1 + $0x1258] sm:$0xff] }
 0x1ff   :  { %2447 = vmatpush.msrb.mxu0 %v566_v3  ;;  %2487 = vmatpush.msrb.mxu2 %v662_v4  ;;  %v1985_v3 = vadd.f32 %v1984_v59, %v1965_v62  ;;  %v629_v4 = vld [vmem:[%s6754_s1 + $0x1270] sm:$0xff] }
 0x200   :  { %2402 = vmatpush.msra.mxu1 %v377_v5  ;;  %2442 = vmatpush.msra.mxu3 %v473_v6  ;;  %v680_v5 = vld [vmem:[%s6754_s1 + $0x1408] sm:$0xff]  ;;  %v2004_v6 = vpop.f32.mrf.mxu1 }
 0x201   :  { %2403 = vmatmul.f32.vlgmr.msra.gmra.mxu1 %v2857_v15  ;;  %2443 = vmatmul.f32.vlgmr.msra.gmra.mxu3 %v2858_v16  ;;  %v623_v15 = vld [vmem:[%s6754_s1 + $0x1240] sm:$0xff]  ;;  %v674_v16 = vld [vmem:[%s6754_s1 + $0x13d8] sm:$0xff]  ;;  %v2044_v22 = vpop.f32.mrf.mxu3 }
 0x202   :  { %2448 = vmatpush.msrb.mxu0 %v563_v11  ;;  %2467 = vmatpush.msrb.mxu1 %v614_v12  ;;  %v2024_v11 = vpop.f32.mrf.mxu2  ;;  %v527_v12 = vld [vmem:[%s6754_s1 + $0xf40] sm:$0xff] }
 0x203   :  { %2488 = vmatpush.msrb.mxu2 %v659_v13  ;;  %2507 = vmatpush.msrb.mxu3 %v710_v14  ;;  %v578_v13 = vld [vmem:[%s6754_s1 + $0x10d8] sm:$0xff]  ;;  %v2005_v14 = vadd.f32 %v2004_v6, %v1985_v3  ;;  %v2064_v27 = vpop.f32.mrf.mxu0 }
 0x204   :  { %2449 = vmatpush.msrb.mxu0 %v560_v17  ;;  %2468 = vmatpush.msrb.mxu1 %v611_v18  ;;  %v524_v17 = vld [vmem:[%s6754_s1 + $0xf28] sm:$0xff]  ;;  %v575_v18 = vld [vmem:[%s6754_s1 + $0x10c0] sm:$0xff] }
 0x205   :  { %2489 = vmatpush.msrb.mxu2 %v656_v20  ;;  %2508 = vmatpush.msrb.mxu3 %v707_v21  ;;  %v2025_v19 = vadd.f32 %v2024_v11, %v2005_v14  ;;  %v620_v20 = vld [vmem:[%s6754_s1 + $0x1228] sm:$0xff]  ;;  %v671_v21 = vld [vmem:[%s6754_s1 + $0x13c0] sm:$0xff] }
 0x206   :  { %2450 = vmatpush.msrb.mxu0 %v557_v23  ;;  %2469 = vmatpush.msrb.mxu1 %v608_v24  ;;  %v521_v23 = vld [vmem:[%s6754_s1 + $0xf10] sm:$0xff]  ;;  %v572_v24 = vld [vmem:[%s6754_s1 + $0x10a8] sm:$0xff] }
 0x207   :  { %2490 = vmatpush.msrb.mxu2 %v653_v25  ;;  %2509 = vmatpush.msrb.mxu3 %v704_v26  ;;  %v617_v25 = vld [vmem:[%s6754_s1 + $0x1210] sm:$0xff]  ;;  %v668_v26 = vld [vmem:[%s6754_s1 + $0x13a8] sm:$0xff] }
 0x208   :  { %2451 = vmatpush.msrb.mxu0 %v554_v28  ;;  %2470 = vmatpush.msrb.mxu1 %v605_v29  ;;  %v2045_v28 = vadd.f32 %v2044_v22, %v2025_v19  ;;  %v758_v29 = vld [vmem:[%s6754_s1 + $0x1678] sm:$0xff] }
 0x209   :  { %2491 = vmatpush.msrb.mxu2 %v650_v31  ;;  %2510 = vmatpush.msrb.mxu3 %v701_v32  ;;  %v569_v31 = vld [vmem:[%s6754_s1 + $0x1090] sm:$0xff]  ;;  %v2124_v54 = vpop.f32.mrf.mxu3 }
 0x20a   :  { %2452 = vmatpush.msrb.mxu0 %v551_v33  ;;  %2471 = vmatpush.msrb.mxu1 %v602_v34  ;;  %v665_v32 = vld [vmem:[%s6754_s1 + $0x1390] sm:$0xff]  ;;  %v2065_v33 = vadd.f32 %v2064_v27, %v2045_v28  ;;  %v776_v28 = vld [vmem:[%s6754_s1 + $0x1708] sm:$0xff] }
 0x20b   :  { %2492 = vmatpush.msrb.mxu2 %v647_v36  ;;  %2511 = vmatpush.msrb.mxu3 %v698_v37  ;;  %v2859_v34 = vld [vmem:[%s6755_s0 + $0x50] sm:$0xff]  ;;  %v2084_v36 = vpop.f32.mrf.mxu1  ;;  %v755_v37 = vld [vmem:[%s6754_s1 + $0x1660] sm:$0xff] }
 0x20c   :  { %2453 = vmatpush.msrb.mxu0 %v548_v39  ;;  %2472 = vmatpush.msrb.mxu1 %v599_v40  ;;  %v851_v39 = vld [vmem:[%s6754_s1 + $0x1960] sm:$0xff]  ;;  %v902_v40 = vld [vmem:[%s6754_s1 + $0x1af8] sm:$0xff]  ;;  %v2085_v46 = vadd.f32 %v2084_v36, %v2065_v33  ;;  %v725_v27 = vld [vmem:[%s6754_s1 + $0x1570] sm:$0xff] }
 0x20d   :  { %2493 = vmatpush.msrb.mxu2 %v644_v41  ;;  %2512 = vmatpush.msrb.mxu3 %v695_v42  ;;  %v2104_v41 = vpop.f32.mrf.mxu2  ;;  %v2861_v42 = vld [vmem:[%s6755_s0 + $0x58] sm:$0xff]  ;;  %v773_v33 = vld [vmem:[%s6754_s1 + $0x16f0] sm:$0xff] }
 0x20e   :  { %2454 = vmatpush.msrb.mxu0 %v545_v44  ;;  %2473 = vmatpush.msrb.mxu1 %v596_v45  ;;  %v752_v44 = vld [vmem:[%s6754_s1 + $0x1648] sm:$0xff]  ;;  %v803_v45 = vld [vmem:[%s6754_s1 + $0x17e0] sm:$0xff]  ;;  %v2105_v51 = vadd.f32 %v2104_v41, %v2085_v46  ;;  %v869_v36 = vld [vmem:[%s6754_s1 + $0x19f0] sm:$0xff] }
 0x20f   :  { %2494 = vmatpush.msrb.mxu2 %v641_v47  ;;  %2513 = vmatpush.msrb.mxu3 %v692_v48  ;;  %v848_v47 = vld [vmem:[%s6754_s1 + $0x1948] sm:$0xff]  ;;  %v899_v48 = vld [vmem:[%s6754_s1 + $0x1ae0] sm:$0xff] }
 0x210   :  { %2455 = vmatpush.msrb.mxu0 %v542_v49  ;;  %2474 = vmatpush.msrb.mxu1 %v593_v50  ;;  %v749_v49 = vld [vmem:[%s6754_s1 + $0x1630] sm:$0xff]  ;;  %v800_v50 = vld [vmem:[%s6754_s1 + $0x17c8] sm:$0xff]  ;;  %v2125_v62 = vadd.f32 %v2124_v54, %v2105_v51  ;;  %v815_v41 = vld [vmem:[%s6754_s1 + $0x1840] sm:$0xff] }
 0x211   :  { %2495 = vmatpush.msrb.mxu2 %v638_v52  ;;  %2514 = vmatpush.msrb.mxu3 %v689_v53  ;;  %v845_v52 = vld [vmem:[%s6754_s1 + $0x1930] sm:$0xff]  ;;  %v896_v53 = vld [vmem:[%s6754_s1 + $0x1ac8] sm:$0xff]  ;;  %v950_v54 = vld [vmem:[%s6754_s1 + $0x1c78] sm:$0xff] }
 0x212   :  { %2456 = vmatpush.msrb.mxu0 %v539_v55  ;;  %2475 = vmatpush.msrb.mxu1 %v590_v56  ;;  %v746_v55 = vld [vmem:[%s6754_s1 + $0x1618] sm:$0xff]  ;;  %v797_v56 = vld [vmem:[%s6754_s1 + $0x17b0] sm:$0xff]  ;;  %v812_v46 = vld [vmem:[%s6754_s1 + $0x1828] sm:$0xff] }
 0x213   :  { %2496 = vmatpush.msrb.mxu2 %v635_v57  ;;  %2515 = vmatpush.msrb.mxu3 %v686_v58  ;;  %v842_v57 = vld [vmem:[%s6754_s1 + $0x1918] sm:$0xff]  ;;  %v893_v58 = vld [vmem:[%s6754_s1 + $0x1ab0] sm:$0xff] }
 0x214   :  { %2457 = vmatpush.msrb.mxu0 %v536_v60  ;;  %2476 = vmatpush.msrb.mxu1 %v587_v61  ;;  %v743_v60 = vld [vmem:[%s6754_s1 + $0x1600] sm:$0xff]  ;;  %v794_v61 = vld [vmem:[%s6754_s1 + $0x1798] sm:$0xff]  ;;  %v809_v51 = vld [vmem:[%s6754_s1 + $0x1810] sm:$0xff] }
 0x215   :  { %2497 = vmatpush.msrb.mxu2 %v632_v63  ;;  %2516 = vmatpush.msrb.mxu3 %v683_v0  ;;  %v2144_v59 = vpop.f32.mrf.mxu0  ;;  %v839_v63 = vld [vmem:[%s6754_s1 + $0x1900] sm:$0xff]  ;;  %v890_v0 = vld [vmem:[%s6754_s1 + $0x1a98] sm:$0xff] }
 0x216   :  { %2458 = vmatpush.msrb.mxu0 %v533_v1  ;;  %2477 = vmatpush.msrb.mxu1 %v584_v2  ;;  %v740_v1 = vld [vmem:[%s6754_s1 + $0x15e8] sm:$0xff]  ;;  %v791_v2 = vld [vmem:[%s6754_s1 + $0x1780] sm:$0xff]  ;;  %v2145_v3 = vadd.f32 %v2144_v59, %v2125_v62 }
 0x217   :  { %2498 = vmatpush.msrb.mxu2 %v629_v4  ;;  %2517 = vmatpush.msrb.mxu3 %v680_v5  ;;  %v836_v4 = vld [vmem:[%s6754_s1 + $0x18e8] sm:$0xff]  ;;  %v887_v5 = vld [vmem:[%s6754_s1 + $0x1a80] sm:$0xff] }
 0x218   :  { %2459 = vmatpush.msrb.mxu0 %v530_v7  ;;  %2478 = vmatpush.msrb.mxu1 %v581_v8  ;;  %v2164_v6 = vpop.f32.mrf.mxu1  ;;  %v737_v7 = vld [vmem:[%s6754_s1 + $0x15d0] sm:$0xff]  ;;  %v788_v8 = vld [vmem:[%s6754_s1 + $0x1768] sm:$0xff]  ;;  %v2864_v59 = vld [vmem:[%s6755_s0 + $0x80] sm:$0xff] }
 0x219   :  { %2499 = vmatpush.msrb.mxu2 %v626_v9  ;;  %2518 = vmatpush.msrb.mxu3 %v677_v10  ;;  %v833_v9 = vld [vmem:[%s6754_s1 + $0x18d0] sm:$0xff]  ;;  %v884_v10 = vld [vmem:[%s6754_s1 + $0x1a68] sm:$0xff]  ;;  %v2165_v14 = vadd.f32 %v2164_v6, %v2145_v3  ;;  %v1043_v62 = vld [vmem:[%s6754_s1 + $0x1f60] sm:$0xff] }
 0x21a   :  { %2460 = vmatpush.msrb.mxu0 %v527_v12  ;;  %2479 = vmatpush.msrb.mxu1 %v578_v13  ;;  %v734_v12 = vld [vmem:[%s6754_s1 + $0x15b8] sm:$0xff]  ;;  %v785_v13 = vld [vmem:[%s6754_s1 + $0x1750] sm:$0xff]  ;;  %v995_v3 = vld [vmem:[%s6754_s1 + $0x1de0] sm:$0xff] }
 0x21b   :  { %2500 = vmatpush.msrb.mxu2 %v623_v15  ;;  %2519 = vmatpush.msrb.mxu3 %v674_v16  ;;  %v2184_v11 = vpop.f32.mrf.mxu2  ;;  %v830_v15 = vld [vmem:[%s6754_s1 + $0x18b8] sm:$0xff]  ;;  %v881_v16 = vld [vmem:[%s6754_s1 + $0x1a50] sm:$0xff]  ;;  %v1091_v6 = vld [vmem:[%s6754_s1 + $0x20e0] sm:$0xff] }
 0x21c   :  { %2461 = vmatpush.msrb.mxu0 %v524_v17  ;;  %2480 = vmatpush.msrb.mxu1 %v575_v18  ;;  %v731_v17 = vld [vmem:[%s6754_s1 + $0x15a0] sm:$0xff]  ;;  %v782_v18 = vld [vmem:[%s6754_s1 + $0x1738] sm:$0xff]  ;;  %v2185_v19 = vadd.f32 %v2184_v11, %v2165_v14  ;;  %v1088_v11 = vld [vmem:[%s6754_s1 + $0x20c8] sm:$0xff] }
 0x21d   :  { %2501 = vmatpush.msrb.mxu2 %v620_v20  ;;  %2520 = vmatpush.msrb.mxu3 %v671_v21  ;;  %v827_v20 = vld [vmem:[%s6754_s1 + $0x18a0] sm:$0xff]  ;;  %v878_v21 = vld [vmem:[%s6754_s1 + $0x1a38] sm:$0xff] }
 0x21e   :  { %2462 = vmatpush.msrb.mxu0 %v521_v23  ;;  %2481 = vmatpush.msrb.mxu1 %v572_v24  ;;  %v2204_v22 = vpop.f32.mrf.mxu3  ;;  %v728_v23 = vld [vmem:[%s6754_s1 + $0x1588] sm:$0xff]  ;;  %v779_v24 = vld [vmem:[%s6754_s1 + $0x1720] sm:$0xff]  ;;  %v1034_v14 = vld [vmem:[%s6754_s1 + $0x1f18] sm:$0xff] }
 0x21f   :  { %2502 = vmatpush.msrb.mxu2 %v617_v25  ;;  %2521 = vmatpush.msrb.mxu3 %v668_v26  ;;  %v824_v25 = vld [vmem:[%s6754_s1 + $0x1888] sm:$0xff]  ;;  %v875_v26 = vld [vmem:[%s6754_s1 + $0x1a20] sm:$0xff] }
 0x220   :  { %2463 = vmatmul.f32.vlgmr.msrb.gmra.mxu0 %v2859_v34  ;;  %2503 = vmatmul.f32.vlgmr.msrb.gmra.mxu2 %v2860_v35  ;;  %v818_v35 = vld [vmem:[%s6754_s1 + $0x1858] sm:$0xff] }
 0x221   :  { %2527 = vmatpush.msra.mxu0 %v758_v29  ;;  %2567 = vmatpush.msra.mxu2 %v854_v30  ;;  %v2205_v29 = vadd.f32 %v2204_v22, %v2185_v19  ;;  %v821_v30 = vld [vmem:[%s6754_s1 + $0x1870] sm:$0xff]  ;;  %v1082_v19 = vld [vmem:[%s6754_s1 + $0x2098] sm:$0xff]  ;;  %v1028_v22 = vld [vmem:[%s6754_s1 + $0x1ee8] sm:$0xff] }
 0x222   :  { %2482 = vmatpush.msrb.mxu1 %v569_v31  ;;  %2522 = vmatpush.msrb.mxu3 %v665_v32  ;;  %v872_v31 = vld [vmem:[%s6754_s1 + $0x1a08] sm:$0xff]  ;;  %v722_v32 = vld [vmem:[%s6754_s1 + $0x1558] sm:$0xff] }
 0x223   :  { %2483 = vmatmul.f32.vlgmr.msrb.gmra.mxu1 %v2861_v42  ;;  %2523 = vmatmul.f32.vlgmr.msrb.gmra.mxu3 %v2862_v43  ;;  %v866_v42 = vld [vmem:[%s6754_s1 + $0x19d8] sm:$0xff] }
 0x224   :  { %2528 = vmatpush.msra.mxu0 %v755_v37  ;;  %2547 = vmatpush.msra.mxu1 %v806_v38  ;;  %v719_v38 = vld [vmem:[%s6754_s1 + $0x1540] sm:$0xff] }
 0x225   :  { %2568 = vmatpush.msra.mxu2 %v851_v39  ;;  %2587 = vmatpush.msra.mxu3 %v902_v40  ;;  %v770_v39 = vld [vmem:[%s6754_s1 + $0x16d8] sm:$0xff] }
 0x226   :  { %2529 = vmatpush.msra.mxu0 %v752_v44  ;;  %2548 = vmatpush.msra.mxu1 %v803_v45  ;;  %v716_v44 = vld [vmem:[%s6754_s1 + $0x1528] sm:$0xff]  ;;  %v767_v45 = vld [vmem:[%s6754_s1 + $0x16c0] sm:$0xff] }
 0x227   :  { %2569 = vmatpush.msra.mxu2 %v848_v47  ;;  %2588 = vmatpush.msra.mxu3 %v899_v48  ;;  %v863_v47 = vld [vmem:[%s6754_s1 + $0x19c0] sm:$0xff] }
 0x228   :  { %2530 = vmatpush.msra.mxu0 %v749_v49  ;;  %2549 = vmatpush.msra.mxu1 %v800_v50  ;;  %v713_v49 = vld [vmem:[%s6754_s1 + $0x1510] sm:$0xff]  ;;  %v764_v50 = vld [vmem:[%s6754_s1 + $0x16a8] sm:$0xff] }
 0x229   :  { %2570 = vmatpush.msra.mxu2 %v845_v52  ;;  %2589 = vmatpush.msra.mxu3 %v896_v53  ;;  %v860_v52 = vld [vmem:[%s6754_s1 + $0x19a8] sm:$0xff] }
 0x22a   :  { %2531 = vmatpush.msra.mxu0 %v746_v55  ;;  %2550 = vmatpush.msra.mxu1 %v797_v56  ;;  %v1046_v55 = vld [vmem:[%s6754_s1 + $0x1f78] sm:$0xff]  ;;  %v761_v56 = vld [vmem:[%s6754_s1 + $0x1690] sm:$0xff] }
 0x22b   :  { %2571 = vmatpush.msra.mxu2 %v842_v57  ;;  %2590 = vmatpush.msra.mxu3 %v893_v58  ;;  %v857_v57 = vld [vmem:[%s6754_s1 + $0x1990] sm:$0xff] }
 0x22c   :  { %2532 = vmatpush.msra.mxu0 %v743_v60  ;;  %2551 = vmatpush.msra.mxu1 %v794_v61  ;;  %v2863_v58 = vld [vmem:[%s6755_s0 + $0x70] sm:$0xff]  ;;  %v947_v60 = vld [vmem:[%s6754_s1 + $0x1c60] sm:$0xff]  ;;  %v998_v61 = vld [vmem:[%s6754_s1 + $0x1df8] sm:$0xff] }
 0x22d   :  { %2572 = vmatpush.msra.mxu2 %v839_v63  ;;  %2591 = vmatpush.msra.mxu3 %v890_v0  ;;  %v1094_v63 = vld [vmem:[%s6754_s1 + $0x20f8] sm:$0xff] }
 0x22e   :  { %2533 = vmatpush.msra.mxu0 %v740_v1  ;;  %2552 = vmatpush.msra.mxu1 %v791_v2  ;;  %v2865_v0 = vld [vmem:[%s6755_s0 + $0x78] sm:$0xff]  ;;  %v2866_v1 = vld [vmem:[%s6755_s0 + $0x88] sm:$0xff] }
 0x22f   :  { %2573 = vmatpush.msra.mxu2 %v836_v4  ;;  %2592 = vmatpush.msra.mxu3 %v887_v5  ;;  %v944_v2 = vld [vmem:[%s6754_s1 + $0x1c48] sm:$0xff] }
 0x230   :  { %2534 = vmatpush.msra.mxu0 %v737_v7  ;;  %2553 = vmatpush.msra.mxu1 %v788_v8  ;;  %v1040_v5 = vld [vmem:[%s6754_s1 + $0x1f48] sm:$0xff]  ;;  %v941_v8 = vld [vmem:[%s6754_s1 + $0x1c30] sm:$0xff] }
 0x231   :  { %2574 = vmatpush.msra.mxu2 %v833_v9  ;;  %2593 = vmatpush.msra.mxu3 %v884_v10  ;;  %v992_v9 = vld [vmem:[%s6754_s1 + $0x1dc8] sm:$0xff]  ;;  %v1037_v10 = vld [vmem:[%s6754_s1 + $0x1f30] sm:$0xff] }
 0x232   :  { %2535 = vmatpush.msra.mxu0 %v734_v12  ;;  %2554 = vmatpush.msra.mxu1 %v785_v13  ;;  %v938_v12 = vld [vmem:[%s6754_s1 + $0x1c18] sm:$0xff]  ;;  %v989_v13 = vld [vmem:[%s6754_s1 + $0x1db0] sm:$0xff] }
 0x233   :  { %2575 = vmatpush.msra.mxu2 %v830_v15  ;;  %2594 = vmatpush.msra.mxu3 %v881_v16  ;;  %v1085_v15 = vld [vmem:[%s6754_s1 + $0x20b0] sm:$0xff]  ;;  %v935_v16 = vld [vmem:[%s6754_s1 + $0x1c00] sm:$0xff] }
 0x234   :  { %2536 = vmatpush.msra.mxu0 %v731_v17  ;;  %2555 = vmatpush.msra.mxu1 %v782_v18  ;;  %v986_v17 = vld [vmem:[%s6754_s1 + $0x1d98] sm:$0xff]  ;;  %v1031_v18 = vld [vmem:[%s6754_s1 + $0x1f00] sm:$0xff] }
 0x235   :  { %2576 = vmatpush.msra.mxu2 %v827_v20  ;;  %2595 = vmatpush.msra.mxu3 %v878_v21  ;;  %v932_v20 = vld [vmem:[%s6754_s1 + $0x1be8] sm:$0xff]  ;;  %v983_v21 = vld [vmem:[%s6754_s1 + $0x1d80] sm:$0xff] }
 0x236   :  { %2537 = vmatpush.msra.mxu0 %v728_v23  ;;  %2556 = vmatpush.msra.mxu1 %v779_v24  ;;  %v1079_v23 = vld [vmem:[%s6754_s1 + $0x2080] sm:$0xff] }
 0x237   :  { %2577 = vmatpush.msra.mxu2 %v824_v25  ;;  %2596 = vmatpush.msra.mxu3 %v875_v26  ;;  %v2224_v34 = vpop.f32.mrf.mxu0  ;;  %v929_v25 = vld [vmem:[%s6754_s1 + $0x1bd0] sm:$0xff]  ;;  %v980_v26 = vld [vmem:[%s6754_s1 + $0x1d68] sm:$0xff] }
 0x238   :  { %2538 = vmatpush.msra.mxu0 %v725_v27  ;;  %2557 = vmatpush.msra.mxu1 %v776_v28  ;;  %v2225_v37 = vadd.f32 %v2224_v34, %v2205_v29  ;;  %v1025_v28 = vld [vmem:[%s6754_s1 + $0x1ed0] sm:$0xff]  ;;  %v1076_v29 = vld [vmem:[%s6754_s1 + $0x2068] sm:$0xff] }
 0x239   :  { %2578 = vmatpush.msra.mxu2 %v821_v30  ;;  %2597 = vmatpush.msra.mxu3 %v872_v31  ;;  %v2244_v40 = vpop.f32.mrf.mxu1  ;;  %v926_v30 = vld [vmem:[%s6754_s1 + $0x1bb8] sm:$0xff]  ;;  %v977_v31 = vld [vmem:[%s6754_s1 + $0x1d50] sm:$0xff] }
 0x23a   :  { %2539 = vmatpush.msra.mxu0 %v722_v32  ;;  %2558 = vmatpush.msra.mxu1 %v773_v33  ;;  %v2245_v43 = vadd.f32 %v2244_v40, %v2225_v37  ;;  %v1022_v33 = vld [vmem:[%s6754_s1 + $0x1eb8] sm:$0xff]  ;;  %v1073_v34 = vld [vmem:[%s6754_s1 + $0x2050] sm:$0xff]  ;;  %v1019_v40 = vld [vmem:[%s6754_s1 + $0x1ea0] sm:$0xff] }
 0x23b   :  { %2579 = vmatpush.msra.mxu2 %v818_v35  ;;  %2598 = vmatpush.msra.mxu3 %v869_v36  ;;  %v923_v36 = vld [vmem:[%s6754_s1 + $0x1ba0] sm:$0xff]  ;;  %v974_v37 = vld [vmem:[%s6754_s1 + $0x1d38] sm:$0xff] }
 0x23c   :  { %2540 = vmatpush.msra.mxu0 %v719_v38  ;;  %2559 = vmatpush.msra.mxu1 %v770_v39  ;;  %v2748_v48 = vsub.f32 0.0, %v2245_v43  ;;  %v971_v43 = vld [vmem:[%s6754_s1 + $0x1d20] sm:$0xff] }
 0x23d   :  { %2580 = vmatpush.msra.mxu2 %v815_v41  ;;  %2599 = vmatpush.msra.mxu3 %v866_v42  ;;  %v1070_v41 = vld [vmem:[%s6754_s1 + $0x2038] sm:$0xff]  ;;  %v920_v42 = vld [vmem:[%s6754_s1 + $0x1b88] sm:$0xff] }
 0x23e   :  { %2541 = vmatpush.msra.mxu0 %v716_v44  ;;  %2560 = vmatpush.msra.mxu1 %v767_v45  ;;  %v2752_v53 = vmul.f32 1.442695, %v2748_v48  ;;  %v1016_v45 = vld [vmem:[%s6754_s1 + $0x1e88] sm:$0xff]  ;;  %v917_v48 = vld [vmem:[%s6754_s1 + $0x1b70] sm:$0xff] }
 0x23f   :  { %2581 = vmatpush.msra.mxu2 %v812_v46  ;;  %2600 = vmatpush.msra.mxu3 %v863_v47  ;;  %v1067_v46 = vld [vmem:[%s6754_s1 + $0x2020] sm:$0xff] }
 0x240   :  { %2542 = vmatpush.msra.mxu0 %v713_v49  ;;  %2561 = vmatpush.msra.mxu1 %v764_v50  ;;  %2815 = vpow2.f32 %v2752_v53  ;;  %v968_v49 = vld [vmem:[%s6754_s1 + $0x1d08] sm:$0xff] }
 0x241   :  { %2582 = vmatpush.msra.mxu2 %v809_v51  ;;  %2601 = vmatpush.msra.mxu3 %v860_v52  ;;  %v1013_v51 = vld [vmem:[%s6754_s1 + $0x1e70] sm:$0xff]  ;;  %v1064_v52 = vld [vmem:[%s6754_s1 + $0x2008] sm:$0xff] }
 0x242   :  { %2543 = vmatmul.f32.vlgmr.msra.gmra.mxu0 %v2863_v58  ;;  %2583 = vmatmul.f32.vlgmr.msra.gmra.mxu2 %v2864_v59  ;;  %v911_v58 = vld [vmem:[%s6754_s1 + $0x1b40] sm:$0xff]  ;;  %v962_v59 = vld [vmem:[%s6754_s1 + $0x1cd8] sm:$0xff] }
 0x243   :  { %2607 = vmatpush.msrb.mxu0 %v950_v54  ;;  %2647 = vmatpush.msrb.mxu2 %v1046_v55  ;;  %v914_v54 = vld [vmem:[%s6754_s1 + $0x1b58] sm:$0xff]  ;;  %v965_v55 = vld [vmem:[%s6754_s1 + $0x1cf0] sm:$0xff] }
 0x244   :  { %2562 = vmatpush.msra.mxu1 %v761_v56  ;;  %2602 = vmatpush.msra.mxu3 %v857_v57  ;;  %v1010_v56 = vld [vmem:[%s6754_s1 + $0x1e58] sm:$0xff]  ;;  %v1061_v57 = vld [vmem:[%s6754_s1 + $0x1ff0] sm:$0xff] }
 0x245   :  { %2563 = vmatmul.f32.vlgmr.msra.gmra.mxu1 %v2865_v0  ;;  %2603 = vmatmul.f32.vlgmr.msra.gmra.mxu3 %v2866_v1  ;;  %v1004_v0 = vld [vmem:[%s6754_s1 + $0x1e28] sm:$0xff]  ;;  %v1055_v1 = vld [vmem:[%s6754_s1 + $0x1fc0] sm:$0xff] }
 0x246   :  { %v2816_v4 = vpop.eup %2815  ;;  %2608 = vmatpush.msrb.mxu0 %v947_v60  ;;  %2627 = vmatpush.msrb.mxu1 %v998_v61  ;;  %v1007_v60 = vld [vmem:[%s6754_s1 + $0x1e40] sm:$0xff]  ;;  %v1058_v61 = vld [vmem:[%s6754_s1 + $0x1fd8] sm:$0xff] }
 0x247   :  { %2648 = vmatpush.msrb.mxu2 %v1043_v62  ;;  %2667 = vmatpush.msrb.mxu3 %v1094_v63  ;;  %v6410_v7 = vadd.f32 1.0, %v2816_v4  ;;  %v908_v62 = vld [vmem:[%s6754_s1 + $0x1b28] sm:$0xff]  ;;  %v959_v63 = vld [vmem:[%s6754_s1 + $0x1cc0] sm:$0xff]  ;;  %v1001_v4 = vld [vmem:[%s6754_s1 + $0x1e10] sm:$0xff] }
 0x248   :  { %2609 = vmatpush.msrb.mxu0 %v944_v2  ;;  %2628 = vmatpush.msrb.mxu1 %v995_v3  ;;  %v905_v2 = vld [vmem:[%s6754_s1 + $0x1b10] sm:$0xff]  ;;  %v956_v3 = vld [vmem:[%s6754_s1 + $0x1ca8] sm:$0xff] }
 0x249   :  { %2817 = vrcp.f32 %v6410_v7  ;;  %2649 = vmatpush.msrb.mxu2 %v1040_v5  ;;  %2668 = vmatpush.msrb.mxu3 %v1091_v6  ;;  %v2785_v35 = vand.u32 2147483648, %v6410_v7  ;;  %v2783_v39 = vand.u32 2147483647, %v6410_v7  ;;  %vm2779_vm5 = vweird.f32 %v6410_v7  ;;  %v1052_v5 = vld [vmem:[%s6754_s1 + $0x1fa8] sm:$0xff]  ;;  %v1142_v6 = vld [vmem:[%s6754_s1 + $0x2278] sm:$0xff] }
 0x24a   :  { %2610 = vmatpush.msrb.mxu0 %v941_v8  ;;  %2629 = vmatpush.msrb.mxu1 %v992_v9  ;;  %v953_v8 = vld [vmem:[%s6754_s1 + $0x1c90] sm:$0xff] }
 0x24b   :  { %2650 = vmatpush.msrb.mxu2 %v1037_v10  ;;  %2669 = vmatpush.msrb.mxu3 %v1088_v11  ;;  %v2786_v47 = vor.u32 1.1754944e-38, %v2785_v35  ;;  %vm2784_vm7 = vcmp.eq.f32.partialorder %v2783_v39, 8.507059e+37  ;;  %v1049_v9 = vld [vmem:[%s6754_s1 + $0x1f90] sm:$0xff]  ;;  %v2868_v11 = vld [vmem:[%s6755_s0 + $0xa0] sm:$0xff]  ;;  %v1118_v35 = vld [vmem:[%s6754_s1 + $0x21b8] sm:$0xff] }
 0x24c   :  { %2611 = vmatpush.msrb.mxu0 %v938_v12  ;;  %2630 = vmatpush.msrb.mxu1 %v989_v13  ;;  %v2867_v10 = vld [vmem:[%s6755_s0 + $0x90] sm:$0xff]  ;;  %v1139_v12 = vld [vmem:[%s6754_s1 + $0x2260] sm:$0xff]  ;;  %v1190_v13 = vld [vmem:[%s6754_s1 + $0x23f8] sm:$0xff] }
 0x24d   :  { %2651 = vmatpush.msrb.mxu2 %v1034_v14  ;;  %2670 = vmatpush.msrb.mxu3 %v1085_v15  ;;  %v1235_v14 = vld [vmem:[%s6754_s1 + $0x2560] sm:$0xff]  ;;  %v2869_v15 = vld [vmem:[%s6755_s0 + $0x98] sm:$0xff] }
 0x24e   :  { %2612 = vmatpush.msrb.mxu0 %v935_v16  ;;  %2631 = vmatpush.msrb.mxu1 %v986_v17  ;;  %v2870_v16 = vld [vmem:[%s6755_s0 + $0xa8] sm:$0xff]  ;;  %v1166_v39 = vld [vmem:[%s6754_s1 + $0x2338] sm:$0xff] }
 0x24f   :  { %v2818_v24 = vpop.eup %2817  ;;  %2652 = vmatpush.msrb.mxu2 %v1031_v18  ;;  %2671 = vmatpush.msrb.mxu3 %v1082_v19  ;;  %v1136_v17 = vld [vmem:[%s6754_s1 + $0x2248] sm:$0xff]  ;;  %v1187_v18 = vld [vmem:[%s6754_s1 + $0x23e0] sm:$0xff] }
 0x250   :  { %v2775_v27 = vmul.f32 %v2818_v24, %v6410_v7  ;;  %2613 = vmatpush.msrb.mxu0 %v932_v20  ;;  %2632 = vmatpush.msrb.mxu1 %v983_v21  ;;  %vm2780_vm4 = vweird.f32 %v2818_v24  ;;  %v1238_v7 = vld [vmem:[%s6754_s1 + $0x2578] sm:$0xff]  ;;  %v1232_v19 = vld [vmem:[%s6754_s1 + $0x2548] sm:$0xff]  ;;  %v1133_v20 = vld [vmem:[%s6754_s1 + $0x2230] sm:$0xff] }
 0x251   :  { %2653 = vmatpush.msrb.mxu2 %v1028_v22  ;;  %2672 = vmatpush.msrb.mxu3 %v1079_v23  ;;  %vm2781_vm6 = vmor %vm2779_vm5, %vm2780_vm4  ;;  %v1184_v21 = vld [vmem:[%s6754_s1 + $0x23c8] sm:$0xff]  ;;  %v1229_v22 = vld [vmem:[%s6754_s1 + $0x2530] sm:$0xff] }
 0x252   :  { %v2776_v32 = vsub.f32 1.0, %v2775_v27  ;;  %2614 = vmatpush.msrb.mxu0 %v929_v25  ;;  %2633 = vmatpush.msrb.mxu1 %v980_v26  ;;  %v1130_v23 = vld [vmem:[%s6754_s1 + $0x2218] sm:$0xff]  ;;  %v1127_v26 = vld [vmem:[%s6754_s1 + $0x2200] sm:$0xff] }
 0x253   :  { %2654 = vmatpush.msrb.mxu2 %v1025_v28  ;;  %2673 = vmatpush.msrb.mxu3 %v1076_v29  ;;  %v1226_v25 = vld [vmem:[%s6754_s1 + $0x2518] sm:$0xff]  ;;  %v1223_v28 = vld [vmem:[%s6754_s1 + $0x2500] sm:$0xff]  ;;  %v1124_v29 = vld [vmem:[%s6754_s1 + $0x21e8] sm:$0xff] }
 0x254   :  { %v2777_v38 = vmul.f32 %v2818_v24, %v2776_v32  ;;  %2615 = vmatpush.msrb.mxu0 %v926_v30  ;;  %2634 = vmatpush.msrb.mxu1 %v977_v31  ;;  %v1178_v27 = vld [vmem:[%s6754_s1 + $0x2398] sm:$0xff]  ;;  %v1175_v30 = vld [vmem:[%s6754_s1 + $0x2380] sm:$0xff]  ;;  %v1220_v31 = vld [vmem:[%s6754_s1 + $0x24e8] sm:$0xff] }
 0x255   :  { %2655 = vmatpush.msrb.mxu2 %v1022_v33  ;;  %2674 = vmatpush.msrb.mxu3 %v1073_v34  ;;  %v1121_v32 = vld [vmem:[%s6754_s1 + $0x21d0] sm:$0xff]  ;;  %v1172_v33 = vld [vmem:[%s6754_s1 + $0x2368] sm:$0xff] }
 0x256   :  { %v2778_v44 = vadd.f32 %v2818_v24, %v2777_v38  ;;  %2616 = vmatpush.msrb.mxu0 %v923_v36  ;;  %2635 = vmatpush.msrb.mxu1 %v974_v37  ;;  %v1217_v34 = vld [vmem:[%s6754_s1 + $0x24d0] sm:$0xff]  ;;  %v1214_v37 = vld [vmem:[%s6754_s1 + $0x24b8] sm:$0xff]  ;;  %v1115_v38 = vld [vmem:[%s6754_s1 + $0x21a0] sm:$0xff] }
 0x257   :  { %2656 = vmatpush.msrb.mxu2 %v1019_v40  ;;  %2675 = vmatpush.msrb.mxu3 %v1070_v41  ;;  %v1169_v36 = vld [vmem:[%s6754_s1 + $0x2350] sm:$0xff]  ;;  %v1211_v40 = vld [vmem:[%s6754_s1 + $0x24a0] sm:$0xff]  ;;  %v1112_v41 = vld [vmem:[%s6754_s1 + $0x2188] sm:$0xff] }
 0x258   :  { %v2782_v50 = vsel %vm2781_vm6, %v2818_v24, %v2778_v44  ;;  %2617 = vmatpush.msrb.mxu0 %v920_v42  ;;  %2636 = vmatpush.msrb.mxu1 %v971_v43  ;;  %v1181_v24 = vld [vmem:[%s6754_s1 + $0x23b0] sm:$0xff]  ;;  %v1163_v42 = vld [vmem:[%s6754_s1 + $0x2320] sm:$0xff]  ;;  %v1208_v43 = vld [vmem:[%s6754_s1 + $0x2488] sm:$0xff] }
 0x259   :  { %v2787_v53 = vsel %vm2784_vm7, %v2786_v47, %v2782_v50  ;;  %2657 = vmatpush.msrb.mxu2 %v1016_v45  ;;  %2676 = vmatpush.msrb.mxu3 %v1067_v46  ;;  %v1109_v44 = vld [vmem:[%s6754_s1 + $0x2170] sm:$0xff]  ;;  %v1160_v45 = vld [vmem:[%s6754_s1 + $0x2308] sm:$0xff]  ;;  %v1106_v47 = vld [vmem:[%s6754_s1 + $0x2158] sm:$0xff] }
 0x25a   :  { %2805 = vst [vmem:[%s6757_s3 + $0x8] sm:$0xff] %v2787_v53  ;;  %2618 = vmatpush.msrb.mxu0 %v917_v48  ;;  %2637 = vmatpush.msrb.mxu1 %v968_v49  ;;  %v1205_v46 = vld [vmem:[%s6754_s1 + $0x2470] sm:$0xff]  ;;  %v1202_v49 = vld [vmem:[%s6754_s1 + $0x2458] sm:$0xff]  ;;  %v1103_v50 = vld [vmem:[%s6754_s1 + $0x2140] sm:$0xff] }
 0x25b   :  { %2658 = vmatpush.msrb.mxu2 %v1013_v51  ;;  %2677 = vmatpush.msrb.mxu3 %v1064_v52  ;;  %v1157_v48 = vld [vmem:[%s6754_s1 + $0x22f0] sm:$0xff]  ;;  %v1154_v51 = vld [vmem:[%s6754_s1 + $0x22d8] sm:$0xff]  ;;  %v1199_v52 = vld [vmem:[%s6754_s1 + $0x2440] sm:$0xff] }
 0x25c   :  { %2619 = vmatpush.msrb.mxu0 %v914_v54  ;;  %2638 = vmatpush.msrb.mxu1 %v965_v55  ;;  %v1100_v53 = vld [vmem:[%s6754_s1 + $0x2128] sm:$0xff]  ;;  %v1151_v54 = vld [vmem:[%s6754_s1 + $0x22c0] sm:$0xff] }
 0x25d   :  { %2659 = vmatpush.msrb.mxu2 %v1010_v56  ;;  %2678 = vmatpush.msrb.mxu3 %v1061_v57  ;;  %v1196_v55 = vld [vmem:[%s6754_s1 + $0x2428] sm:$0xff]  ;;  %v1097_v56 = vld [vmem:[%s6754_s1 + $0x2110] sm:$0xff] }
 0x25e   :  { %2620 = vmatpush.msrb.mxu0 %v911_v58  ;;  %2639 = vmatpush.msrb.mxu1 %v962_v59  ;;  %v1148_v57 = vld [vmem:[%s6754_s1 + $0x22a8] sm:$0xff]  ;;  %v1193_v58 = vld [vmem:[%s6754_s1 + $0x2410] sm:$0xff] }
 0x25f   :  { %2660 = vmatpush.msrb.mxu2 %v1007_v60  ;;  %2679 = vmatpush.msrb.mxu3 %v1058_v61  ;;  %v1145_v59 = vld [vmem:[%s6754_s1 + $0x2290] sm:$0xff]  ;;  %v2872_v61 = vld [vmem:[%s6755_s0 + $0xc0] sm:$0xff] }
 0x260   :  { %2621 = vmatpush.msrb.mxu0 %v908_v62  ;;  %2640 = vmatpush.msrb.mxu1 %v959_v63  ;;  %v2871_v60 = vld [vmem:[%s6755_s0 + $0xb0] sm:$0xff]  ;;  %v2873_v62 = vld [vmem:[%s6755_s0 + $0xb8] sm:$0xff]  ;;  %v2874_v63 = vld [vmem:[%s6756_s2] sm:$0x7] }
 0x261   :  { %2661 = vmatpush.msrb.mxu2 %v1004_v0  ;;  %2680 = vmatpush.msrb.mxu3 %v1055_v1  ;;  %v1243_v0 = vperm.slane %v2874_v63, 2  ;;  %v2264_v1 = vpop.f32.mrf.mxu2 }
 0x262   :  { %2622 = vmatpush.msrb.mxu0 %v905_v2  ;;  %2641 = vmatpush.msrb.mxu1 %v956_v3  ;;  %v2284_v3 = vpop.f32.mrf.mxu3 }
 0x263   :  { %2662 = vmatpush.msrb.mxu2 %v1001_v4  ;;  %2681 = vmatpush.msrb.mxu3 %v1052_v5  ;;  %v2265_v2 = vadd.f32 %v2264_v1, %v1243_v0  ;;  %v2304_v5 = vpop.f32.mrf.mxu0 }
 0x264   :  { %2623 = vmatmul.f32.vlgmr.msrb.gmra.mxu0 %v2867_v10  ;;  %2663 = vmatmul.f32.vlgmr.msrb.gmra.mxu2 %v2868_v11 }
 0x265   :  { %2687 = vmatpush.msra.mxu0 %v1142_v6  ;;  %2727 = vmatpush.msra.mxu2 %v1238_v7  ;;  %v2285_v4 = vadd.f32 %v2284_v3, %v2265_v2 }
 0x266   :  { %2642 = vmatpush.msrb.mxu1 %v953_v8  ;;  %2682 = vmatpush.msrb.mxu3 %v1049_v9  ;;  %v2324_v7 = vpop.f32.mrf.mxu1 }
 0x267   :  { %2643 = vmatmul.f32.vlgmr.msrb.gmra.mxu1 %v2869_v15  ;;  %2683 = vmatmul.f32.vlgmr.msrb.gmra.mxu3 %v2870_v16  ;;  %v2305_v6 = vadd.f32 %v2304_v5, %v2285_v4 }
 0x268   :  { %2688 = vmatpush.msra.mxu0 %v1139_v12  ;;  %2707 = vmatpush.msra.mxu1 %v1190_v13 }
 0x269   :  { %2728 = vmatpush.msra.mxu2 %v1235_v14  ;;  %v2325_v8 = vadd.f32 %v2324_v7, %v2305_v6  ;;  %v2344_v9 = vpop.f32.mrf.mxu2 }
 0x26a   :  { %2689 = vmatpush.msra.mxu0 %v1136_v17  ;;  %2708 = vmatpush.msra.mxu1 %v1187_v18  ;;  %v2364_v11 = vpop.f32.mrf.mxu3 }
 0x26b   :  { %2729 = vmatpush.msra.mxu2 %v1232_v19  ;;  %v2345_v10 = vadd.f32 %v2344_v9, %v2325_v8 }
 0x26c   :  { %2690 = vmatpush.msra.mxu0 %v1133_v20  ;;  %2709 = vmatpush.msra.mxu1 %v1184_v21 }
 0x26d   :  { %2730 = vmatpush.msra.mxu2 %v1229_v22  ;;  %v2365_v13 = vadd.f32 %v2364_v11, %v2345_v10 }
 0x26e   :  { %2691 = vmatpush.msra.mxu0 %v1130_v23  ;;  %2710 = vmatpush.msra.mxu1 %v1181_v24 }
 0x26f   :  { %2731 = vmatpush.msra.mxu2 %v1226_v25 }
 0x270   :  { %2692 = vmatpush.msra.mxu0 %v1127_v26  ;;  %2711 = vmatpush.msra.mxu1 %v1178_v27 }
 0x271   :  { %2732 = vmatpush.msra.mxu2 %v1223_v28 }
 0x272   :  { %2693 = vmatpush.msra.mxu0 %v1124_v29  ;;  %2712 = vmatpush.msra.mxu1 %v1175_v30 }
 0x273   :  { %2733 = vmatpush.msra.mxu2 %v1220_v31 }
 0x274   :  { %2694 = vmatpush.msra.mxu0 %v1121_v32  ;;  %2713 = vmatpush.msra.mxu1 %v1172_v33 }
 0x275   :  { %2734 = vmatpush.msra.mxu2 %v1217_v34 }
 0x276   :  { %2695 = vmatpush.msra.mxu0 %v1118_v35  ;;  %2714 = vmatpush.msra.mxu1 %v1169_v36 }
 0x277   :  { %2735 = vmatpush.msra.mxu2 %v1214_v37 }
 0x278   :  { %2696 = vmatpush.msra.mxu0 %v1115_v38  ;;  %2715 = vmatpush.msra.mxu1 %v1166_v39 }
 0x279   :  { %2736 = vmatpush.msra.mxu2 %v1211_v40 }
 0x27a   :  { %2697 = vmatpush.msra.mxu0 %v1112_v41  ;;  %2716 = vmatpush.msra.mxu1 %v1163_v42 }
 0x27b   :  { %2737 = vmatpush.msra.mxu2 %v1208_v43  ;;  %v2384_v12 = vpop.f32.mrf.mxu0 }
 0x27c   :  { %2698 = vmatpush.msra.mxu0 %v1109_v44  ;;  %2717 = vmatpush.msra.mxu1 %v1160_v45  ;;  %v2385_v14 = vadd.f32 %v2384_v12, %v2365_v13 }
 0x27d   :  { %2738 = vmatpush.msra.mxu2 %v1205_v46 }
 0x27e   :  { %2699 = vmatpush.msra.mxu0 %v1106_v47  ;;  %2718 = vmatpush.msra.mxu1 %v1157_v48  ;;  %v2404_v15 = vpop.f32.mrf.mxu1 }
 0x27f   :  { %2739 = vmatpush.msra.mxu2 %v1202_v49  ;;  %v2405_v17 = vadd.f32 %v2404_v15, %v2385_v14 }
 0x280   :  { %2700 = vmatpush.msra.mxu0 %v1103_v50  ;;  %2719 = vmatpush.msra.mxu1 %v1154_v51 }
 0x281   :  { %2740 = vmatpush.msra.mxu2 %v1199_v52  ;;  %v2424_v16 = vpop.f32.mrf.mxu2 }
 0x282   :  { %2701 = vmatpush.msra.mxu0 %v1100_v53  ;;  %2720 = vmatpush.msra.mxu1 %v1151_v54  ;;  %v2425_v18 = vadd.f32 %v2424_v16, %v2405_v17 }
 0x283   :  { %2741 = vmatpush.msra.mxu2 %v1196_v55 }
 0x284   :  { %2702 = vmatpush.msra.mxu0 %v1097_v56  ;;  %2721 = vmatpush.msra.mxu1 %v1148_v57  ;;  %v2444_v19 = vpop.f32.mrf.mxu3 }
 0x285   :  { %2742 = vmatpush.msra.mxu2 %v1193_v58  ;;  %2703 = vmatmul.f32.vlgmr.msra.gmra.mxu0 %v2871_v60  ;;  %v2445_v21 = vadd.f32 %v2444_v19, %v2425_v18 }
 0x286   :  { %2743 = vmatmul.f32.vlgmr.msra.gmra.mxu2 %v2872_v61  ;;  %2722 = vmatpush.msra.mxu1 %v1145_v59 }
 0x287   :  { %2723 = vmatmul.f32.vlgmr.msra.gmra.mxu1 %v2873_v62 }
 0x29d   :  { %v2464_v20 = vpop.f32.mrf.mxu0 }
 0x29e   :  { %v2465_v22 = vadd.f32 %v2464_v20, %v2445_v21 }
 0x2a0   :  { %v2484_v23 = vpop.f32.mrf.mxu1 }
 0x2a1   :  { %v2485_v25 = vadd.f32 %v2484_v23, %v2465_v22 }
 0x2a3   :  { %v2504_v24 = vpop.f32.mrf.mxu2 }
 0x2a4   :  { %v2505_v26 = vadd.f32 %v2504_v24, %v2485_v25 }
 0x2a6   :  { %v2524_v27 = vpop.f32.mrf.mxu3 }
 0x2a7   :  { %v2525_v29 = vadd.f32 %v2524_v27, %v2505_v26 }
 0x2bf   :  { %v2544_v28 = vpop.f32.mrf.mxu0 }
 0x2c0   :  { %v2545_v30 = vadd.f32 %v2544_v28, %v2525_v29 }
 0x2c2   :  { %v2564_v31 = vpop.f32.mrf.mxu1 }
 0x2c3   :  { %v2565_v33 = vadd.f32 %v2564_v31, %v2545_v30 }
 0x2c5   :  { %v2584_v32 = vpop.f32.mrf.mxu2 }
 0x2c6   :  { %v2585_v34 = vadd.f32 %v2584_v32, %v2565_v33 }
 0x2c8   :  { %v2604_v35 = vpop.f32.mrf.mxu3 }
 0x2c9   :  { %v2605_v37 = vadd.f32 %v2604_v35, %v2585_v34 }
 0x2e1   :  { %v2624_v36 = vpop.f32.mrf.mxu0 }
 0x2e2   :  { %v2625_v38 = vadd.f32 %v2624_v36, %v2605_v37 }
 0x2e4   :  { %v2644_v39 = vpop.f32.mrf.mxu1 }
 0x2e5   :  { %v2645_v41 = vadd.f32 %v2644_v39, %v2625_v38 }
 0x2e7   :  { %v2664_v40 = vpop.f32.mrf.mxu2 }
 0x2e8   :  { %v2665_v42 = vadd.f32 %v2664_v40, %v2645_v41 }
 0x2ea   :  { %v2684_v43 = vpop.f32.mrf.mxu3 }
 0x2eb   :  { %v2685_v44 = vadd.f32 %v2684_v43, %v2665_v42 }
 0x302   :  { %v2704_v45 = vpop.f32.mrf.mxu0 }
 0x303   :  { %v2705_v46 = vadd.f32 %v2704_v45, %v2685_v44 }
 0x304   :  { %v2724_v47 = vpop.f32.mrf.mxu1 }
 0x305   :  { %v2725_v48 = vadd.f32 %v2724_v47, %v2705_v46 }
 0x309   :  { %v2744_v49 = vpop.f32.mrf.mxu2 }
 0x30a   :  { %v2745_v50 = vadd.f32 %v2744_v49, %v2725_v48 }
 0x30c   :  { %v2749_v51 = vsub.f32 0.0, %v2745_v50 }
 0x30e   :  { %v2754_v52 = vmul.f32 1.442695, %v2749_v51 }
 0x310   :  { %2819 = vpow2.f32 %v2754_v52 }
 0x316   :  { %v2820_v53 = vpop.eup %2819 }
 0x317   :  { %v2758_v54 = vadd.f32 1.0, %v2820_v53 }
 0x319   :  { %2821 = vrcp.f32 %v2758_v54  ;;  %v2800_v58 = vand.u32 2147483648, %v2758_v54  ;;  %v2798_v60 = vand.u32 2147483647, %v2758_v54  ;;  %vm2794_vm9 = vweird.f32 %v2758_v54 }
 0x31b   :  { %v2801_v62 = vor.u32 1.1754944e-38, %v2800_v58  ;;  %vm2799_vm11 = vcmp.eq.f32.partialorder %v2798_v60, 8.507059e+37 }
 0x31f   :  { %v2822_v55 = vpop.eup %2821 }
 0x320   :  { %v2790_v56 = vmul.f32 %v2822_v55, %v2758_v54  ;;  %vm2795_vm8 = vweird.f32 %v2822_v55 }
 0x321   :  { %vm2796_vm10 = vmor %vm2794_vm9, %vm2795_vm8 }
 0x322   :  { %v2791_v57 = vsub.f32 1.0, %v2790_v56 }
 0x324   :  { %v2792_v59 = vmul.f32 %v2822_v55, %v2791_v57 }
 0x326   :  { %v2793_v61 = vadd.f32 %v2822_v55, %v2792_v59 }
 0x328   :  { %v2797_v63 = vsel %vm2796_vm10, %v2822_v55, %v2793_v61 }
 0x329   :  { %v2802_v0 = vsel %vm2799_vm11, %v2801_v62, %v2797_v63 }
 0x32a   :  { %2806 = vst [vmem:[%s6757_s3 + $0x10] sm:$0xff] %v2802_v0 }

</bundles_post_ra>
